<compile_context>
chip_gen: v7x
topology: tpu7x:2x2x1
jax: 0.10.0
libtpu: 0.0.40
codegen_flags: <defaults>
</compile_context>

<pallas_src>
import functools
import math

import jax
import jax.numpy as jnp
from jax import lax
from jax.experimental import pallas as pl
from jax.experimental.pallas import tpu as pltpu


_VMEM_SPEC = pl.BlockSpec(memory_space=pltpu.MemorySpace.VMEM)


# -----------------------------------------------------------------------------
# Fused Pallas kernel: 2-layer bidirectional GRU + last-step Linear
# -----------------------------------------------------------------------------
def _gru2_bidir_fc_kernel(
    x_ref,                                    # (seq*B, in)  time-major rows
    wi1_ref, b1_ref, wh1_ref, bhn1_ref,       # layer-1, fwd+bwd fused, gate-strided
    wi2f_ref, b2f_ref, wh2f_ref, bhn2f_ref,   # layer-2 forward
    wi2b_ref, b2b_ref, bhn2b_ref,             # layer-2 backward (one step, h0 = 0)
    fcw_ref, fcb_ref,                         # (2H, F), (1, F)
    out_ref,                                  # (B, F)
    xp_ref, h1_ref,                           # scratch (seq*B, 3*GS), (seq*B, 2H)
    *, seq, batch, hidden, gate_stride):
    H, B, GS = hidden, batch, gate_stride
    H2 = 2 * H
    NG = 3 * GS
    f32 = jnp.float32

    def gru_step(h_prev, xp_t, wh, bhn, w):
        # xp_t already holds x@W_i^T + (b_i + b_h) for r,z and x@W_in^T + b_in for n.
        # Gate g lives in lanes [g*GS, g*GS + w): every slice below is vreg-aligned.
        gh = jnp.dot(h_prev, wh, preferred_element_type=f32)          # ONE MXU issue
        r = jax.nn.sigmoid(xp_t[:, 0:w] + gh[:, 0:w])
        z = jax.nn.sigmoid(xp_t[:, GS:GS + w] + gh[:, GS:GS + w])
        n = jnp.tanh(xp_t[:, 2 * GS:2 * GS + w]
                     + r * (gh[:, 2 * GS:2 * GS + w] + bhn))
        return (1.0 - z) * n + z * h_prev

    # --------------------------- layer 1 -----------------------------------
    # One fused input projection for BOTH directions (fwd/bwd occupy disjoint lane
    # slots inside each 128-lane gate group).
    xp_all = (jnp.dot(x_ref[...], wi1_ref[...], preferred_element_type=f32)
              + b1_ref[...])                                          # (seq*B, NG)

    # Build the time-aligned fused slab into scratch: row-block t carries the fwd
    # gates of time t and the bwd gates of time seq-1-t (constant lane-mask select).
    lane = lax.broadcasted_iota(jnp.int32, (B, NG), 1)
    is_fwd_lane = (lane % GS) < H
    for t in range(seq):
        tb = seq - 1 - t
        xp_ref[pl.ds(t * B, B), :] = jnp.where(
            is_fwd_lane,
            xp_all[t * B:(t + 1) * B, :],
            xp_all[tb * B:(tb + 1) * B, :])

    # Fused fwd+bwd recurrence: state is (B, 2H) = (fwd | bwd); hidden weight is
    # block-diagonal so one dot drives both chains.
    wh1 = wh1_ref[...]
    bhn1 = jnp.broadcast_to(bhn1_ref[...], (B, H2))
    h1 = jnp.zeros((B, H2), f32)
    for t in range(seq):                        # static unroll (seq is small)
        tb = seq - 1 - t
        h1 = gru_step(h1, xp_ref[pl.ds(t * B, B), :], wh1, bhn1, H2)
        # Time-aligned layer-1 output store (off the critical chain):
        h1_ref[pl.ds(t * B, B), 0:H] = h1[:, 0:H]          # fwd state of time t
        h1_ref[pl.ds(tb * B, B), H:H2] = h1[:, H:H2]       # bwd state of time tb

    # --------------------------- layer 2 -----------------------------------
    # Layer-2 forward input projection: ONE dot over the fused (seq*B, 2H) scratch.
    h1_all = h1_ref[...]
    xp_ref[...] = (jnp.dot(h1_all, wi2f_ref[...], preferred_element_type=f32)
                   + b2f_ref[...])              # reuse the xp scratch slab

    # Layer-2 backward direction: only its state at t = seq-1 feeds the FC, which is
    # exactly ONE step from h0 = 0 on the last timestep's input.
    h1_last = h1_all[(seq - 1) * B:seq * B, :]
    xp2b = (jnp.dot(h1_last, wi2b_ref[...], preferred_element_type=f32)
            + b2b_ref[...])
    rb = jax.nn.sigmoid(xp2b[:, 0:H])
    zb = jax.nn.sigmoid(xp2b[:, GS:GS + H])
    nb = jnp.tanh(xp2b[:, 2 * GS:2 * GS + H]
                  + rb * jnp.broadcast_to(bhn2b_ref[...], (B, H)))
    h2b = (1.0 - zb) * nb                       # + z*h0 with h0 = 0

    # Layer-2 forward recurrence: only the final hidden state is needed.
    wh2 = wh2f_ref[...]
    bhn2 = jnp.broadcast_to(bhn2f_ref[...], (B, H))
    h2 = jnp.zeros((B, H), f32)
    for t in range(seq):
        h2 = gru_step(h2, xp_ref[pl.ds(t * B, B), :], wh2, bhn2, H)

    # ---------------- dropout (identity in eval) + fc -----------------------
    fcw = fcw_ref[...]                          # (2H, F), row-split (no concat)
    out_ref[...] = (jnp.dot(h2, fcw[0:H, :], preferred_element_type=f32)
                    + jnp.dot(h2b, fcw[H:H2, :], preferred_element_type=f32)
                    + fcb_ref[...])


# -----------------------------------------------------------------------------
# Wrapper
# -----------------------------------------------------------------------------
def gru_model_forward(x, packed):
    """Forward pass of GRUModelMultiStep.  x: (batch, seq, input_size)."""
    batch, seq, input_size = x.shape
    H2, NG = packed["wh1"].shape               # (2H, 3*GS)
    hidden = H2 // 2
    gate_stride = NG // 3
    forecast = packed["fc_w"].shape[1]

    # Pad batch to a full sublane tile so every in-kernel slice/store is aligned.
    batch_p = ((batch + 7) // 8) * 8
    if batch_p != batch:
        x = jnp.pad(x, ((0, batch_p - batch), (0, 0), (0, 0)))

    # Tiny layout op outside the single fused launch: time-major, flattened rows
    # (fuses with the pad inside jit).
    x_flat = jnp.transpose(x, (1, 0, 2)).reshape(seq * batch_p, input_size)

    args = (x_flat,
            packed["wi1"], packed["b1"], packed["wh1"], packed["bhn1"],
            packed["wi2f"], packed["b2f"], packed["wh2f"], packed["bhn2f"],
            packed["wi2b"], packed["b2b"], packed["bhn2b"],
            packed["fc_w"], packed["fc_b"])

    kernel = functools.partial(_gru2_bidir_fc_kernel, seq=seq, batch=batch_p,
                               hidden=hidden, gate_stride=gate_stride)
    out = pl.pallas_call(
        kernel,
        out_shape=jax.ShapeDtypeStruct((batch_p, forecast), jnp.float32),
        in_specs=[_VMEM_SPEC] * len(args),
        out_specs=_VMEM_SPEC,
        scratch_shapes=[pltpu.VMEM((seq * batch_p, NG), jnp.float32),
                        pltpu.VMEM((seq * batch_p, H2), jnp.float32)],
    )(*args)
    return out[:batch]


# -----------------------------------------------------------------------------
# Host-side weight packing
# -----------------------------------------------------------------------------
def pack_params(params):
    """Pack per-gate GRU params into gate-strided, direction-fused matrices."""
    layers = params["gru"]
    assert len(layers) == 2, "kernel is specialized for num_layers=2 (module default)"
    H = layers[0]["fwd"][3].shape[0]            # W_hr is (H, H)
    H2 = 2 * H
    GS = max(128, ((H2 + 127) // 128) * 128)    # 128-lane gate stride

    def pad_cols(w):
        return jnp.pad(w, ((0, 0), (0, GS - w.shape[1])))

    def fuse_gates(cols):                       # list of 3 per-gate blocks
        return jnp.concatenate([pad_cols(c) for c in cols], axis=1)

    # ------------------------- layer 1 (fwd + bwd fused) --------------------
    (wir_f, wiz_f, win_f, whr_f, whz_f, whn_f,
     bir_f, biz_f, bin_f, bhr_f, bhz_f, bhn_f) = layers[0]["fwd"]
    (wir_b, wiz_b, win_b, whr_b, whz_b, whn_b,
     bir_b, biz_b, bin_b, bhr_b, bhz_b, bhn_b) = layers[0]["bwd"]

    wi1 = fuse_gates([jnp.concatenate([wir_f, wir_b], 1),
                      jnp.concatenate([wiz_f, wiz_b], 1),
                      jnp.concatenate([win_f, win_b], 1)])            # (in, 3GS)
    b1 = fuse_gates([jnp.concatenate([bir_f + bhr_f, bir_b + bhr_b], 1),
                     jnp.concatenate([biz_f + bhz_f, biz_b + bhz_b], 1),
                     jnp.concatenate([bin_f, bin_b], 1)])             # (1, 3GS)
    zero_h = jnp.zeros((H, H), jnp.float32)

    def blockdiag(wf, wb):                      # (2H, 2H) block-diagonal gate block
        top = jnp.concatenate([wf, zero_h], 1)
        bot = jnp.concatenate([zero_h, wb], 1)
        return jnp.concatenate([top, bot], 0)

    wh1 = fuse_gates([blockdiag(whr_f, whr_b),
                      blockdiag(whz_f, whz_b),
                      blockdiag(whn_f, whn_b)])                       # (2H, 3GS)
    bhn1 = jnp.concatenate([bhn_f, bhn_b], 1)                         # (1, 2H)

    # ------------------------- layer 2 ---------------------------------------
    (wir2f, wiz2f, win2f, whr2f, whz2f, whn2f,
     bir2f, biz2f, bin2f, bhr2f, bhz2f, bhn2f) = layers[1]["fwd"]
    (wir2b, wiz2b, win2b, _whr2b, _whz2b, _whn2b,
     bir2b, biz2b, bin2b, bhr2b, bhz2b, bhn2b) = layers[1]["bwd"]

    wi2f = fuse_gates([wir2f, wiz2f, win2f])                          # (2H, 3GS)
    b2f = fuse_gates([bir2f + bhr2f, biz2f + bhz2f, bin2f])
    wh2f = fuse_gates([whr2f, whz2f, whn2f])                          # (H, 3GS)

    wi2b = fuse_gates([wir2b, wiz2b, win2b])                          # (2H, 3GS)
    b2b = fuse_gates([bir2b + bhr2b, biz2b + bhz2b, bin2b])
    # W_h of layer-2 backward is never needed: its single step starts from h0 = 0.

    return dict(wi1=wi1, b1=b1, wh1=wh1, bhn1=bhn1,
                wi2f=wi2f, b2f=b2f, wh2f=wh2f, bhn2f=bhn2f,
                wi2b=wi2b, b2b=b2b, bhn2b=bhn2b,
                fc_w=params["fc_w"], fc_b=params["fc_b"])


# -----------------------------------------------------------------------------
# Pure-JAX reference (correctness check of the fused Pallas kernel)
# -----------------------------------------------------------------------------
def _ref_gru_direction(x_tbi, p, hidden):
    wir, wiz, win, whr, whz, whn, bir, biz, bin_, bhr, bhz, bhn = p

    def step(h, x_t):
        r = jax.nn.sigmoid(x_t @ wir + bir + h @ whr + bhr)
        z = jax.nn.sigmoid(x_t @ wiz + biz + h @ whz + bhz)
        n = jnp.tanh(x_t @ win + bin_ + r * (h @ whn + bhn))
        h_new = (1.0 - z) * n + z * h
        return h_new, h_new

    h0 = jnp.zeros((x_tbi.shape[1], hidden), jnp.float32)
    _, hs = lax.scan(step, h0, x_tbi)
    return hs


def _ref_forward(x, params, hidden, num_layers):
    layer_in = jnp.transpose(x, (1, 0, 2))
    for layer in range(num_layers):
        fwd = _ref_gru_direction(layer_in, params["gru"][layer]["fwd"], hidden)
        bwd = jnp.flip(
            _ref_gru_direction(jnp.flip(layer_in, axis=0),
                               params["gru"][layer]["bwd"], hidden), axis=0)
        layer_in = jnp.concatenate([fwd, bwd], axis=-1)
    last = layer_in[-1]
    return last @ params["fc_w"] + params["fc_b"]


# -----------------------------------------------------------------------------
# Deterministic parameter init (PyTorch-style U(-1/sqrt(H), 1/sqrt(H)))
# -----------------------------------------------------------------------------
def init_params(key, input_size, hidden, num_layers, forecast):
    k_gru = 1.0 / math.sqrt(hidden)
    params = {"gru": []}
    for layer in range(num_layers):
        in_dim = input_size if layer == 0 else 2 * hidden
        layer_p = {}
        for direction in ("fwd", "bwd"):
            shapes = ([(in_dim, hidden)] * 3      # W_ir^T, W_iz^T, W_in^T
                      + [(hidden, hidden)] * 3    # W_hr^T, W_hz^T, W_hn^T
                      + [(1, hidden)] * 6)        # b_ir,b_iz,b_in,b_hr,b_hz,b_hn
            ps = []
            for shp in shapes:
                key, sub = jax.random.split(key)
                ps.append(jax.random.uniform(sub, shp, jnp.float32, -k_gru, k_gru))
            layer_p[direction] = tuple(ps)
        params["gru"].append(layer_p)
    k_fc = 1.0 / math.sqrt(2 * hidden)
    key, k1 = jax.random.split(key)
    key, k2 = jax.random.split(key)
    params["fc_w"] = jax.random.uniform(k1, (2 * hidden, forecast), jnp.float32,
                                        -k_fc, k_fc)
    params["fc_b"] = jax.random.uniform(k2, (1, forecast), jnp.float32,
                                        -k_fc, k_fc)
    return params


# -----------------------------------------------------------------------------
if __name__ == "__main__":
    INPUT_SIZE = 7
    HIDDEN = 32
    NUM_LAYERS = 2
    FORECAST = 1
    BATCH = 4
    SEQ = 8

    key = jax.random.PRNGKey(0)
    key, kx = jax.random.split(key)
    x = jax.random.normal(kx, (BATCH, SEQ, INPUT_SIZE), jnp.float32)

    params = init_params(key, INPUT_SIZE, HIDDEN, NUM_LAYERS, FORECAST)
    packed = pack_params(params)

    out = jax.jit(gru_model_forward)(x, packed)
    out = jax.block_until_ready(out)
    assert out.shape == (BATCH, FORECAST), out.shape

    ref = jax.block_until_ready(_ref_forward(x, params, HIDDEN, NUM_LAYERS))
    assert jnp.allclose(out, ref, atol=1e-5, rtol=1e-5), (out, ref)

    print("KERNEL_OK")
</pallas_src>

<mosaic_0001>
module attributes {stable_mosaic.version = 11 : i64} {
  func.func @_gru2_bidir_fc_kernel(%arg0: memref<64x7xf32, #tpu.memory_space<vmem>>, %arg1: memref<7x384xf32, #tpu.memory_space<vmem>>, %arg2: memref<1x384xf32, #tpu.memory_space<vmem>>, %arg3: memref<64x384xf32, #tpu.memory_space<vmem>>, %arg4: memref<1x64xf32, #tpu.memory_space<vmem>>, %arg5: memref<64x384xf32, #tpu.memory_space<vmem>>, %arg6: memref<1x384xf32, #tpu.memory_space<vmem>>, %arg7: memref<32x384xf32, #tpu.memory_space<vmem>>, %arg8: memref<1x32xf32, #tpu.memory_space<vmem>>, %arg9: memref<64x384xf32, #tpu.memory_space<vmem>>, %arg10: memref<1x384xf32, #tpu.memory_space<vmem>>, %arg11: memref<1x32xf32, #tpu.memory_space<vmem>>, %arg12: memref<64x1xf32, #tpu.memory_space<vmem>>, %arg13: memref<1x1xf32, #tpu.memory_space<vmem>>, %arg14: memref<8x1xf32, #tpu.memory_space<vmem>>, %arg15: memref<64x384xf32, #tpu.memory_space<vmem>>, %arg16: memref<64x64xf32, #tpu.memory_space<vmem>>) attributes {dimension_semantics = [], scalar_prefetch = 0 : i64, scratch_operands = 2 : i64, tpu.core_type = #tpu.core_type<tc>} {
    %c0 = arith.constant 0 : index
    %c0_0 = arith.constant 0 : index
    %0 = vector.load %arg0[%c0, %c0_0] : memref<64x7xf32, #tpu.memory_space<vmem>>, vector<64x7xf32>
    %c0_1 = arith.constant 0 : index
    %c0_2 = arith.constant 0 : index
    %1 = vector.load %arg1[%c0_1, %c0_2] : memref<7x384xf32, #tpu.memory_space<vmem>>, vector<7x384xf32>
    %cst = arith.constant dense<0.000000e+00> : vector<64x384xf32>
    %2 = tpu.matmul %0, %1, %cst {dimension_numbers = #tpu.dot_dimension_numbers<[1], [0], [0], [1], [0, 0, 1, 1], [], []>} : vector<64x7xf32>, vector<7x384xf32>, vector<64x384xf32> -> vector<64x384xf32>
    %c0_3 = arith.constant 0 : index
    %c0_4 = arith.constant 0 : index
    %3 = vector.load %arg2[%c0_3, %c0_4] : memref<1x384xf32, #tpu.memory_space<vmem>>, vector<1x384xf32>
    %4 = vector.broadcast %3 : vector<1x384xf32> to vector<64x384xf32>
    %5 = arith.addf %2, %4 : vector<64x384xf32>
    %6 = tpu.iota {dimensions = array<i32: 1>} : vector<8x384xi32>
    %c128_i32 = arith.constant 128 : i32
    %c0_i32 = arith.constant 0 : i32
    %7 = arith.cmpi eq, %c128_i32, %c0_i32 : i32
    %c1_i32 = arith.constant 1 : i32
    %8 = arith.select %7, %c1_i32, %c128_i32 : i32
    %9 = vector.broadcast %8 : i32 to vector<8x384xi32>
    %10 = arith.remsi %6, %9 : vector<8x384xi32>
    %c0_i32_5 = arith.constant 0 : i32
    %11 = vector.broadcast %c0_i32_5 : i32 to vector<8x384xi32>
    %12 = arith.cmpi ne, %10, %11 : vector<8x384xi32>
    %c0_i32_6 = arith.constant 0 : i32
    %13 = vector.broadcast %c0_i32_6 : i32 to vector<8x384xi32>
    %14 = arith.cmpi slt, %10, %13 : vector<8x384xi32>
    %c0_i32_7 = arith.constant 0 : i32
    %15 = arith.cmpi slt, %8, %c0_i32_7 : i32
    %16 = vector.broadcast %15 : i1 to vector<8x384xi1>
    %17 = vector.broadcast %16 : vector<8x384xi1> to vector<8x384xi1>
    %18 = arith.xori %14, %17 : vector<8x384xi1>
    %19 = arith.andi %18, %12 : vector<8x384xi1>
    %20 = vector.broadcast %8 : i32 to vector<8x384xi32>
    %21 = arith.addi %10, %20 : vector<8x384xi32>
    %22 = arith.select %19, %21, %10 : vector<8x384xi1>, vector<8x384xi32>
    %c32_i32 = arith.constant 32 : i32
    %23 = vector.broadcast %c32_i32 : i32 to vector<8x384xi32>
    %24 = arith.cmpi slt, %22, %23 : vector<8x384xi32>
    %25 = vector.extract_strided_slice %5 {offsets = [0, 0], sizes = [8, 384], strides = [1, 1]} : vector<64x384xf32> to vector<8x384xf32>
    %26 = vector.extract_strided_slice %5 {offsets = [56, 0], sizes = [8, 384], strides = [1, 1]} : vector<64x384xf32> to vector<8x384xf32>
    %27 = arith.select %24, %25, %26 : vector<8x384xi1>, vector<8x384xf32>
    %c0_8 = arith.constant 0 : index
    %c0_9 = arith.constant 0 : index
    %28 = vector.load %arg15[%c0_8, %c0_9] : memref<64x384xf32, #tpu.memory_space<vmem>>, vector<8x384xf32>
    tpu.vector_store %arg15[%c0_8, %c0_9], %27 {strides = array<i32>} : memref<64x384xf32, #tpu.memory_space<vmem>>, vector<8x384xf32>,
    %29 = vector.extract_strided_slice %5 {offsets = [8, 0], sizes = [8, 384], strides = [1, 1]} : vector<64x384xf32> to vector<8x384xf32>
    %30 = vector.extract_strided_slice %5 {offsets = [48, 0], sizes = [8, 384], strides = [1, 1]} : vector<64x384xf32> to vector<8x384xf32>
    %31 = arith.select %24, %29, %30 : vector<8x384xi1>, vector<8x384xf32>
    %c8 = arith.constant 8 : index
    %c0_10 = arith.constant 0 : index
    %32 = vector.load %arg15[%c8, %c0_10] : memref<64x384xf32, #tpu.memory_space<vmem>>, vector<8x384xf32>
    tpu.vector_store %arg15[%c8, %c0_10], %31 {strides = array<i32>} : memref<64x384xf32, #tpu.memory_space<vmem>>, vector<8x384xf32>,
    %33 = vector.extract_strided_slice %5 {offsets = [16, 0], sizes = [8, 384], strides = [1, 1]} : vector<64x384xf32> to vector<8x384xf32>
    %34 = vector.extract_strided_slice %5 {offsets = [40, 0], sizes = [8, 384], strides = [1, 1]} : vector<64x384xf32> to vector<8x384xf32>
    %35 = arith.select %24, %33, %34 : vector<8x384xi1>, vector<8x384xf32>
    %c16 = arith.constant 16 : index
    %c0_11 = arith.constant 0 : index
    %36 = vector.load %arg15[%c16, %c0_11] : memref<64x384xf32, #tpu.memory_space<vmem>>, vector<8x384xf32>
    tpu.vector_store %arg15[%c16, %c0_11], %35 {strides = array<i32>} : memref<64x384xf32, #tpu.memory_space<vmem>>, vector<8x384xf32>,
    %37 = vector.extract_strided_slice %5 {offsets = [24, 0], sizes = [8, 384], strides = [1, 1]} : vector<64x384xf32> to vector<8x384xf32>
    %38 = vector.extract_strided_slice %5 {offsets = [32, 0], sizes = [8, 384], strides = [1, 1]} : vector<64x384xf32> to vector<8x384xf32>
    %39 = arith.select %24, %37, %38 : vector<8x384xi1>, vector<8x384xf32>
    %c24 = arith.constant 24 : index
    %c0_12 = arith.constant 0 : index
    %40 = vector.load %arg15[%c24, %c0_12] : memref<64x384xf32, #tpu.memory_space<vmem>>, vector<8x384xf32>
    tpu.vector_store %arg15[%c24, %c0_12], %39 {strides = array<i32>} : memref<64x384xf32, #tpu.memory_space<vmem>>, vector<8x384xf32>,
    %41 = vector.extract_strided_slice %5 {offsets = [32, 0], sizes = [8, 384], strides = [1, 1]} : vector<64x384xf32> to vector<8x384xf32>
    %42 = vector.extract_strided_slice %5 {offsets = [24, 0], sizes = [8, 384], strides = [1, 1]} : vector<64x384xf32> to vector<8x384xf32>
    %43 = arith.select %24, %41, %42 : vector<8x384xi1>, vector<8x384xf32>
    %c32 = arith.constant 32 : index
    %c0_13 = arith.constant 0 : index
    %44 = vector.load %arg15[%c32, %c0_13] : memref<64x384xf32, #tpu.memory_space<vmem>>, vector<8x384xf32>
    tpu.vector_store %arg15[%c32, %c0_13], %43 {strides = array<i32>} : memref<64x384xf32, #tpu.memory_space<vmem>>, vector<8x384xf32>,
    %45 = vector.extract_strided_slice %5 {offsets = [40, 0], sizes = [8, 384], strides = [1, 1]} : vector<64x384xf32> to vector<8x384xf32>
    %46 = vector.extract_strided_slice %5 {offsets = [16, 0], sizes = [8, 384], strides = [1, 1]} : vector<64x384xf32> to vector<8x384xf32>
    %47 = arith.select %24, %45, %46 : vector<8x384xi1>, vector<8x384xf32>
    %c40 = arith.constant 40 : index
    %c0_14 = arith.constant 0 : index
    %48 = vector.load %arg15[%c40, %c0_14] : memref<64x384xf32, #tpu.memory_space<vmem>>, vector<8x384xf32>
    tpu.vector_store %arg15[%c40, %c0_14], %47 {strides = array<i32>} : memref<64x384xf32, #tpu.memory_space<vmem>>, vector<8x384xf32>,
    %49 = vector.extract_strided_slice %5 {offsets = [48, 0], sizes = [8, 384], strides = [1, 1]} : vector<64x384xf32> to vector<8x384xf32>
    %50 = vector.extract_strided_slice %5 {offsets = [8, 0], sizes = [8, 384], strides = [1, 1]} : vector<64x384xf32> to vector<8x384xf32>
    %51 = arith.select %24, %49, %50 : vector<8x384xi1>, vector<8x384xf32>
    %c48 = arith.constant 48 : index
    %c0_15 = arith.constant 0 : index
    %52 = vector.load %arg15[%c48, %c0_15] : memref<64x384xf32, #tpu.memory_space<vmem>>, vector<8x384xf32>
    tpu.vector_store %arg15[%c48, %c0_15], %51 {strides = array<i32>} : memref<64x384xf32, #tpu.memory_space<vmem>>, vector<8x384xf32>,
    %53 = vector.extract_strided_slice %5 {offsets = [56, 0], sizes = [8, 384], strides = [1, 1]} : vector<64x384xf32> to vector<8x384xf32>
    %54 = vector.extract_strided_slice %5 {offsets = [0, 0], sizes = [8, 384], strides = [1, 1]} : vector<64x384xf32> to vector<8x384xf32>
    %55 = arith.select %24, %53, %54 : vector<8x384xi1>, vector<8x384xf32>
    %c56 = arith.constant 56 : index
    %c0_16 = arith.constant 0 : index
    %56 = vector.load %arg15[%c56, %c0_16] : memref<64x384xf32, #tpu.memory_space<vmem>>, vector<8x384xf32>
    tpu.vector_store %arg15[%c56, %c0_16], %55 {strides = array<i32>} : memref<64x384xf32, #tpu.memory_space<vmem>>, vector<8x384xf32>,
    %c0_17 = arith.constant 0 : index
    %c0_18 = arith.constant 0 : index
    %57 = vector.load %arg3[%c0_17, %c0_18] : memref<64x384xf32, #tpu.memory_space<vmem>>, vector<64x384xf32>
    %c0_19 = arith.constant 0 : index
    %c0_20 = arith.constant 0 : index
    %58 = vector.load %arg4[%c0_19, %c0_20] : memref<1x64xf32, #tpu.memory_space<vmem>>, vector<1x64xf32>
    %59 = vector.shape_cast %58 : vector<1x64xf32> to vector<1x64xf32>
    %60 = vector.broadcast %59 : vector<1x64xf32> to vector<8x64xf32>
    %cst_21 = arith.constant 0.000000e+00 : f32
    %61 = vector.broadcast %cst_21 : f32 to vector<8x64xf32>
    %c0_22 = arith.constant 0 : index
    %c0_23 = arith.constant 0 : index
    %62 = vector.load %arg15[%c0_22, %c0_23] : memref<64x384xf32, #tpu.memory_space<vmem>>, vector<8x384xf32>
    %cst_24 = arith.constant dense<0.000000e+00> : vector<8x384xf32>
    %63 = tpu.matmul %61, %57, %cst_24 {dimension_numbers = #tpu.dot_dimension_numbers<[1], [0], [0], [1], [0, 0, 1, 1], [], []>} : vector<8x64xf32>, vector<64x384xf32>, vector<8x384xf32> -> vector<8x384xf32>
    %64 = vector.extract_strided_slice %62 {offsets = [0, 0], sizes = [8, 64], strides = [1, 1]} : vector<8x384xf32> to vector<8x64xf32>
    %65 = vector.extract_strided_slice %63 {offsets = [0, 0], sizes = [8, 64], strides = [1, 1]} : vector<8x384xf32> to vector<8x64xf32>
    %66 = arith.addf %64, %65 : vector<8x64xf32>
    %67 = arith.negf %66 : vector<8x64xf32>
    %68 = math.exp %67 : vector<8x64xf32>
    %cst_25 = arith.constant 1.000000e+00 : f32
    %69 = vector.broadcast %cst_25 : f32 to vector<8x64xf32>
    %70 = arith.addf %69, %68 : vector<8x64xf32>
    %71 = arith.divf %69, %70 : vector<8x64xf32>
    %72 = vector.extract_strided_slice %62 {offsets = [0, 128], sizes = [8, 64], strides = [1, 1]} : vector<8x384xf32> to vector<8x64xf32>
    %73 = vector.extract_strided_slice %63 {offsets = [0, 128], sizes = [8, 64], strides = [1, 1]} : vector<8x384xf32> to vector<8x64xf32>
    %74 = arith.addf %72, %73 : vector<8x64xf32>
    %75 = arith.negf %74 : vector<8x64xf32>
    %76 = math.exp %75 : vector<8x64xf32>
    %cst_26 = arith.constant 1.000000e+00 : f32
    %77 = vector.broadcast %cst_26 : f32 to vector<8x64xf32>
    %78 = arith.addf %77, %76 : vector<8x64xf32>
    %79 = arith.divf %77, %78 : vector<8x64xf32>
    %80 = vector.extract_strided_slice %62 {offsets = [0, 256], sizes = [8, 64], strides = [1, 1]} : vector<8x384xf32> to vector<8x64xf32>
    %81 = vector.extract_strided_slice %63 {offsets = [0, 256], sizes = [8, 64], strides = [1, 1]} : vector<8x384xf32> to vector<8x64xf32>
    %82 = arith.addf %81, %60 : vector<8x64xf32>
    %83 = arith.mulf %71, %82 : vector<8x64xf32>
    %84 = arith.addf %80, %83 : vector<8x64xf32>
    %85 = math.tanh %84 : vector<8x64xf32>
    %cst_27 = arith.constant 1.000000e+00 : f32
    %86 = vector.broadcast %cst_27 : f32 to vector<8x64xf32>
    %87 = arith.subf %86, %79 : vector<8x64xf32>
    %88 = arith.mulf %87, %85 : vector<8x64xf32>
    %89 = arith.mulf %79, %61 : vector<8x64xf32>
    %90 = arith.addf %88, %89 : vector<8x64xf32>
    %91 = vector.extract_strided_slice %90 {offsets = [0, 0], sizes = [8, 32], strides = [1, 1]} : vector<8x64xf32> to vector<8x32xf32>
    %c0_28 = arith.constant 0 : index
    %c0_29 = arith.constant 0 : index
    %92 = vector.load %arg16[%c0_28, %c0_29] : memref<64x64xf32, #tpu.memory_space<vmem>>, vector<8x32xf32>
    tpu.vector_store %arg16[%c0_28, %c0_29], %91 {strides = array<i32>} : memref<64x64xf32, #tpu.memory_space<vmem>>, vector<8x32xf32>,
    %93 = vector.extract_strided_slice %90 {offsets = [0, 32], sizes = [8, 32], strides = [1, 1]} : vector<8x64xf32> to vector<8x32xf32>
    %c56_30 = arith.constant 56 : index
    %c32_31 = arith.constant 32 : index
    %94 = vector.load %arg16[%c56_30, %c32_31] : memref<64x64xf32, #tpu.memory_space<vmem>>, vector<8x32xf32>
    tpu.vector_store %arg16[%c56_30, %c32_31], %93 {strides = array<i32>} : memref<64x64xf32, #tpu.memory_space<vmem>>, vector<8x32xf32>,
    %c8_32 = arith.constant 8 : index
    %c0_33 = arith.constant 0 : index
    %95 = vector.load %arg15[%c8_32, %c0_33] : memref<64x384xf32, #tpu.memory_space<vmem>>, vector<8x384xf32>
    %cst_34 = arith.constant dense<0.000000e+00> : vector<8x384xf32>
    %96 = tpu.matmul %90, %57, %cst_34 {dimension_numbers = #tpu.dot_dimension_numbers<[1], [0], [0], [1], [0, 0, 1, 1], [], []>} : vector<8x64xf32>, vector<64x384xf32>, vector<8x384xf32> -> vector<8x384xf32>
    %97 = vector.extract_strided_slice %95 {offsets = [0, 0], sizes = [8, 64], strides = [1, 1]} : vector<8x384xf32> to vector<8x64xf32>
    %98 = vector.extract_strided_slice %96 {offsets = [0, 0], sizes = [8, 64], strides = [1, 1]} : vector<8x384xf32> to vector<8x64xf32>
    %99 = arith.addf %97, %98 : vector<8x64xf32>
    %100 = arith.negf %99 : vector<8x64xf32>
    %101 = math.exp %100 : vector<8x64xf32>
    %cst_35 = arith.constant 1.000000e+00 : f32
    %102 = vector.broadcast %cst_35 : f32 to vector<8x64xf32>
    %103 = arith.addf %102, %101 : vector<8x64xf32>
    %104 = arith.divf %102, %103 : vector<8x64xf32>
    %105 = vector.extract_strided_slice %95 {offsets = [0, 128], sizes = [8, 64], strides = [1, 1]} : vector<8x384xf32> to vector<8x64xf32>
    %106 = vector.extract_strided_slice %96 {offsets = [0, 128], sizes = [8, 64], strides = [1, 1]} : vector<8x384xf32> to vector<8x64xf32>
    %107 = arith.addf %105, %106 : vector<8x64xf32>
    %108 = arith.negf %107 : vector<8x64xf32>
    %109 = math.exp %108 : vector<8x64xf32>
    %cst_36 = arith.constant 1.000000e+00 : f32
    %110 = vector.broadcast %cst_36 : f32 to vector<8x64xf32>
    %111 = arith.addf %110, %109 : vector<8x64xf32>
    %112 = arith.divf %110, %111 : vector<8x64xf32>
    %113 = vector.extract_strided_slice %95 {offsets = [0, 256], sizes = [8, 64], strides = [1, 1]} : vector<8x384xf32> to vector<8x64xf32>
    %114 = vector.extract_strided_slice %96 {offsets = [0, 256], sizes = [8, 64], strides = [1, 1]} : vector<8x384xf32> to vector<8x64xf32>
    %115 = arith.addf %114, %60 : vector<8x64xf32>
    %116 = arith.mulf %104, %115 : vector<8x64xf32>
    %117 = arith.addf %113, %116 : vector<8x64xf32>
    %118 = math.tanh %117 : vector<8x64xf32>
    %cst_37 = arith.constant 1.000000e+00 : f32
    %119 = vector.broadcast %cst_37 : f32 to vector<8x64xf32>
    %120 = arith.subf %119, %112 : vector<8x64xf32>
    %121 = arith.mulf %120, %118 : vector<8x64xf32>
    %122 = arith.mulf %112, %90 : vector<8x64xf32>
    %123 = arith.addf %121, %122 : vector<8x64xf32>
    %124 = vector.extract_strided_slice %123 {offsets = [0, 0], sizes = [8, 32], strides = [1, 1]} : vector<8x64xf32> to vector<8x32xf32>
    %c8_38 = arith.constant 8 : index
    %c0_39 = arith.constant 0 : index
    %125 = vector.load %arg16[%c8_38, %c0_39] : memref<64x64xf32, #tpu.memory_space<vmem>>, vector<8x32xf32>
    tpu.vector_store %arg16[%c8_38, %c0_39], %124 {strides = array<i32>} : memref<64x64xf32, #tpu.memory_space<vmem>>, vector<8x32xf32>,
    %126 = vector.extract_strided_slice %123 {offsets = [0, 32], sizes = [8, 32], strides = [1, 1]} : vector<8x64xf32> to vector<8x32xf32>
    %c48_40 = arith.constant 48 : index
    %c32_41 = arith.constant 32 : index
    %127 = vector.load %arg16[%c48_40, %c32_41] : memref<64x64xf32, #tpu.memory_space<vmem>>, vector<8x32xf32>
    tpu.vector_store %arg16[%c48_40, %c32_41], %126 {strides = array<i32>} : memref<64x64xf32, #tpu.memory_space<vmem>>, vector<8x32xf32>,
    %c16_42 = arith.constant 16 : index
    %c0_43 = arith.constant 0 : index
    %128 = vector.load %arg15[%c16_42, %c0_43] : memref<64x384xf32, #tpu.memory_space<vmem>>, vector<8x384xf32>
    %cst_44 = arith.constant dense<0.000000e+00> : vector<8x384xf32>
    %129 = tpu.matmul %123, %57, %cst_44 {dimension_numbers = #tpu.dot_dimension_numbers<[1], [0], [0], [1], [0, 0, 1, 1], [], []>} : vector<8x64xf32>, vector<64x384xf32>, vector<8x384xf32> -> vector<8x384xf32>
    %130 = vector.extract_strided_slice %128 {offsets = [0, 0], sizes = [8, 64], strides = [1, 1]} : vector<8x384xf32> to vector<8x64xf32>
    %131 = vector.extract_strided_slice %129 {offsets = [0, 0], sizes = [8, 64], strides = [1, 1]} : vector<8x384xf32> to vector<8x64xf32>
    %132 = arith.addf %130, %131 : vector<8x64xf32>
    %133 = arith.negf %132 : vector<8x64xf32>
    %134 = math.exp %133 : vector<8x64xf32>
    %cst_45 = arith.constant 1.000000e+00 : f32
    %135 = vector.broadcast %cst_45 : f32 to vector<8x64xf32>
    %136 = arith.addf %135, %134 : vector<8x64xf32>
    %137 = arith.divf %135, %136 : vector<8x64xf32>
    %138 = vector.extract_strided_slice %128 {offsets = [0, 128], sizes = [8, 64], strides = [1, 1]} : vector<8x384xf32> to vector<8x64xf32>
    %139 = vector.extract_strided_slice %129 {offsets = [0, 128], sizes = [8, 64], strides = [1, 1]} : vector<8x384xf32> to vector<8x64xf32>
    %140 = arith.addf %138, %139 : vector<8x64xf32>
    %141 = arith.negf %140 : vector<8x64xf32>
    %142 = math.exp %141 : vector<8x64xf32>
    %cst_46 = arith.constant 1.000000e+00 : f32
    %143 = vector.broadcast %cst_46 : f32 to vector<8x64xf32>
    %144 = arith.addf %143, %142 : vector<8x64xf32>
    %145 = arith.divf %143, %144 : vector<8x64xf32>
    %146 = vector.extract_strided_slice %128 {offsets = [0, 256], sizes = [8, 64], strides = [1, 1]} : vector<8x384xf32> to vector<8x64xf32>
    %147 = vector.extract_strided_slice %129 {offsets = [0, 256], sizes = [8, 64], strides = [1, 1]} : vector<8x384xf32> to vector<8x64xf32>
    %148 = arith.addf %147, %60 : vector<8x64xf32>
    %149 = arith.mulf %137, %148 : vector<8x64xf32>
    %150 = arith.addf %146, %149 : vector<8x64xf32>
    %151 = math.tanh %150 : vector<8x64xf32>
    %cst_47 = arith.constant 1.000000e+00 : f32
    %152 = vector.broadcast %cst_47 : f32 to vector<8x64xf32>
    %153 = arith.subf %152, %145 : vector<8x64xf32>
    %154 = arith.mulf %153, %151 : vector<8x64xf32>
    %155 = arith.mulf %145, %123 : vector<8x64xf32>
    %156 = arith.addf %154, %155 : vector<8x64xf32>
    %157 = vector.extract_strided_slice %156 {offsets = [0, 0], sizes = [8, 32], strides = [1, 1]} : vector<8x64xf32> to vector<8x32xf32>
    %c16_48 = arith.constant 16 : index
    %c0_49 = arith.constant 0 : index
    %158 = vector.load %arg16[%c16_48, %c0_49] : memref<64x64xf32, #tpu.memory_space<vmem>>, vector<8x32xf32>
    tpu.vector_store %arg16[%c16_48, %c0_49], %157 {strides = array<i32>} : memref<64x64xf32, #tpu.memory_space<vmem>>, vector<8x32xf32>,
    %159 = vector.extract_strided_slice %156 {offsets = [0, 32], sizes = [8, 32], strides = [1, 1]} : vector<8x64xf32> to vector<8x32xf32>
    %c40_50 = arith.constant 40 : index
    %c32_51 = arith.constant 32 : index
    %160 = vector.load %arg16[%c40_50, %c32_51] : memref<64x64xf32, #tpu.memory_space<vmem>>, vector<8x32xf32>
    tpu.vector_store %arg16[%c40_50, %c32_51], %159 {strides = array<i32>} : memref<64x64xf32, #tpu.memory_space<vmem>>, vector<8x32xf32>,
    %c24_52 = arith.constant 24 : index
    %c0_53 = arith.constant 0 : index
    %161 = vector.load %arg15[%c24_52, %c0_53] : memref<64x384xf32, #tpu.memory_space<vmem>>, vector<8x384xf32>
    %cst_54 = arith.constant dense<0.000000e+00> : vector<8x384xf32>
    %162 = tpu.matmul %156, %57, %cst_54 {dimension_numbers = #tpu.dot_dimension_numbers<[1], [0], [0], [1], [0, 0, 1, 1], [], []>} : vector<8x64xf32>, vector<64x384xf32>, vector<8x384xf32> -> vector<8x384xf32>
    %163 = vector.extract_strided_slice %161 {offsets = [0, 0], sizes = [8, 64], strides = [1, 1]} : vector<8x384xf32> to vector<8x64xf32>
    %164 = vector.extract_strided_slice %162 {offsets = [0, 0], sizes = [8, 64], strides = [1, 1]} : vector<8x384xf32> to vector<8x64xf32>
    %165 = arith.addf %163, %164 : vector<8x64xf32>
    %166 = arith.negf %165 : vector<8x64xf32>
    %167 = math.exp %166 : vector<8x64xf32>
    %cst_55 = arith.constant 1.000000e+00 : f32
    %168 = vector.broadcast %cst_55 : f32 to vector<8x64xf32>
    %169 = arith.addf %168, %167 : vector<8x64xf32>
    %170 = arith.divf %168, %169 : vector<8x64xf32>
    %171 = vector.extract_strided_slice %161 {offsets = [0, 128], sizes = [8, 64], strides = [1, 1]} : vector<8x384xf32> to vector<8x64xf32>
    %172 = vector.extract_strided_slice %162 {offsets = [0, 128], sizes = [8, 64], strides = [1, 1]} : vector<8x384xf32> to vector<8x64xf32>
    %173 = arith.addf %171, %172 : vector<8x64xf32>
    %174 = arith.negf %173 : vector<8x64xf32>
    %175 = math.exp %174 : vector<8x64xf32>
    %cst_56 = arith.constant 1.000000e+00 : f32
    %176 = vector.broadcast %cst_56 : f32 to vector<8x64xf32>
    %177 = arith.addf %176, %175 : vector<8x64xf32>
    %178 = arith.divf %176, %177 : vector<8x64xf32>
    %179 = vector.extract_strided_slice %161 {offsets = [0, 256], sizes = [8, 64], strides = [1, 1]} : vector<8x384xf32> to vector<8x64xf32>
    %180 = vector.extract_strided_slice %162 {offsets = [0, 256], sizes = [8, 64], strides = [1, 1]} : vector<8x384xf32> to vector<8x64xf32>
    %181 = arith.addf %180, %60 : vector<8x64xf32>
    %182 = arith.mulf %170, %181 : vector<8x64xf32>
    %183 = arith.addf %179, %182 : vector<8x64xf32>
    %184 = math.tanh %183 : vector<8x64xf32>
    %cst_57 = arith.constant 1.000000e+00 : f32
    %185 = vector.broadcast %cst_57 : f32 to vector<8x64xf32>
    %186 = arith.subf %185, %178 : vector<8x64xf32>
    %187 = arith.mulf %186, %184 : vector<8x64xf32>
    %188 = arith.mulf %178, %156 : vector<8x64xf32>
    %189 = arith.addf %187, %188 : vector<8x64xf32>
    %190 = vector.extract_strided_slice %189 {offsets = [0, 0], sizes = [8, 32], strides = [1, 1]} : vector<8x64xf32> to vector<8x32xf32>
    %c24_58 = arith.constant 24 : index
    %c0_59 = arith.constant 0 : index
    %191 = vector.load %arg16[%c24_58, %c0_59] : memref<64x64xf32, #tpu.memory_space<vmem>>, vector<8x32xf32>
    tpu.vector_store %arg16[%c24_58, %c0_59], %190 {strides = array<i32>} : memref<64x64xf32, #tpu.memory_space<vmem>>, vector<8x32xf32>,
    %192 = vector.extract_strided_slice %189 {offsets = [0, 32], sizes = [8, 32], strides = [1, 1]} : vector<8x64xf32> to vector<8x32xf32>
    %c32_60 = arith.constant 32 : index
    %c32_61 = arith.constant 32 : index
    %193 = vector.load %arg16[%c32_60, %c32_61] : memref<64x64xf32, #tpu.memory_space<vmem>>, vector<8x32xf32>
    tpu.vector_store %arg16[%c32_60, %c32_61], %192 {strides = array<i32>} : memref<64x64xf32, #tpu.memory_space<vmem>>, vector<8x32xf32>,
    %c32_62 = arith.constant 32 : index
    %c0_63 = arith.constant 0 : index
    %194 = vector.load %arg15[%c32_62, %c0_63] : memref<64x384xf32, #tpu.memory_space<vmem>>, vector<8x384xf32>
    %cst_64 = arith.constant dense<0.000000e+00> : vector<8x384xf32>
    %195 = tpu.matmul %189, %57, %cst_64 {dimension_numbers = #tpu.dot_dimension_numbers<[1], [0], [0], [1], [0, 0, 1, 1], [], []>} : vector<8x64xf32>, vector<64x384xf32>, vector<8x384xf32> -> vector<8x384xf32>
    %196 = vector.extract_strided_slice %194 {offsets = [0, 0], sizes = [8, 64], strides = [1, 1]} : vector<8x384xf32> to vector<8x64xf32>
    %197 = vector.extract_strided_slice %195 {offsets = [0, 0], sizes = [8, 64], strides = [1, 1]} : vector<8x384xf32> to vector<8x64xf32>
    %198 = arith.addf %196, %197 : vector<8x64xf32>
    %199 = arith.negf %198 : vector<8x64xf32>
    %200 = math.exp %199 : vector<8x64xf32>
    %cst_65 = arith.constant 1.000000e+00 : f32
    %201 = vector.broadcast %cst_65 : f32 to vector<8x64xf32>
    %202 = arith.addf %201, %200 : vector<8x64xf32>
    %203 = arith.divf %201, %202 : vector<8x64xf32>
    %204 = vector.extract_strided_slice %194 {offsets = [0, 128], sizes = [8, 64], strides = [1, 1]} : vector<8x384xf32> to vector<8x64xf32>
    %205 = vector.extract_strided_slice %195 {offsets = [0, 128], sizes = [8, 64], strides = [1, 1]} : vector<8x384xf32> to vector<8x64xf32>
    %206 = arith.addf %204, %205 : vector<8x64xf32>
    %207 = arith.negf %206 : vector<8x64xf32>
    %208 = math.exp %207 : vector<8x64xf32>
    %cst_66 = arith.constant 1.000000e+00 : f32
    %209 = vector.broadcast %cst_66 : f32 to vector<8x64xf32>
    %210 = arith.addf %209, %208 : vector<8x64xf32>
    %211 = arith.divf %209, %210 : vector<8x64xf32>
    %212 = vector.extract_strided_slice %194 {offsets = [0, 256], sizes = [8, 64], strides = [1, 1]} : vector<8x384xf32> to vector<8x64xf32>
    %213 = vector.extract_strided_slice %195 {offsets = [0, 256], sizes = [8, 64], strides = [1, 1]} : vector<8x384xf32> to vector<8x64xf32>
    %214 = arith.addf %213, %60 : vector<8x64xf32>
    %215 = arith.mulf %203, %214 : vector<8x64xf32>
    %216 = arith.addf %212, %215 : vector<8x64xf32>
    %217 = math.tanh %216 : vector<8x64xf32>
    %cst_67 = arith.constant 1.000000e+00 : f32
    %218 = vector.broadcast %cst_67 : f32 to vector<8x64xf32>
    %219 = arith.subf %218, %211 : vector<8x64xf32>
    %220 = arith.mulf %219, %217 : vector<8x64xf32>
    %221 = arith.mulf %211, %189 : vector<8x64xf32>
    %222 = arith.addf %220, %221 : vector<8x64xf32>
    %223 = vector.extract_strided_slice %222 {offsets = [0, 0], sizes = [8, 32], strides = [1, 1]} : vector<8x64xf32> to vector<8x32xf32>
    %c32_68 = arith.constant 32 : index
    %c0_69 = arith.constant 0 : index
    %224 = vector.load %arg16[%c32_68, %c0_69] : memref<64x64xf32, #tpu.memory_space<vmem>>, vector<8x32xf32>
    tpu.vector_store %arg16[%c32_68, %c0_69], %223 {strides = array<i32>} : memref<64x64xf32, #tpu.memory_space<vmem>>, vector<8x32xf32>,
    %225 = vector.extract_strided_slice %222 {offsets = [0, 32], sizes = [8, 32], strides = [1, 1]} : vector<8x64xf32> to vector<8x32xf32>
    %c24_70 = arith.constant 24 : index
    %c32_71 = arith.constant 32 : index
    %226 = vector.load %arg16[%c24_70, %c32_71] : memref<64x64xf32, #tpu.memory_space<vmem>>, vector<8x32xf32>
    tpu.vector_store %arg16[%c24_70, %c32_71], %225 {strides = array<i32>} : memref<64x64xf32, #tpu.memory_space<vmem>>, vector<8x32xf32>,
    %c40_72 = arith.constant 40 : index
    %c0_73 = arith.constant 0 : index
    %227 = vector.load %arg15[%c40_72, %c0_73] : memref<64x384xf32, #tpu.memory_space<vmem>>, vector<8x384xf32>
    %cst_74 = arith.constant dense<0.000000e+00> : vector<8x384xf32>
    %228 = tpu.matmul %222, %57, %cst_74 {dimension_numbers = #tpu.dot_dimension_numbers<[1], [0], [0], [1], [0, 0, 1, 1], [], []>} : vector<8x64xf32>, vector<64x384xf32>, vector<8x384xf32> -> vector<8x384xf32>
    %229 = vector.extract_strided_slice %227 {offsets = [0, 0], sizes = [8, 64], strides = [1, 1]} : vector<8x384xf32> to vector<8x64xf32>
    %230 = vector.extract_strided_slice %228 {offsets = [0, 0], sizes = [8, 64], strides = [1, 1]} : vector<8x384xf32> to vector<8x64xf32>
    %231 = arith.addf %229, %230 : vector<8x64xf32>
    %232 = arith.negf %231 : vector<8x64xf32>
    %233 = math.exp %232 : vector<8x64xf32>
    %cst_75 = arith.constant 1.000000e+00 : f32
    %234 = vector.broadcast %cst_75 : f32 to vector<8x64xf32>
    %235 = arith.addf %234, %233 : vector<8x64xf32>
    %236 = arith.divf %234, %235 : vector<8x64xf32>
    %237 = vector.extract_strided_slice %227 {offsets = [0, 128], sizes = [8, 64], strides = [1, 1]} : vector<8x384xf32> to vector<8x64xf32>
    %238 = vector.extract_strided_slice %228 {offsets = [0, 128], sizes = [8, 64], strides = [1, 1]} : vector<8x384xf32> to vector<8x64xf32>
    %239 = arith.addf %237, %238 : vector<8x64xf32>
    %240 = arith.negf %239 : vector<8x64xf32>
    %241 = math.exp %240 : vector<8x64xf32>
    %cst_76 = arith.constant 1.000000e+00 : f32
    %242 = vector.broadcast %cst_76 : f32 to vector<8x64xf32>
    %243 = arith.addf %242, %241 : vector<8x64xf32>
    %244 = arith.divf %242, %243 : vector<8x64xf32>
    %245 = vector.extract_strided_slice %227 {offsets = [0, 256], sizes = [8, 64], strides = [1, 1]} : vector<8x384xf32> to vector<8x64xf32>
    %246 = vector.extract_strided_slice %228 {offsets = [0, 256], sizes = [8, 64], strides = [1, 1]} : vector<8x384xf32> to vector<8x64xf32>
    %247 = arith.addf %246, %60 : vector<8x64xf32>
    %248 = arith.mulf %236, %247 : vector<8x64xf32>
    %249 = arith.addf %245, %248 : vector<8x64xf32>
    %250 = math.tanh %249 : vector<8x64xf32>
    %cst_77 = arith.constant 1.000000e+00 : f32
    %251 = vector.broadcast %cst_77 : f32 to vector<8x64xf32>
    %252 = arith.subf %251, %244 : vector<8x64xf32>
    %253 = arith.mulf %252, %250 : vector<8x64xf32>
    %254 = arith.mulf %244, %222 : vector<8x64xf32>
    %255 = arith.addf %253, %254 : vector<8x64xf32>
    %256 = vector.extract_strided_slice %255 {offsets = [0, 0], sizes = [8, 32], strides = [1, 1]} : vector<8x64xf32> to vector<8x32xf32>
    %c40_78 = arith.constant 40 : index
    %c0_79 = arith.constant 0 : index
    %257 = vector.load %arg16[%c40_78, %c0_79] : memref<64x64xf32, #tpu.memory_space<vmem>>, vector<8x32xf32>
    tpu.vector_store %arg16[%c40_78, %c0_79], %256 {strides = array<i32>} : memref<64x64xf32, #tpu.memory_space<vmem>>, vector<8x32xf32>,
    %258 = vector.extract_strided_slice %255 {offsets = [0, 32], sizes = [8, 32], strides = [1, 1]} : vector<8x64xf32> to vector<8x32xf32>
    %c16_80 = arith.constant 16 : index
    %c32_81 = arith.constant 32 : index
    %259 = vector.load %arg16[%c16_80, %c32_81] : memref<64x64xf32, #tpu.memory_space<vmem>>, vector<8x32xf32>
    tpu.vector_store %arg16[%c16_80, %c32_81], %258 {strides = array<i32>} : memref<64x64xf32, #tpu.memory_space<vmem>>, vector<8x32xf32>,
    %c48_82 = arith.constant 48 : index
    %c0_83 = arith.constant 0 : index
    %260 = vector.load %arg15[%c48_82, %c0_83] : memref<64x384xf32, #tpu.memory_space<vmem>>, vector<8x384xf32>
    %cst_84 = arith.constant dense<0.000000e+00> : vector<8x384xf32>
    %261 = tpu.matmul %255, %57, %cst_84 {dimension_numbers = #tpu.dot_dimension_numbers<[1], [0], [0], [1], [0, 0, 1, 1], [], []>} : vector<8x64xf32>, vector<64x384xf32>, vector<8x384xf32> -> vector<8x384xf32>
    %262 = vector.extract_strided_slice %260 {offsets = [0, 0], sizes = [8, 64], strides = [1, 1]} : vector<8x384xf32> to vector<8x64xf32>
    %263 = vector.extract_strided_slice %261 {offsets = [0, 0], sizes = [8, 64], strides = [1, 1]} : vector<8x384xf32> to vector<8x64xf32>
    %264 = arith.addf %262, %263 : vector<8x64xf32>
    %265 = arith.negf %264 : vector<8x64xf32>
    %266 = math.exp %265 : vector<8x64xf32>
    %cst_85 = arith.constant 1.000000e+00 : f32
    %267 = vector.broadcast %cst_85 : f32 to vector<8x64xf32>
    %268 = arith.addf %267, %266 : vector<8x64xf32>
    %269 = arith.divf %267, %268 : vector<8x64xf32>
    %270 = vector.extract_strided_slice %260 {offsets = [0, 128], sizes = [8, 64], strides = [1, 1]} : vector<8x384xf32> to vector<8x64xf32>
    %271 = vector.extract_strided_slice %261 {offsets = [0, 128], sizes = [8, 64], strides = [1, 1]} : vector<8x384xf32> to vector<8x64xf32>
    %272 = arith.addf %270, %271 : vector<8x64xf32>
    %273 = arith.negf %272 : vector<8x64xf32>
    %274 = math.exp %273 : vector<8x64xf32>
    %cst_86 = arith.constant 1.000000e+00 : f32
    %275 = vector.broadcast %cst_86 : f32 to vector<8x64xf32>
    %276 = arith.addf %275, %274 : vector<8x64xf32>
    %277 = arith.divf %275, %276 : vector<8x64xf32>
    %278 = vector.extract_strided_slice %260 {offsets = [0, 256], sizes = [8, 64], strides = [1, 1]} : vector<8x384xf32> to vector<8x64xf32>
    %279 = vector.extract_strided_slice %261 {offsets = [0, 256], sizes = [8, 64], strides = [1, 1]} : vector<8x384xf32> to vector<8x64xf32>
    %280 = arith.addf %279, %60 : vector<8x64xf32>
    %281 = arith.mulf %269, %280 : vector<8x64xf32>
    %282 = arith.addf %278, %281 : vector<8x64xf32>
    %283 = math.tanh %282 : vector<8x64xf32>
    %cst_87 = arith.constant 1.000000e+00 : f32
    %284 = vector.broadcast %cst_87 : f32 to vector<8x64xf32>
    %285 = arith.subf %284, %277 : vector<8x64xf32>
    %286 = arith.mulf %285, %283 : vector<8x64xf32>
    %287 = arith.mulf %277, %255 : vector<8x64xf32>
    %288 = arith.addf %286, %287 : vector<8x64xf32>
    %289 = vector.extract_strided_slice %288 {offsets = [0, 0], sizes = [8, 32], strides = [1, 1]} : vector<8x64xf32> to vector<8x32xf32>
    %c48_88 = arith.constant 48 : index
    %c0_89 = arith.constant 0 : index
    %290 = vector.load %arg16[%c48_88, %c0_89] : memref<64x64xf32, #tpu.memory_space<vmem>>, vector<8x32xf32>
    tpu.vector_store %arg16[%c48_88, %c0_89], %289 {strides = array<i32>} : memref<64x64xf32, #tpu.memory_space<vmem>>, vector<8x32xf32>,
    %291 = vector.extract_strided_slice %288 {offsets = [0, 32], sizes = [8, 32], strides = [1, 1]} : vector<8x64xf32> to vector<8x32xf32>
    %c8_90 = arith.constant 8 : index
    %c32_91 = arith.constant 32 : index
    %292 = vector.load %arg16[%c8_90, %c32_91] : memref<64x64xf32, #tpu.memory_space<vmem>>, vector<8x32xf32>
    tpu.vector_store %arg16[%c8_90, %c32_91], %291 {strides = array<i32>} : memref<64x64xf32, #tpu.memory_space<vmem>>, vector<8x32xf32>,
    %c56_92 = arith.constant 56 : index
    %c0_93 = arith.constant 0 : index
    %293 = vector.load %arg15[%c56_92, %c0_93] : memref<64x384xf32, #tpu.memory_space<vmem>>, vector<8x384xf32>
    %cst_94 = arith.constant dense<0.000000e+00> : vector<8x384xf32>
    %294 = tpu.matmul %288, %57, %cst_94 {dimension_numbers = #tpu.dot_dimension_numbers<[1], [0], [0], [1], [0, 0, 1, 1], [], []>} : vector<8x64xf32>, vector<64x384xf32>, vector<8x384xf32> -> vector<8x384xf32>
    %295 = vector.extract_strided_slice %293 {offsets = [0, 0], sizes = [8, 64], strides = [1, 1]} : vector<8x384xf32> to vector<8x64xf32>
    %296 = vector.extract_strided_slice %294 {offsets = [0, 0], sizes = [8, 64], strides = [1, 1]} : vector<8x384xf32> to vector<8x64xf32>
    %297 = arith.addf %295, %296 : vector<8x64xf32>
    %298 = arith.negf %297 : vector<8x64xf32>
    %299 = math.exp %298 : vector<8x64xf32>
    %cst_95 = arith.constant 1.000000e+00 : f32
    %300 = vector.broadcast %cst_95 : f32 to vector<8x64xf32>
    %301 = arith.addf %300, %299 : vector<8x64xf32>
    %302 = arith.divf %300, %301 : vector<8x64xf32>
    %303 = vector.extract_strided_slice %293 {offsets = [0, 128], sizes = [8, 64], strides = [1, 1]} : vector<8x384xf32> to vector<8x64xf32>
    %304 = vector.extract_strided_slice %294 {offsets = [0, 128], sizes = [8, 64], strides = [1, 1]} : vector<8x384xf32> to vector<8x64xf32>
    %305 = arith.addf %303, %304 : vector<8x64xf32>
    %306 = arith.negf %305 : vector<8x64xf32>
    %307 = math.exp %306 : vector<8x64xf32>
    %cst_96 = arith.constant 1.000000e+00 : f32
    %308 = vector.broadcast %cst_96 : f32 to vector<8x64xf32>
    %309 = arith.addf %308, %307 : vector<8x64xf32>
    %310 = arith.divf %308, %309 : vector<8x64xf32>
    %311 = vector.extract_strided_slice %293 {offsets = [0, 256], sizes = [8, 64], strides = [1, 1]} : vector<8x384xf32> to vector<8x64xf32>
    %312 = vector.extract_strided_slice %294 {offsets = [0, 256], sizes = [8, 64], strides = [1, 1]} : vector<8x384xf32> to vector<8x64xf32>
    %313 = arith.addf %312, %60 : vector<8x64xf32>
    %314 = arith.mulf %302, %313 : vector<8x64xf32>
    %315 = arith.addf %311, %314 : vector<8x64xf32>
    %316 = math.tanh %315 : vector<8x64xf32>
    %cst_97 = arith.constant 1.000000e+00 : f32
    %317 = vector.broadcast %cst_97 : f32 to vector<8x64xf32>
    %318 = arith.subf %317, %310 : vector<8x64xf32>
    %319 = arith.mulf %318, %316 : vector<8x64xf32>
    %320 = arith.mulf %310, %288 : vector<8x64xf32>
    %321 = arith.addf %319, %320 : vector<8x64xf32>
    %322 = vector.extract_strided_slice %321 {offsets = [0, 0], sizes = [8, 32], strides = [1, 1]} : vector<8x64xf32> to vector<8x32xf32>
    %c56_98 = arith.constant 56 : index
    %c0_99 = arith.constant 0 : index
    %323 = vector.load %arg16[%c56_98, %c0_99] : memref<64x64xf32, #tpu.memory_space<vmem>>, vector<8x32xf32>
    tpu.vector_store %arg16[%c56_98, %c0_99], %322 {strides = array<i32>} : memref<64x64xf32, #tpu.memory_space<vmem>>, vector<8x32xf32>,
    %324 = vector.extract_strided_slice %321 {offsets = [0, 32], sizes = [8, 32], strides = [1, 1]} : vector<8x64xf32> to vector<8x32xf32>
    %c0_100 = arith.constant 0 : index
    %c32_101 = arith.constant 32 : index
    %325 = vector.load %arg16[%c0_100, %c32_101] : memref<64x64xf32, #tpu.memory_space<vmem>>, vector<8x32xf32>
    tpu.vector_store %arg16[%c0_100, %c32_101], %324 {strides = array<i32>} : memref<64x64xf32, #tpu.memory_space<vmem>>, vector<8x32xf32>,
    %c0_102 = arith.constant 0 : index
    %c0_103 = arith.constant 0 : index
    %326 = vector.load %arg16[%c0_102, %c0_103] : memref<64x64xf32, #tpu.memory_space<vmem>>, vector<64x64xf32>
    %c0_104 = arith.constant 0 : index
    %c0_105 = arith.constant 0 : index
    %327 = vector.load %arg5[%c0_104, %c0_105] : memref<64x384xf32, #tpu.memory_space<vmem>>, vector<64x384xf32>
    %cst_106 = arith.constant dense<0.000000e+00> : vector<64x384xf32>
    %328 = tpu.matmul %326, %327, %cst_106 {dimension_numbers = #tpu.dot_dimension_numbers<[1], [0], [0], [1], [0, 0, 1, 1], [], []>} : vector<64x64xf32>, vector<64x384xf32>, vector<64x384xf32> -> vector<64x384xf32>
    %c0_107 = arith.constant 0 : index
    %c0_108 = arith.constant 0 : index
    %329 = vector.load %arg6[%c0_107, %c0_108] : memref<1x384xf32, #tpu.memory_space<vmem>>, vector<1x384xf32>
    %330 = vector.broadcast %329 : vector<1x384xf32> to vector<64x384xf32>
    %331 = arith.addf %328, %330 : vector<64x384xf32>
    %c0_109 = arith.constant 0 : index
    %c0_110 = arith.constant 0 : index
    %332 = vector.load %arg15[%c0_109, %c0_110] : memref<64x384xf32, #tpu.memory_space<vmem>>, vector<64x384xf32>
    tpu.vector_store %arg15[%c0_109, %c0_110], %331 {strides = array<i32>} : memref<64x384xf32, #tpu.memory_space<vmem>>, vector<64x384xf32>,
    %333 = vector.extract_strided_slice %326 {offsets = [56, 0], sizes = [8, 64], strides = [1, 1]} : vector<64x64xf32> to vector<8x64xf32>
    %c0_111 = arith.constant 0 : index
    %c0_112 = arith.constant 0 : index
    %334 = vector.load %arg9[%c0_111, %c0_112] : memref<64x384xf32, #tpu.memory_space<vmem>>, vector<64x384xf32>
    %cst_113 = arith.constant dense<0.000000e+00> : vector<8x384xf32>
    %335 = tpu.matmul %333, %334, %cst_113 {dimension_numbers = #tpu.dot_dimension_numbers<[1], [0], [0], [1], [0, 0, 1, 1], [], []>} : vector<8x64xf32>, vector<64x384xf32>, vector<8x384xf32> -> vector<8x384xf32>
    %c0_114 = arith.constant 0 : index
    %c0_115 = arith.constant 0 : index
    %336 = vector.load %arg10[%c0_114, %c0_115] : memref<1x384xf32, #tpu.memory_space<vmem>>, vector<1x384xf32>
    %337 = vector.broadcast %336 : vector<1x384xf32> to vector<8x384xf32>
    %338 = arith.addf %335, %337 : vector<8x384xf32>
    %339 = vector.extract_strided_slice %338 {offsets = [0, 0], sizes = [8, 32], strides = [1, 1]} : vector<8x384xf32> to vector<8x32xf32>
    %340 = arith.negf %339 : vector<8x32xf32>
    %341 = math.exp %340 : vector<8x32xf32>
    %cst_116 = arith.constant 1.000000e+00 : f32
    %342 = vector.broadcast %cst_116 : f32 to vector<8x32xf32>
    %343 = arith.addf %342, %341 : vector<8x32xf32>
    %344 = arith.divf %342, %343 : vector<8x32xf32>
    %345 = vector.extract_strided_slice %338 {offsets = [0, 128], sizes = [8, 32], strides = [1, 1]} : vector<8x384xf32> to vector<8x32xf32>
    %346 = arith.negf %345 : vector<8x32xf32>
    %347 = math.exp %346 : vector<8x32xf32>
    %cst_117 = arith.constant 1.000000e+00 : f32
    %348 = vector.broadcast %cst_117 : f32 to vector<8x32xf32>
    %349 = arith.addf %348, %347 : vector<8x32xf32>
    %350 = arith.divf %348, %349 : vector<8x32xf32>
    %351 = vector.extract_strided_slice %338 {offsets = [0, 256], sizes = [8, 32], strides = [1, 1]} : vector<8x384xf32> to vector<8x32xf32>
    %c0_118 = arith.constant 0 : index
    %c0_119 = arith.constant 0 : index
    %352 = vector.load %arg11[%c0_118, %c0_119] : memref<1x32xf32, #tpu.memory_space<vmem>>, vector<1x32xf32>
    %353 = vector.shape_cast %352 : vector<1x32xf32> to vector<1x32xf32>
    %354 = vector.broadcast %353 : vector<1x32xf32> to vector<8x32xf32>
    %355 = arith.mulf %344, %354 : vector<8x32xf32>
    %356 = arith.addf %351, %355 : vector<8x32xf32>
    %357 = math.tanh %356 : vector<8x32xf32>
    %cst_120 = arith.constant 1.000000e+00 : f32
    %358 = vector.broadcast %cst_120 : f32 to vector<8x32xf32>
    %359 = arith.subf %358, %350 : vector<8x32xf32>
    %360 = arith.mulf %359, %357 : vector<8x32xf32>
    %c0_121 = arith.constant 0 : index
    %c0_122 = arith.constant 0 : index
    %361 = vector.load %arg7[%c0_121, %c0_122] : memref<32x384xf32, #tpu.memory_space<vmem>>, vector<32x384xf32>
    %c0_123 = arith.constant 0 : index
    %c0_124 = arith.constant 0 : index
    %362 = vector.load %arg8[%c0_123, %c0_124] : memref<1x32xf32, #tpu.memory_space<vmem>>, vector<1x32xf32>
    %363 = vector.shape_cast %362 : vector<1x32xf32> to vector<1x32xf32>
    %364 = vector.broadcast %363 : vector<1x32xf32> to vector<8x32xf32>
    %cst_125 = arith.constant 0.000000e+00 : f32
    %365 = vector.broadcast %cst_125 : f32 to vector<8x32xf32>
    %c0_126 = arith.constant 0 : index
    %c0_127 = arith.constant 0 : index
    %366 = vector.load %arg15[%c0_126, %c0_127] : memref<64x384xf32, #tpu.memory_space<vmem>>, vector<8x384xf32>
    %cst_128 = arith.constant dense<0.000000e+00> : vector<8x384xf32>
    %367 = tpu.matmul %365, %361, %cst_128 {dimension_numbers = #tpu.dot_dimension_numbers<[1], [0], [0], [1], [0, 0, 1, 1], [], []>} : vector<8x32xf32>, vector<32x384xf32>, vector<8x384xf32> -> vector<8x384xf32>
    %368 = vector.extract_strided_slice %366 {offsets = [0, 0], sizes = [8, 32], strides = [1, 1]} : vector<8x384xf32> to vector<8x32xf32>
    %369 = vector.extract_strided_slice %367 {offsets = [0, 0], sizes = [8, 32], strides = [1, 1]} : vector<8x384xf32> to vector<8x32xf32>
    %370 = arith.addf %368, %369 : vector<8x32xf32>
    %371 = arith.negf %370 : vector<8x32xf32>
    %372 = math.exp %371 : vector<8x32xf32>
    %cst_129 = arith.constant 1.000000e+00 : f32
    %373 = vector.broadcast %cst_129 : f32 to vector<8x32xf32>
    %374 = arith.addf %373, %372 : vector<8x32xf32>
    %375 = arith.divf %373, %374 : vector<8x32xf32>
    %376 = vector.extract_strided_slice %366 {offsets = [0, 128], sizes = [8, 32], strides = [1, 1]} : vector<8x384xf32> to vector<8x32xf32>
    %377 = vector.extract_strided_slice %367 {offsets = [0, 128], sizes = [8, 32], strides = [1, 1]} : vector<8x384xf32> to vector<8x32xf32>
    %378 = arith.addf %376, %377 : vector<8x32xf32>
    %379 = arith.negf %378 : vector<8x32xf32>
    %380 = math.exp %379 : vector<8x32xf32>
    %cst_130 = arith.constant 1.000000e+00 : f32
    %381 = vector.broadcast %cst_130 : f32 to vector<8x32xf32>
    %382 = arith.addf %381, %380 : vector<8x32xf32>
    %383 = arith.divf %381, %382 : vector<8x32xf32>
    %384 = vector.extract_strided_slice %366 {offsets = [0, 256], sizes = [8, 32], strides = [1, 1]} : vector<8x384xf32> to vector<8x32xf32>
    %385 = vector.extract_strided_slice %367 {offsets = [0, 256], sizes = [8, 32], strides = [1, 1]} : vector<8x384xf32> to vector<8x32xf32>
    %386 = arith.addf %385, %364 : vector<8x32xf32>
    %387 = arith.mulf %375, %386 : vector<8x32xf32>
    %388 = arith.addf %384, %387 : vector<8x32xf32>
    %389 = math.tanh %388 : vector<8x32xf32>
    %cst_131 = arith.constant 1.000000e+00 : f32
    %390 = vector.broadcast %cst_131 : f32 to vector<8x32xf32>
    %391 = arith.subf %390, %383 : vector<8x32xf32>
    %392 = arith.mulf %391, %389 : vector<8x32xf32>
    %393 = arith.mulf %383, %365 : vector<8x32xf32>
    %394 = arith.addf %392, %393 : vector<8x32xf32>
    %c8_132 = arith.constant 8 : index
    %c0_133 = arith.constant 0 : index
    %395 = vector.load %arg15[%c8_132, %c0_133] : memref<64x384xf32, #tpu.memory_space<vmem>>, vector<8x384xf32>
    %cst_134 = arith.constant dense<0.000000e+00> : vector<8x384xf32>
    %396 = tpu.matmul %394, %361, %cst_134 {dimension_numbers = #tpu.dot_dimension_numbers<[1], [0], [0], [1], [0, 0, 1, 1], [], []>} : vector<8x32xf32>, vector<32x384xf32>, vector<8x384xf32> -> vector<8x384xf32>
    %397 = vector.extract_strided_slice %395 {offsets = [0, 0], sizes = [8, 32], strides = [1, 1]} : vector<8x384xf32> to vector<8x32xf32>
    %398 = vector.extract_strided_slice %396 {offsets = [0, 0], sizes = [8, 32], strides = [1, 1]} : vector<8x384xf32> to vector<8x32xf32>
    %399 = arith.addf %397, %398 : vector<8x32xf32>
    %400 = arith.negf %399 : vector<8x32xf32>
    %401 = math.exp %400 : vector<8x32xf32>
    %cst_135 = arith.constant 1.000000e+00 : f32
    %402 = vector.broadcast %cst_135 : f32 to vector<8x32xf32>
    %403 = arith.addf %402, %401 : vector<8x32xf32>
    %404 = arith.divf %402, %403 : vector<8x32xf32>
    %405 = vector.extract_strided_slice %395 {offsets = [0, 128], sizes = [8, 32], strides = [1, 1]} : vector<8x384xf32> to vector<8x32xf32>
    %406 = vector.extract_strided_slice %396 {offsets = [0, 128], sizes = [8, 32], strides = [1, 1]} : vector<8x384xf32> to vector<8x32xf32>
    %407 = arith.addf %405, %406 : vector<8x32xf32>
    %408 = arith.negf %407 : vector<8x32xf32>
    %409 = math.exp %408 : vector<8x32xf32>
    %cst_136 = arith.constant 1.000000e+00 : f32
    %410 = vector.broadcast %cst_136 : f32 to vector<8x32xf32>
    %411 = arith.addf %410, %409 : vector<8x32xf32>
    %412 = arith.divf %410, %411 : vector<8x32xf32>
    %413 = vector.extract_strided_slice %395 {offsets = [0, 256], sizes = [8, 32], strides = [1, 1]} : vector<8x384xf32> to vector<8x32xf32>
    %414 = vector.extract_strided_slice %396 {offsets = [0, 256], sizes = [8, 32], strides = [1, 1]} : vector<8x384xf32> to vector<8x32xf32>
    %415 = arith.addf %414, %364 : vector<8x32xf32>
    %416 = arith.mulf %404, %415 : vector<8x32xf32>
    %417 = arith.addf %413, %416 : vector<8x32xf32>
    %418 = math.tanh %417 : vector<8x32xf32>
    %cst_137 = arith.constant 1.000000e+00 : f32
    %419 = vector.broadcast %cst_137 : f32 to vector<8x32xf32>
    %420 = arith.subf %419, %412 : vector<8x32xf32>
    %421 = arith.mulf %420, %418 : vector<8x32xf32>
    %422 = arith.mulf %412, %394 : vector<8x32xf32>
    %423 = arith.addf %421, %422 : vector<8x32xf32>
    %c16_138 = arith.constant 16 : index
    %c0_139 = arith.constant 0 : index
    %424 = vector.load %arg15[%c16_138, %c0_139] : memref<64x384xf32, #tpu.memory_space<vmem>>, vector<8x384xf32>
    %cst_140 = arith.constant dense<0.000000e+00> : vector<8x384xf32>
    %425 = tpu.matmul %423, %361, %cst_140 {dimension_numbers = #tpu.dot_dimension_numbers<[1], [0], [0], [1], [0, 0, 1, 1], [], []>} : vector<8x32xf32>, vector<32x384xf32>, vector<8x384xf32> -> vector<8x384xf32>
    %426 = vector.extract_strided_slice %424 {offsets = [0, 0], sizes = [8, 32], strides = [1, 1]} : vector<8x384xf32> to vector<8x32xf32>
    %427 = vector.extract_strided_slice %425 {offsets = [0, 0], sizes = [8, 32], strides = [1, 1]} : vector<8x384xf32> to vector<8x32xf32>
    %428 = arith.addf %426, %427 : vector<8x32xf32>
    %429 = arith.negf %428 : vector<8x32xf32>
    %430 = math.exp %429 : vector<8x32xf32>
    %cst_141 = arith.constant 1.000000e+00 : f32
    %431 = vector.broadcast %cst_141 : f32 to vector<8x32xf32>
    %432 = arith.addf %431, %430 : vector<8x32xf32>
    %433 = arith.divf %431, %432 : vector<8x32xf32>
    %434 = vector.extract_strided_slice %424 {offsets = [0, 128], sizes = [8, 32], strides = [1, 1]} : vector<8x384xf32> to vector<8x32xf32>
    %435 = vector.extract_strided_slice %425 {offsets = [0, 128], sizes = [8, 32], strides = [1, 1]} : vector<8x384xf32> to vector<8x32xf32>
    %436 = arith.addf %434, %435 : vector<8x32xf32>
    %437 = arith.negf %436 : vector<8x32xf32>
    %438 = math.exp %437 : vector<8x32xf32>
    %cst_142 = arith.constant 1.000000e+00 : f32
    %439 = vector.broadcast %cst_142 : f32 to vector<8x32xf32>
    %440 = arith.addf %439, %438 : vector<8x32xf32>
    %441 = arith.divf %439, %440 : vector<8x32xf32>
    %442 = vector.extract_strided_slice %424 {offsets = [0, 256], sizes = [8, 32], strides = [1, 1]} : vector<8x384xf32> to vector<8x32xf32>
    %443 = vector.extract_strided_slice %425 {offsets = [0, 256], sizes = [8, 32], strides = [1, 1]} : vector<8x384xf32> to vector<8x32xf32>
    %444 = arith.addf %443, %364 : vector<8x32xf32>
    %445 = arith.mulf %433, %444 : vector<8x32xf32>
    %446 = arith.addf %442, %445 : vector<8x32xf32>
    %447 = math.tanh %446 : vector<8x32xf32>
    %cst_143 = arith.constant 1.000000e+00 : f32
    %448 = vector.broadcast %cst_143 : f32 to vector<8x32xf32>
    %449 = arith.subf %448, %441 : vector<8x32xf32>
    %450 = arith.mulf %449, %447 : vector<8x32xf32>
    %451 = arith.mulf %441, %423 : vector<8x32xf32>
    %452 = arith.addf %450, %451 : vector<8x32xf32>
    %c24_144 = arith.constant 24 : index
    %c0_145 = arith.constant 0 : index
    %453 = vector.load %arg15[%c24_144, %c0_145] : memref<64x384xf32, #tpu.memory_space<vmem>>, vector<8x384xf32>
    %cst_146 = arith.constant dense<0.000000e+00> : vector<8x384xf32>
    %454 = tpu.matmul %452, %361, %cst_146 {dimension_numbers = #tpu.dot_dimension_numbers<[1], [0], [0], [1], [0, 0, 1, 1], [], []>} : vector<8x32xf32>, vector<32x384xf32>, vector<8x384xf32> -> vector<8x384xf32>
    %455 = vector.extract_strided_slice %453 {offsets = [0, 0], sizes = [8, 32], strides = [1, 1]} : vector<8x384xf32> to vector<8x32xf32>
    %456 = vector.extract_strided_slice %454 {offsets = [0, 0], sizes = [8, 32], strides = [1, 1]} : vector<8x384xf32> to vector<8x32xf32>
    %457 = arith.addf %455, %456 : vector<8x32xf32>
    %458 = arith.negf %457 : vector<8x32xf32>
    %459 = math.exp %458 : vector<8x32xf32>
    %cst_147 = arith.constant 1.000000e+00 : f32
    %460 = vector.broadcast %cst_147 : f32 to vector<8x32xf32>
    %461 = arith.addf %460, %459 : vector<8x32xf32>
    %462 = arith.divf %460, %461 : vector<8x32xf32>
    %463 = vector.extract_strided_slice %453 {offsets = [0, 128], sizes = [8, 32], strides = [1, 1]} : vector<8x384xf32> to vector<8x32xf32>
    %464 = vector.extract_strided_slice %454 {offsets = [0, 128], sizes = [8, 32], strides = [1, 1]} : vector<8x384xf32> to vector<8x32xf32>
    %465 = arith.addf %463, %464 : vector<8x32xf32>
    %466 = arith.negf %465 : vector<8x32xf32>
    %467 = math.exp %466 : vector<8x32xf32>
    %cst_148 = arith.constant 1.000000e+00 : f32
    %468 = vector.broadcast %cst_148 : f32 to vector<8x32xf32>
    %469 = arith.addf %468, %467 : vector<8x32xf32>
    %470 = arith.divf %468, %469 : vector<8x32xf32>
    %471 = vector.extract_strided_slice %453 {offsets = [0, 256], sizes = [8, 32], strides = [1, 1]} : vector<8x384xf32> to vector<8x32xf32>
    %472 = vector.extract_strided_slice %454 {offsets = [0, 256], sizes = [8, 32], strides = [1, 1]} : vector<8x384xf32> to vector<8x32xf32>
    %473 = arith.addf %472, %364 : vector<8x32xf32>
    %474 = arith.mulf %462, %473 : vector<8x32xf32>
    %475 = arith.addf %471, %474 : vector<8x32xf32>
    %476 = math.tanh %475 : vector<8x32xf32>
    %cst_149 = arith.constant 1.000000e+00 : f32
    %477 = vector.broadcast %cst_149 : f32 to vector<8x32xf32>
    %478 = arith.subf %477, %470 : vector<8x32xf32>
    %479 = arith.mulf %478, %476 : vector<8x32xf32>
    %480 = arith.mulf %470, %452 : vector<8x32xf32>
    %481 = arith.addf %479, %480 : vector<8x32xf32>
    %c32_150 = arith.constant 32 : index
    %c0_151 = arith.constant 0 : index
    %482 = vector.load %arg15[%c32_150, %c0_151] : memref<64x384xf32, #tpu.memory_space<vmem>>, vector<8x384xf32>
    %cst_152 = arith.constant dense<0.000000e+00> : vector<8x384xf32>
    %483 = tpu.matmul %481, %361, %cst_152 {dimension_numbers = #tpu.dot_dimension_numbers<[1], [0], [0], [1], [0, 0, 1, 1], [], []>} : vector<8x32xf32>, vector<32x384xf32>, vector<8x384xf32> -> vector<8x384xf32>
    %484 = vector.extract_strided_slice %482 {offsets = [0, 0], sizes = [8, 32], strides = [1, 1]} : vector<8x384xf32> to vector<8x32xf32>
    %485 = vector.extract_strided_slice %483 {offsets = [0, 0], sizes = [8, 32], strides = [1, 1]} : vector<8x384xf32> to vector<8x32xf32>
    %486 = arith.addf %484, %485 : vector<8x32xf32>
    %487 = arith.negf %486 : vector<8x32xf32>
    %488 = math.exp %487 : vector<8x32xf32>
    %cst_153 = arith.constant 1.000000e+00 : f32
    %489 = vector.broadcast %cst_153 : f32 to vector<8x32xf32>
    %490 = arith.addf %489, %488 : vector<8x32xf32>
    %491 = arith.divf %489, %490 : vector<8x32xf32>
    %492 = vector.extract_strided_slice %482 {offsets = [0, 128], sizes = [8, 32], strides = [1, 1]} : vector<8x384xf32> to vector<8x32xf32>
    %493 = vector.extract_strided_slice %483 {offsets = [0, 128], sizes = [8, 32], strides = [1, 1]} : vector<8x384xf32> to vector<8x32xf32>
    %494 = arith.addf %492, %493 : vector<8x32xf32>
    %495 = arith.negf %494 : vector<8x32xf32>
    %496 = math.exp %495 : vector<8x32xf32>
    %cst_154 = arith.constant 1.000000e+00 : f32
    %497 = vector.broadcast %cst_154 : f32 to vector<8x32xf32>
    %498 = arith.addf %497, %496 : vector<8x32xf32>
    %499 = arith.divf %497, %498 : vector<8x32xf32>
    %500 = vector.extract_strided_slice %482 {offsets = [0, 256], sizes = [8, 32], strides = [1, 1]} : vector<8x384xf32> to vector<8x32xf32>
    %501 = vector.extract_strided_slice %483 {offsets = [0, 256], sizes = [8, 32], strides = [1, 1]} : vector<8x384xf32> to vector<8x32xf32>
    %502 = arith.addf %501, %364 : vector<8x32xf32>
    %503 = arith.mulf %491, %502 : vector<8x32xf32>
    %504 = arith.addf %500, %503 : vector<8x32xf32>
    %505 = math.tanh %504 : vector<8x32xf32>
    %cst_155 = arith.constant 1.000000e+00 : f32
    %506 = vector.broadcast %cst_155 : f32 to vector<8x32xf32>
    %507 = arith.subf %506, %499 : vector<8x32xf32>
    %508 = arith.mulf %507, %505 : vector<8x32xf32>
    %509 = arith.mulf %499, %481 : vector<8x32xf32>
    %510 = arith.addf %508, %509 : vector<8x32xf32>
    %c40_156 = arith.constant 40 : index
    %c0_157 = arith.constant 0 : index
    %511 = vector.load %arg15[%c40_156, %c0_157] : memref<64x384xf32, #tpu.memory_space<vmem>>, vector<8x384xf32>
    %cst_158 = arith.constant dense<0.000000e+00> : vector<8x384xf32>
    %512 = tpu.matmul %510, %361, %cst_158 {dimension_numbers = #tpu.dot_dimension_numbers<[1], [0], [0], [1], [0, 0, 1, 1], [], []>} : vector<8x32xf32>, vector<32x384xf32>, vector<8x384xf32> -> vector<8x384xf32>
    %513 = vector.extract_strided_slice %511 {offsets = [0, 0], sizes = [8, 32], strides = [1, 1]} : vector<8x384xf32> to vector<8x32xf32>
    %514 = vector.extract_strided_slice %512 {offsets = [0, 0], sizes = [8, 32], strides = [1, 1]} : vector<8x384xf32> to vector<8x32xf32>
    %515 = arith.addf %513, %514 : vector<8x32xf32>
    %516 = arith.negf %515 : vector<8x32xf32>
    %517 = math.exp %516 : vector<8x32xf32>
    %cst_159 = arith.constant 1.000000e+00 : f32
    %518 = vector.broadcast %cst_159 : f32 to vector<8x32xf32>
    %519 = arith.addf %518, %517 : vector<8x32xf32>
    %520 = arith.divf %518, %519 : vector<8x32xf32>
    %521 = vector.extract_strided_slice %511 {offsets = [0, 128], sizes = [8, 32], strides = [1, 1]} : vector<8x384xf32> to vector<8x32xf32>
    %522 = vector.extract_strided_slice %512 {offsets = [0, 128], sizes = [8, 32], strides = [1, 1]} : vector<8x384xf32> to vector<8x32xf32>
    %523 = arith.addf %521, %522 : vector<8x32xf32>
    %524 = arith.negf %523 : vector<8x32xf32>
    %525 = math.exp %524 : vector<8x32xf32>
    %cst_160 = arith.constant 1.000000e+00 : f32
    %526 = vector.broadcast %cst_160 : f32 to vector<8x32xf32>
    %527 = arith.addf %526, %525 : vector<8x32xf32>
    %528 = arith.divf %526, %527 : vector<8x32xf32>
    %529 = vector.extract_strided_slice %511 {offsets = [0, 256], sizes = [8, 32], strides = [1, 1]} : vector<8x384xf32> to vector<8x32xf32>
    %530 = vector.extract_strided_slice %512 {offsets = [0, 256], sizes = [8, 32], strides = [1, 1]} : vector<8x384xf32> to vector<8x32xf32>
    %531 = arith.addf %530, %364 : vector<8x32xf32>
    %532 = arith.mulf %520, %531 : vector<8x32xf32>
    %533 = arith.addf %529, %532 : vector<8x32xf32>
    %534 = math.tanh %533 : vector<8x32xf32>
    %cst_161 = arith.constant 1.000000e+00 : f32
    %535 = vector.broadcast %cst_161 : f32 to vector<8x32xf32>
    %536 = arith.subf %535, %528 : vector<8x32xf32>
    %537 = arith.mulf %536, %534 : vector<8x32xf32>
    %538 = arith.mulf %528, %510 : vector<8x32xf32>
    %539 = arith.addf %537, %538 : vector<8x32xf32>
    %c48_162 = arith.constant 48 : index
    %c0_163 = arith.constant 0 : index
    %540 = vector.load %arg15[%c48_162, %c0_163] : memref<64x384xf32, #tpu.memory_space<vmem>>, vector<8x384xf32>
    %cst_164 = arith.constant dense<0.000000e+00> : vector<8x384xf32>
    %541 = tpu.matmul %539, %361, %cst_164 {dimension_numbers = #tpu.dot_dimension_numbers<[1], [0], [0], [1], [0, 0, 1, 1], [], []>} : vector<8x32xf32>, vector<32x384xf32>, vector<8x384xf32> -> vector<8x384xf32>
    %542 = vector.extract_strided_slice %540 {offsets = [0, 0], sizes = [8, 32], strides = [1, 1]} : vector<8x384xf32> to vector<8x32xf32>
    %543 = vector.extract_strided_slice %541 {offsets = [0, 0], sizes = [8, 32], strides = [1, 1]} : vector<8x384xf32> to vector<8x32xf32>
    %544 = arith.addf %542, %543 : vector<8x32xf32>
    %545 = arith.negf %544 : vector<8x32xf32>
    %546 = math.exp %545 : vector<8x32xf32>
    %cst_165 = arith.constant 1.000000e+00 : f32
    %547 = vector.broadcast %cst_165 : f32 to vector<8x32xf32>
    %548 = arith.addf %547, %546 : vector<8x32xf32>
    %549 = arith.divf %547, %548 : vector<8x32xf32>
    %550 = vector.extract_strided_slice %540 {offsets = [0, 128], sizes = [8, 32], strides = [1, 1]} : vector<8x384xf32> to vector<8x32xf32>
    %551 = vector.extract_strided_slice %541 {offsets = [0, 128], sizes = [8, 32], strides = [1, 1]} : vector<8x384xf32> to vector<8x32xf32>
    %552 = arith.addf %550, %551 : vector<8x32xf32>
    %553 = arith.negf %552 : vector<8x32xf32>
    %554 = math.exp %553 : vector<8x32xf32>
    %cst_166 = arith.constant 1.000000e+00 : f32
    %555 = vector.broadcast %cst_166 : f32 to vector<8x32xf32>
    %556 = arith.addf %555, %554 : vector<8x32xf32>
    %557 = arith.divf %555, %556 : vector<8x32xf32>
    %558 = vector.extract_strided_slice %540 {offsets = [0, 256], sizes = [8, 32], strides = [1, 1]} : vector<8x384xf32> to vector<8x32xf32>
    %559 = vector.extract_strided_slice %541 {offsets = [0, 256], sizes = [8, 32], strides = [1, 1]} : vector<8x384xf32> to vector<8x32xf32>
    %560 = arith.addf %559, %364 : vector<8x32xf32>
    %561 = arith.mulf %549, %560 : vector<8x32xf32>
    %562 = arith.addf %558, %561 : vector<8x32xf32>
    %563 = math.tanh %562 : vector<8x32xf32>
    %cst_167 = arith.constant 1.000000e+00 : f32
    %564 = vector.broadcast %cst_167 : f32 to vector<8x32xf32>
    %565 = arith.subf %564, %557 : vector<8x32xf32>
    %566 = arith.mulf %565, %563 : vector<8x32xf32>
    %567 = arith.mulf %557, %539 : vector<8x32xf32>
    %568 = arith.addf %566, %567 : vector<8x32xf32>
    %c56_168 = arith.constant 56 : index
    %c0_169 = arith.constant 0 : index
    %569 = vector.load %arg15[%c56_168, %c0_169] : memref<64x384xf32, #tpu.memory_space<vmem>>, vector<8x384xf32>
    %cst_170 = arith.constant dense<0.000000e+00> : vector<8x384xf32>
    %570 = tpu.matmul %568, %361, %cst_170 {dimension_numbers = #tpu.dot_dimension_numbers<[1], [0], [0], [1], [0, 0, 1, 1], [], []>} : vector<8x32xf32>, vector<32x384xf32>, vector<8x384xf32> -> vector<8x384xf32>
    %571 = vector.extract_strided_slice %569 {offsets = [0, 0], sizes = [8, 32], strides = [1, 1]} : vector<8x384xf32> to vector<8x32xf32>
    %572 = vector.extract_strided_slice %570 {offsets = [0, 0], sizes = [8, 32], strides = [1, 1]} : vector<8x384xf32> to vector<8x32xf32>
    %573 = arith.addf %571, %572 : vector<8x32xf32>
    %574 = arith.negf %573 : vector<8x32xf32>
    %575 = math.exp %574 : vector<8x32xf32>
    %cst_171 = arith.constant 1.000000e+00 : f32
    %576 = vector.broadcast %cst_171 : f32 to vector<8x32xf32>
    %577 = arith.addf %576, %575 : vector<8x32xf32>
    %578 = arith.divf %576, %577 : vector<8x32xf32>
    %579 = vector.extract_strided_slice %569 {offsets = [0, 128], sizes = [8, 32], strides = [1, 1]} : vector<8x384xf32> to vector<8x32xf32>
    %580 = vector.extract_strided_slice %570 {offsets = [0, 128], sizes = [8, 32], strides = [1, 1]} : vector<8x384xf32> to vector<8x32xf32>
    %581 = arith.addf %579, %580 : vector<8x32xf32>
    %582 = arith.negf %581 : vector<8x32xf32>
    %583 = math.exp %582 : vector<8x32xf32>
    %cst_172 = arith.constant 1.000000e+00 : f32
    %584 = vector.broadcast %cst_172 : f32 to vector<8x32xf32>
    %585 = arith.addf %584, %583 : vector<8x32xf32>
    %586 = arith.divf %584, %585 : vector<8x32xf32>
    %587 = vector.extract_strided_slice %569 {offsets = [0, 256], sizes = [8, 32], strides = [1, 1]} : vector<8x384xf32> to vector<8x32xf32>
    %588 = vector.extract_strided_slice %570 {offsets = [0, 256], sizes = [8, 32], strides = [1, 1]} : vector<8x384xf32> to vector<8x32xf32>
    %589 = arith.addf %588, %364 : vector<8x32xf32>
    %590 = arith.mulf %578, %589 : vector<8x32xf32>
    %591 = arith.addf %587, %590 : vector<8x32xf32>
    %592 = math.tanh %591 : vector<8x32xf32>
    %cst_173 = arith.constant 1.000000e+00 : f32
    %593 = vector.broadcast %cst_173 : f32 to vector<8x32xf32>
    %594 = arith.subf %593, %586 : vector<8x32xf32>
    %595 = arith.mulf %594, %592 : vector<8x32xf32>
    %596 = arith.mulf %586, %568 : vector<8x32xf32>
    %597 = arith.addf %595, %596 : vector<8x32xf32>
    %c0_174 = arith.constant 0 : index
    %c0_175 = arith.constant 0 : index
    %598 = vector.load %arg12[%c0_174, %c0_175] : memref<64x1xf32, #tpu.memory_space<vmem>>, vector<64x1xf32>
    %599 = vector.extract_strided_slice %598 {offsets = [0, 0], sizes = [32, 1], strides = [1, 1]} : vector<64x1xf32> to vector<32x1xf32>
    %cst_176 = arith.constant dense<0.000000e+00> : vector<8x1xf32>
    %600 = tpu.matmul %597, %599, %cst_176 {dimension_numbers = #tpu.dot_dimension_numbers<[1], [0], [0], [1], [0, 0, 1, 1], [], []>} : vector<8x32xf32>, vector<32x1xf32>, vector<8x1xf32> -> vector<8x1xf32>
    %601 = vector.extract_strided_slice %598 {offsets = [32, 0], sizes = [32, 1], strides = [1, 1]} : vector<64x1xf32> to vector<32x1xf32>
    %cst_177 = arith.constant dense<0.000000e+00> : vector<8x1xf32>
    %602 = tpu.matmul %360, %601, %cst_177 {dimension_numbers = #tpu.dot_dimension_numbers<[1], [0], [0], [1], [0, 0, 1, 1], [], []>} : vector<8x32xf32>, vector<32x1xf32>, vector<8x1xf32> -> vector<8x1xf32>
    %603 = arith.addf %600, %602 : vector<8x1xf32>
    %c0_178 = arith.constant 0 : index
    %c0_179 = arith.constant 0 : index
    %604 = vector.load %arg13[%c0_178, %c0_179] : memref<1x1xf32, #tpu.memory_space<vmem>>, vector<1x1xf32>
    %605 = vector.broadcast %604 : vector<1x1xf32> to vector<8x1xf32>
    %606 = arith.addf %603, %605 : vector<8x1xf32>
    %c0_180 = arith.constant 0 : index
    %c0_181 = arith.constant 0 : index
    %607 = vector.load %arg14[%c0_180, %c0_181] : memref<8x1xf32, #tpu.memory_space<vmem>>, vector<8x1xf32>
    tpu.vector_store %arg14[%c0_180, %c0_181], %606 {strides = array<i32>} : memref<8x1xf32, #tpu.memory_space<vmem>>, vector<8x1xf32>,
    return
  }
}

</mosaic_0001>

<bundles_post_ra>
// kernel: gru_model_forward.1
= control target key start
LH: loop header
LB: loop body
LE: loop exit
PB: predicated region body
PF: predicated region fallthrough
CT: control target
= control target key end

     0   :  { %s6422_s0 = inlined_call_operand.vmem [shape: f32[64,7], index: 0, kind: input, shape index: {}]   ;;  %s6423_s1 = inlined_call_operand.vmem [shape: f32[7,384], index: 1, kind: input, shape index: {}]   ;;  %s6424_s2 = inlined_call_operand.hbm [shape: f32[1,384], index: 2, kind: input, shape index: {}]   ;;  %s6425_s3 = inlined_call_operand.vmem [shape: f32[64,384], index: 3, kind: input, shape index: {}]   ;;  %s6426_s4 = inlined_call_operand.vmem [shape: f32[1,64], index: 4, kind: input, shape index: {}]   ;;  %s6427_s5 = inlined_call_operand.hbm [shape: f32[64,384], index: 5, kind: input, shape index: {}]   ;;  %s6428_s6 = inlined_call_operand.hbm [shape: f32[1,384], index: 6, kind: input, shape index: {}]   ;;  %s6429_s7 = inlined_call_operand.vmem [shape: f32[32,384], index: 7, kind: input, shape index: {}]   ;;  %s6430_s8 = inlined_call_operand.hbm [shape: f32[1,32], index: 8, kind: input, shape index: {}]   ;;  %s6431_s9 = inlined_call_operand.hbm [shape: f32[64,384], index: 9, kind: input, shape index: {}]   ;;  %s6432_s10 = inlined_call_operand.hbm [shape: f32[1,384], index: 10, kind: input, shape index: {}]   ;;  %s6433_s11 = inlined_call_operand.hbm [shape: f32[1,32], index: 11, kind: input, shape index: {}]   ;;  %s6434_s12 = inlined_call_operand.vmem [shape: f32[64,1], index: 12, kind: input, shape index: {}]   ;;  %s6435_s13 = inlined_call_operand.<no memory space> [shape: f32[1,1], index: 13, kind: input, shape index: {}]   ;;  %s6436_s14 = inlined_call_operand.vmem [shape: f32[8,1], index: 14, kind: output, shape index: {}]  }
   0x1   :  { %v19_v0 = vstv %s6435_s13 }
   0x2   :  { %20 = vst [vmem:[#allocation4] sm:$0x1] %v19_v0 }
   0x3   :  { %21 = vsyncpa [#allocation6], 0 }
   0x4   :  { %22 = vsyncpa [#allocation8], 0 }
   0x5   :  { %23 = vsyncpa [#allocation11], 0 }
   0x6   :  { %24 = vsyncpa [#allocation14], 0  ;;  %s5339_s15 = smov [#allocation7]   ;;  %s5177_s19 = scalar_lea.hbm %s6427_s5, 3072 }
   0x7   :  { %s48_s16 = sshll.u32 %s5339_s15, 4  ;;  %p5178_p0 = scmp.ne.s32.totalorder %s6427_s5, %s5177_s19  ;;  %s49_s16 = int_to_ptr.vmem [resolvable:$true] %s48_s16 }
   0x8   :  { %p5181_p1 = scmp.lt.u32.totalorder %s5177_s19, %s6427_s5 }
   0xa   :  { %p5183_p2 = pnand %p5181_p1, %p5178_p0 }
   0xc   :  { %5186 = shalt.err (!%p5183_p2)
}
   0xd   :  { %s5187_s13 = scalar_lea.vmem %s49_s16, 3072  ;;  %p5192_p4 = scmp.lt.s32.totalorder %s49_s16, %s49_s16 }
   0xe   :  { %p5188_p3 = scmp.ne.s32.totalorder %s49_s16, %s5187_s13  ;;  %p5193_p5 = scmp.lt.s32.totalorder %s5187_s13, %s5187_s13 }
  0x10   :  { %p5194_p6 = por %p5193_p5, %p5192_p4 }
  0x12   :  { %p5195_p7 = pnand %p5194_p6, %p5188_p3 }
  0x14   :  { %5198 = shalt.err (!%p5195_p7)
}
  0x15   :  { %s5340_s24 = smov 384   ;;  %s5341_s25 = smov 24  }
  0x16   :  { %54 = dma.hbm_to_vmem [thread:$0]  %s6427_s5, 3072, %s49_s16, [#allocation8], %s5340_s24, %s5340_s24, %s5341_s25  }
  0x17   :  { %s5342_s28 = smov [#allocation10]   ;;  %s5343_s30 = smov [#allocation13]  }
  0x18   :  { %s73_s29 = sshll.u32 %s5342_s28, 4  ;;  %s95_s15 = sshll.u32 %s5343_s30, 4  ;;  %s74_s29 = int_to_ptr.vmem [resolvable:$true] %s73_s29  ;;  %s96_s15 = int_to_ptr.vmem [resolvable:$true] %s95_s15 }
  0x19   :  { %s5199_s19 = scalar_lea.hbm %s6430_s8, 16 }
  0x1a   :  { %p5200_p8 = scmp.ne.s32.totalorder %s6430_s8, %s5199_s19  ;;  %p5203_p9 = scmp.lt.u32.totalorder %s5199_s19, %s6430_s8 }
  0x1c   :  { %p5205_p10 = pnand %p5203_p9, %p5200_p8 }
  0x1e   :  { %5208 = shalt.err (!%p5205_p10)
}
  0x1f   :  { %s5209_s5 = scalar_lea.vmem %s74_s29, 16  ;;  %s5213_s16 = scalar_lea.vmem %s74_s29, 32 }
  0x20   :  { %p5210_p11 = scmp.ne.s32.totalorder %s74_s29, %s5209_s5  ;;  %p5214_p12 = scmp.lt.s32.totalorder %s74_s29, %s74_s29 }
  0x21   :  { %p5215_p13 = scmp.lt.s32.totalorder %s5213_s16, %s5209_s5 }
  0x23   :  { %p5216_p0 = por %p5215_p13, %p5214_p12 }
  0x25   :  { %p5217_p1 = pnand %p5216_p0, %p5210_p11 }
  0x27   :  { %5220 = shalt.err (!%p5217_p1)
}
  0x28   :  { %76 = dma.hbm_to_vmem [thread:$0]  %s6430_s8, 16, %s74_s29, [#allocation11]  }
  0x29   :  { %s5221_s30 = scalar_lea.hbm %s6432_s10, 48 }
  0x2a   :  { %p5222_p2 = scmp.ne.s32.totalorder %s6432_s10, %s5221_s30  ;;  %p5225_p3 = scmp.lt.u32.totalorder %s5221_s30, %s6432_s10 }
  0x2c   :  { %p5227_p4 = pnand %p5225_p3, %p5222_p2 }
  0x2e   :  { %5230 = shalt.err (!%p5227_p4)
}
  0x2f   :  { %s5231_s21 = scalar_lea.vmem %s96_s15, 48  ;;  %s5235_s22 = scalar_lea.vmem %s96_s15, 64 }
  0x30   :  { %p5232_p5 = scmp.ne.s32.totalorder %s96_s15, %s5231_s21  ;;  %p5236_p6 = scmp.lt.s32.totalorder %s96_s15, %s96_s15 }
  0x31   :  { %p5237_p7 = scmp.lt.s32.totalorder %s5235_s22, %s5231_s21 }
  0x33   :  { %p5238_p8 = por %p5237_p7, %p5236_p6 }
  0x35   :  { %p5239_p9 = pnand %p5238_p8, %p5232_p5 }
  0x37   :  { %5242 = shalt.err (!%p5239_p9)
}
  0x38   :  { %98 = dma.hbm_to_vmem [thread:$0]  %s6432_s10, 48, %s96_s15, [#allocation14]  }
  0x39   :  { %s5344_s23 = smov [#allocation5]   ;;  %s5345_s16 = smov [#allocation9]  }
  0x3a   :  { %s35_s5 = sshll.u32 %s5344_s23, 4  ;;  %s61_s13 = sshll.u32 %s5345_s16, 4  ;;  %s36_s5 = int_to_ptr.vmem [resolvable:$true] %s35_s5  ;;  %s62_s13 = int_to_ptr.vmem [resolvable:$true] %s61_s13 }
  0x3b   :  { %s5243_s28 = scalar_lea.hbm %s6424_s2, 48 }
  0x3c   :  { %p5244_p10 = scmp.ne.s32.totalorder %s6424_s2, %s5243_s28  ;;  %p5247_p11 = scmp.lt.u32.totalorder %s5243_s28, %s6424_s2 }
  0x3e   :  { %p5249_p12 = pnand %p5247_p11, %p5244_p10 }
  0x40   :  { %5252 = shalt.err (!%p5249_p12)
}
  0x41   :  { %s5253_s10 = scalar_lea.vmem %s36_s5, 48  ;;  %s5257_s15 = scalar_lea.vmem %s36_s5, 64 }
  0x42   :  { %p5254_p13 = scmp.ne.s32.totalorder %s36_s5, %s5253_s10  ;;  %p5258_p0 = scmp.lt.s32.totalorder %s36_s5, %s36_s5 }
  0x43   :  { %p5259_p1 = scmp.lt.s32.totalorder %s5257_s15, %s5253_s10 }
  0x45   :  { %p5260_p2 = por %p5259_p1, %p5258_p0 }
  0x47   :  { %p5261_p3 = pnand %p5260_p2, %p5254_p13 }
  0x49   :  { %5264 = shalt.err (!%p5261_p3)
}
  0x4a   :  { %38 = dma.hbm_to_vmem [thread:$0]  %s6424_s2, 48, %s36_s5, [#allocation6]  }
  0x4b   :  { %s5265_s29 = scalar_lea.hbm %s6428_s6, 48 }
  0x4c   :  { %p5266_p4 = scmp.ne.s32.totalorder %s6428_s6, %s5265_s29  ;;  %p5269_p5 = scmp.lt.u32.totalorder %s5265_s29, %s6428_s6 }
  0x4e   :  { %p5271_p6 = pnand %p5269_p5, %p5266_p4 }
  0x50   :  { %5274 = shalt.err (!%p5271_p6)
}
  0x51   :  { %s5275_s28 = scalar_lea.vmem %s62_s13, 48  ;;  %s5279_s30 = scalar_lea.vmem %s62_s13, 64 }
  0x52   :  { %p5276_p7 = scmp.ne.s32.totalorder %s62_s13, %s5275_s28  ;;  %p5280_p8 = scmp.lt.s32.totalorder %s62_s13, %s62_s13 }
  0x53   :  { %p5281_p9 = scmp.lt.s32.totalorder %s5279_s30, %s5275_s28 }
  0x55   :  { %p5282_p10 = por %p5281_p9, %p5280_p8 }
  0x57   :  { %p5283_p11 = pnand %p5282_p10, %p5276_p7 }
  0x59   :  { %5286 = shalt.err (!%p5283_p11)
}
  0x5a   :  { %64 = dma.hbm_to_vmem [thread:$0]  %s6428_s6, 48, %s62_s13, [#allocation8]  }
  0x5b   :  { %s5346_s17 = smov [#allocation12]   ;;  %s5347_s19 = smov [#allocation15]  }
  0x5c   :  { %s82_s18 = sshll.u32 %s5346_s17, 4  ;;  %s105_s10 = sshll.u32 %s5347_s19, 4  ;;  %s83_s18 = int_to_ptr.vmem [resolvable:$true] %s82_s18  ;;  %s106_s10 = int_to_ptr.vmem [resolvable:$true] %s105_s10 }
  0x5d   :  { %s5287_s21 = scalar_lea.hbm %s6431_s9, 3072 }
  0x5e   :  { %p5288_p12 = scmp.ne.s32.totalorder %s6431_s9, %s5287_s21  ;;  %p5291_p13 = scmp.lt.u32.totalorder %s5287_s21, %s6431_s9 }
  0x60   :  { %p5293_p0 = pnand %p5291_p13, %p5288_p12 }
  0x62   :  { %5296 = shalt.err (!%p5293_p0)
}
  0x63   :  { %s5297_s6 = scalar_lea.vmem %s83_s18, 3072  ;;  %p5302_p2 = scmp.lt.s32.totalorder %s83_s18, %s83_s18 }
  0x64   :  { %p5298_p1 = scmp.ne.s32.totalorder %s83_s18, %s5297_s6  ;;  %p5303_p3 = scmp.lt.s32.totalorder %s5297_s6, %s5297_s6 }
  0x66   :  { %p5304_p4 = por %p5303_p3, %p5302_p2 }
  0x68   :  { %p5305_p5 = pnand %p5304_p4, %p5298_p1 }
  0x6a   :  { %5308 = shalt.err (!%p5305_p5)
}
  0x6b   :  { %88 = dma.hbm_to_vmem [thread:$0]  %s6431_s9, 3072, %s83_s18, [#allocation11], %s5340_s24, %s5340_s24, %s5341_s25  }
  0x6c   :  { %s5309_s28 = scalar_lea.hbm %s6433_s11, 16 }
  0x6d   :  { %p5310_p6 = scmp.ne.s32.totalorder %s6433_s11, %s5309_s28  ;;  %p5313_p7 = scmp.lt.u32.totalorder %s5309_s28, %s6433_s11 }
  0x6f   :  { %p5315_p8 = pnand %p5313_p7, %p5310_p6 }
  0x71   :  { %5318 = shalt.err (!%p5315_p8)
}
  0x72   :  { %s5319_s19 = scalar_lea.vmem %s106_s10, 16  ;;  %s5323_s15 = scalar_lea.vmem %s106_s10, 32 }
  0x73   :  { %p5320_p9 = scmp.ne.s32.totalorder %s106_s10, %s5319_s19  ;;  %p5324_p10 = scmp.lt.s32.totalorder %s106_s10, %s106_s10 }
  0x74   :  { %p5325_p11 = scmp.lt.s32.totalorder %s5323_s15, %s5319_s19 }
  0x76   :  { %p5326_p12 = por %p5325_p11, %p5324_p10 }
  0x78   :  { %p5327_p13 = pnand %p5326_p12, %p5320_p9 }
  0x7a   :  { %5330 = shalt.err (!%p5327_p13)
}
  0x7b   :  { %108 = dma.hbm_to_vmem [thread:$0]  %s6433_s11, 16, %s106_s10, [#allocation14]  }
  0x7c   :  { %5331 = dma.done.wait [#allocation6], 48  }
  0x7d   :  { %5332 = vsyncadd [#allocation6], 4294967248 }
  0x7e   :  { %5333 = dma.done.wait [#allocation8], 3120  }
  0x7f   :  { %5334 = vsyncadd [#allocation8], 4294964176 }
  0x80   :  { %5335 = dma.done.wait [#allocation11], 3088  }
  0x81   :  { %5336 = vsyncadd [#allocation11], 4294964208 }
  0x82   :  { %5337 = dma.done.wait [#allocation14], 64  }
  0x83   :  { %5338 = vsyncadd [#allocation14], 4294967232  ;;  %v5348_v1 = vmov 0.0   ;;  %vm187_vm0 = vcmask 1046528   ;;  %vm162_vm1 = vcmask 56320   ;;  %v134_v4 = vld [vmem:[%s6422_s0] sm:$0xff]  ;;  %v147_v50 = vlaneseq }
  0x84   :  { %261 = vmatprep.mubr.f32.mxu0 %v5348_v1  ;;  %v143_v2 = vld [vmem:[%s6423_s1 + $0x8] sm:$0x7f]  ;;  %v142_v3 = vld [vmem:[%s6423_s1] sm:$0x7f]  ;;  %v144_v5 = vld [vmem:[%s6423_s1 + $0x10] sm:$0x7f]  ;;  %4234 = vmatprep.mubr.msk.f32.mxu1 %vm162_vm1, %v134_v4 }
  0x85   :  { %3971 = vmatprep.subr.msk.mxu0 %vm187_vm0, %v143_v2  ;;  %v135_v6 = vld [vmem:[%s6422_s0 + $0x8] sm:$0xff]  ;;  %4232 = vmatprep.subr.msk.mxu1 %vm187_vm0, %v144_v5  ;;  %v136_v7 = vld [vmem:[%s6422_s0 + $0x10] sm:$0xff]  ;;  %v510_v9 = vld [vmem:[%s6425_s3 + $0x20] sm:$0xff]  ;;  %v5349_v17 = vmov 0.0|0.0   ;;  %vm5350_vm2 = vmmov 0   ;;  %v148_v51 = vshrl.u32 %v147_v50, 7 }
  0x86   :  { %3972 = vmatpush1.msk.msra.mxu0 %vm187_vm0, %v142_v3  ;;  %4233 = vmatpush3.msk.msra.mxu1 %vm187_vm0, %v144_v5  ;;  %v507_v8 = vld [vmem:[%s6425_s3 + $0x8] sm:$0xff]  ;;  %v506_v10 = vld [vmem:[%s6425_s3] sm:$0xff]  ;;  %v509_v11 = vld [vmem:[%s6425_s3 + $0x18] sm:$0xff]  ;;  %v5719_v56 = vand.u32 127, %v147_v50  ;;  %vm540_vm6 = vcmask 523264   ;;  %vm707_vm7 = vcmask 261120  }
  0x87   :  { %3973 = vmatmul.mubr.msk.f32.vlgmr.msra.gmra.mrb[0].mxu0 %vm162_vm1, %v134_v4  ;;  %4235 = vmatmul.mubr.msk.f32.vlgmr.msra.gmra.mrb[0].mxu1 %vm162_vm1, %v135_v6  ;;  %v137_v12 = vld [vmem:[%s6422_s0 + $0x18] sm:$0xff]  ;;  %v5558_v13 = vpack.c.bf16 %v510_v9, %v507_v8  ;;  %v5560_v14 = vpack.c.bf16 %v509_v11, %v506_v10  ;;  %v516_v16 = vld [vmem:[%s6425_s3 + $0x50] sm:$0xff]  ;;  %v138_v18 = vld [vmem:[%s6422_s0 + $0x20] sm:$0xff]  ;;  %v5714_v52 = vsub.s32 2, %v148_v51  ;;  %v5717_v55 = vsub.s32 0, %v148_v51 }
  0x88   :  { %267 = vmatprep.mubr.f32.mxu0 %v5348_v1  ;;  %4237 = vmatprep.mubr.msk.f32.mxu1 %vm162_vm1, %v136_v7  ;;  %v513_v15 = vld [vmem:[%s6425_s3 + $0x38] sm:$0xff]  ;;  %v512_v20 = vld [vmem:[%s6425_s3 + $0x30] sm:$0xff]  ;;  %v515_v21 = vld [vmem:[%s6425_s3 + $0x48] sm:$0xff]  ;;  %v5723_v58 = vsub.s32 1, %v148_v51  ;;  %v418_v0 = vadd.s32 256, %v5719_v56  ;;  %vm455_vm4 = vcmp.lt.s32.totalorder %v5719_v56, 32 }
  0x89   :  { %4571 = vmatprep.subr.bf16.mxu0 %v5349_v17  ;;  %v5572_v19 = vpack.c.bf16 %v516_v16, %v513_v15  ;;  %4556 = vmatprep.subr.bf16.mxu1 %v5558_v13  ;;  %v519_v22 = vld [vmem:[%s6425_s3 + $0x68] sm:$0xff]  ;;  %v522_v23 = vld [vmem:[%s6425_s3 + $0x80] sm:$0xff]  ;;  %v508_v24 = vld [vmem:[%s6425_s3 + $0x10] sm:$0xff]  ;;  %v5604_v28 = vpack.c.bf16 %v515_v21, %v512_v20  ;;  %v417_v20 = vadd.s32 128, %v5719_v56  ;;  %vm709_vm8 = vcmask 523520  }
  0x8a   :  { %v511_v25 = vld [vmem:[%s6425_s3 + $0x28] sm:$0xff]  ;;  %v140_v27 = vld [vmem:[%s6422_s0 + $0x30] sm:$0xff]  ;;  %4558 = vmatpush1.bf16.msra.mxu1 %v5560_v14  ;;  %v5607_v29 = vpack.c.bf16 %v522_v23, %v519_v22  ;;  %v518_v30 = vld [vmem:[%s6425_s3 + $0x60] sm:$0xff]  ;;  %v437_v11 = vand.u32 127, %v418_v0  ;;  %vm3961_vm9 = vcmask 7168  }
  0x8b   :  { %3974 = vmatmul.mubr.msk.f32.gmra.mrb[2].mxu0 %vm162_vm1, %v135_v6  ;;  %4238 = vmatmul.mubr.msk.f32.gmra.mrb[2].mxu1 %vm162_vm1, %v137_v12  ;;  %v139_v26 = vld [vmem:[%s6422_s0 + $0x28] sm:$0xff]  ;;  %v521_v31 = vld [vmem:[%s6425_s3 + $0x78] sm:$0xff]  ;;  %v5615_v32 = vpack.c.bf16 %v511_v25, %v508_v24  ;;  %v528_v34 = vld [vmem:[%s6425_s3 + $0xb0] sm:$0xff] }
  0x8c   :  { %273 = vmatprep.mubr.f32.mxu0 %v5348_v1  ;;  %4240 = vmatprep.mubr.msk.f32.mxu1 %vm162_vm1, %v138_v18  ;;  %v525_v33 = vld [vmem:[%s6425_s3 + $0x98] sm:$0xff]  ;;  %v514_v35 = vld [vmem:[%s6425_s3 + $0x40] sm:$0xff]  ;;  %v5637_v38 = vpack.c.bf16 %v521_v31, %v518_v30  ;;  %v524_v40 = vld [vmem:[%s6425_s3 + $0x90] sm:$0xff]  ;;  %vm5751_vm3 = vcmp.lt.s32.totalorder %v437_v11, 32 }
  0x8d   :  { %4560 = vmatprep.subr.bf16.mxu1 %v5572_v19  ;;  %v517_v36 = vld [vmem:[%s6425_s3 + $0x58] sm:$0xff]  ;;  %4573 = vmatpush3.bf16.msra.mxu0 %v5615_v32  ;;  %v5641_v39 = vpack.c.bf16 %v528_v34, %v525_v33  ;;  %v527_v41 = vld [vmem:[%s6425_s3 + $0xa8] sm:$0xff]  ;;  %v520_v43 = vld [vmem:[%s6425_s3 + $0x70] sm:$0xff] }
  0x8e   :  { %v141_v37 = vld [vmem:[%s6422_s0 + $0x38] sm:$0xff]  ;;  %4562 = vmatpush1.bf16.msra.mxu1 %v5604_v28  ;;  %v5649_v42 = vpack.c.bf16 %v517_v36, %v514_v35  ;;  %4574 = vmatprep.subr.bf16.mxu0 %v5349_v17  ;;  %v523_v44 = vld [vmem:[%s6425_s3 + $0x88] sm:$0xff]  ;;  %v5662_v45 = vpack.c.bf16 %v527_v41, %v524_v40  ;;  %v526_v47 = vld [vmem:[%s6425_s3 + $0xa0] sm:$0xff]  ;;  %v430_v40 = vand.u32 127, %v417_v20 }
  0x8f   :  { %3975 = vmatmul.mubr.msk.f32.gmra.mrb[4].mxu0 %vm162_vm1, %v136_v7  ;;  %4241 = vmatmul.mubr.msk.f32.gmra.mrb[4].mxu1 %vm162_vm1, %v139_v26  ;;  %v5667_v46 = vpack.c.bf16 %v523_v44, %v520_v43  ;;  %v529_v48 = vld [vmem:[%s6425_s3 + $0xb8] sm:$0xff]  ;;  %v145_v53 = vld [vmem:[#allocation5] sm:$0x7] }
  0x90   :  { %279 = vmatprep.mubr.f32.mxu0 %v5348_v1  ;;  %4243 = vmatprep.mubr.msk.f32.mxu1 %vm162_vm1, %v140_v27  ;;  %v5680_v49 = vpack.c.bf16 %v529_v48, %v526_v47  ;;  %v158_v54 = vrot.slane %v145_v53, %v5714_v52  ;;  %v5730_v63 = vrot.slane %v145_v53, %v5717_v55  ;;  %vm5801_vm5 = vcmp.lt.s32.totalorder %v430_v40, 32  ;;  %v2226_v24 = vld [vmem:[#allocation12 + $0x18] sm:$0xff] }
  0x91   :  { %4564 = vmatprep.subr.bf16.mxu1 %v5607_v29  ;;  %4576 = vmatpush3.bf16.msra.mxu0 %v5649_v42  ;;  %v5734_v2 = vrot.slane %v145_v53, %v5723_v58 }
  0x92   :  { %4566 = vmatpush1.bf16.msra.mxu1 %v5637_v38  ;;  %4577 = vmatprep.subr.bf16.mxu0 %v5349_v17 }
  0x93   :  { %3976 = vmatmul.mubr.msk.f32.gmra.mrb[6].mxu0 %vm162_vm1, %v137_v12  ;;  %4244 = vmatmul.mubr.msk.f32.gmra.mrb[6].mxu1 %vm162_vm1, %v141_v37 }
  0x94   :  { %285 = vmatprep.mubr.f32.mxu0 %v5348_v1  ;;  %608 = vmatprep.mubr.f32.mxu1 %v5348_v1 }
  0x95   :  { %4568 = vmatprep.subr.bf16.mxu1 %v5641_v39  ;;  %4579 = vmatpush3.bf16.msra.mxu0 %v5667_v46 }
  0x96   :  { %4570 = vmatpush1.bf16.msra.mxu1 %v5662_v45  ;;  %4580 = vmatprep.subr.bf16.mxu0 %v5349_v17 }
  0x97   :  { %3977 = vmatmul.mubr.msk.f32.gmra.mrb[8].mxu0 %vm162_vm1, %v138_v18  ;;  %4584 = vmatprep.subr.bf16.mxu1 %v5558_v13 }
  0x98   :  { %291 = vmatprep.mubr.f32.mxu0 %v5348_v1 }
  0x99   :  { %609 = vmatmul.mubr.f32.vlgmr.msra.gmra.mrb[8].mxu1 %v5348_v1  ;;  %4582 = vmatpush3.bf16.msra.mxu0 %v5680_v49 }
  0x9a   :  { %4586 = vmatpush1.bf16.msra.mxu1 %v5560_v14  ;;  %781 = vmatprep.mubr.f32.mxu1 %v5348_v1 }
  0x9b   :  { %3978 = vmatmul.mubr.msk.f32.gmra.mrb[10].mxu0 %vm162_vm1, %v139_v26  ;;  %4588 = vmatprep.subr.bf16.mxu1 %v5572_v19 }
  0x9c   :  { %297 = vmatprep.mubr.f32.mxu0 %v5348_v1  ;;  %4599 = vmatprep.subr.bf16.mxu0 %v5349_v17 }
  0x9e   :  { %4590 = vmatpush1.bf16.msra.mxu1 %v5604_v28 }
  0x9f   :  { %3979 = vmatmul.mubr.msk.f32.gmra.mrb[12].mxu0 %vm162_vm1, %v140_v27  ;;  %4592 = vmatprep.subr.bf16.mxu1 %v5607_v29 }
  0xa0   :  { %303 = vmatprep.mubr.f32.mxu0 %v5348_v1 }
  0xa2   :  { %4594 = vmatpush1.bf16.msra.mxu1 %v5637_v38 }
  0xa3   :  { %3980 = vmatmul.mubr.msk.f32.gmra.mrb[14].mxu0 %vm162_vm1, %v141_v37  ;;  %4596 = vmatprep.subr.bf16.mxu1 %v5641_v39 }
  0xa4   :  { %4262 = vmatprep.mubr.msk.f32.mxu0 %vm5350_vm2, %v5348_v1 }
  0xa6   :  { %4598 = vmatpush1.bf16.msra.mxu1 %v5662_v45 }
  0xa7   :  { %4263 = vmatmul.mubr.f32.vlgmr.msra.gmra.mrb[16].mxu0 %v5348_v1  ;;  %4612 = vmatprep.subr.bf16.mxu1 %v5558_v13 }
  0xa8   :  { %4601 = vmatpush3.bf16.msra.mxu0 %v5615_v32  ;;  %4281 = vmatprep.mubr.msk.f32.mxu0 %vm5350_vm2, %v5348_v1 }
  0xa9   :  { %4602 = vmatprep.subr.bf16.mxu0 %v5349_v17 }
  0xac   :  { %4604 = vmatpush3.bf16.msra.mxu0 %v5649_v42 }
  0xad   :  { %4605 = vmatprep.subr.bf16.mxu0 %v5349_v17 }
  0xb0   :  { %4607 = vmatpush3.bf16.msra.mxu0 %v5667_v46 }
  0xb1   :  { %4608 = vmatprep.subr.bf16.mxu0 %v5349_v17 }
  0xb4   :  { %4610 = vmatpush3.bf16.msra.mxu0 %v5680_v49 }
  0xb5   :  { %4627 = vmatprep.subr.bf16.mxu0 %v5349_v17 }
 0x15a   :  { %v5721_v57 = vpop.f32.mrb[0].mxu0  ;;  %v4236_v60 = vpop.f32.mrb[0].mxu1 }
 0x15b   :  { %v5725_v59 = vpop.f32.mrb[1].mxu0  ;;  %v5727_v61 = vadd.f32 %v4236_v60, %v158_v54  ;;  %v376_v62 = vpop.f32.mrb[1].mxu1 }
 0x15c   :  { %v5757_v26 = vadd.f32 %v376_v62, %v158_v54 }
 0x15e   :  { %v269_v3 = vpop.f32.mrb[2].mxu0  ;;  %v4239_v6 = vpop.f32.mrb[2].mxu1 }
 0x15f   :  { %v270_v4 = vadd.f32 %v269_v3, %v5730_v63  ;;  %v271_v5 = vpop.f32.mrb[3].mxu0  ;;  %v5740_v8 = vadd.f32 %v4239_v6, %v158_v54  ;;  %v386_v9 = vpop.f32.mrb[3].mxu1 }
 0x160   :  { %v5738_v7 = vadd.f32 %v271_v5, %v5734_v2  ;;  %v5742_v10 = vadd.f32 %v386_v9, %v158_v54 }
 0x162   :  { %v275_v12 = vpop.f32.mrb[4].mxu0  ;;  %v4242_v18 = vpop.f32.mrb[4].mxu1 }
 0x163   :  { %v276_v15 = vadd.f32 %v275_v12, %v5730_v63  ;;  %v277_v16 = vpop.f32.mrb[5].mxu0  ;;  %v5749_v22 = vadd.f32 %v4242_v18, %v158_v54  ;;  %v396_v23 = vpop.f32.mrb[5].mxu1 }
 0x164   :  { %v5747_v21 = vadd.f32 %v277_v16, %v5734_v2  ;;  %v5755_v25 = vadd.f32 %v396_v23, %v158_v54 }
 0x165   :  { %v472_v30 = vsel %vm5751_vm3, %v5742_v10, %v5749_v22 }
 0x166   :  { %v281_v27 = vpop.f32.mrb[6].mxu0  ;;  %v4245_v37 = vpop.f32.mrb[6].mxu1 }
 0x167   :  { %v282_v33 = vadd.f32 %v281_v27, %v5730_v63  ;;  %v283_v34 = vpop.f32.mrb[7].mxu0  ;;  %v5779_v43 = vadd.f32 %v4245_v37, %v158_v54  ;;  %v406_v44 = vpop.f32.mrb[7].mxu1 }
 0x168   :  { %v5777_v41 = vadd.f32 %v283_v34, %v5734_v2  ;;  %v5781_v47 = vadd.f32 %v406_v44, %v158_v54 }
 0x169   :  { %v460_v48 = vsel %vm5751_vm3, %v5757_v26, %v5779_v43  ;;  %v6448_v0 = vsel %vm5751_vm3, %v5779_v43, %v5757_v26 }
 0x16a   :  { %v287_v51 = vpop.f32.mrb[8].mxu0  ;;  %v466_v53 = vsel %vm5751_vm3, %v5727_v61, %v5781_v47 }
 0x16b   :  { %v288_v60 = vadd.f32 %v287_v51, %v5730_v63  ;;  %v289_v62 = vpop.f32.mrb[9].mxu0 }
 0x16c   :  { %v5806_v3 = vadd.f32 %v289_v62, %v5734_v2  ;;  %v610_v20 = vpop.f32.mrb[8].mxu1 }
 0x16d   :  { %v5810_v5 = vsel %vm455_vm4, %v282_v33, %v288_v60  ;;  %v5814_v6 = vsel %vm455_vm4, %v288_v60, %v282_v33  ;;  %v612_v27 = vpop.f32.mrb[9].mxu1 }
 0x16e   :  { %v293_v9 = vpop.f32.mrb[10].mxu0  ;;  %v477_v11 = vsel %vm5801_vm5, %v5777_v41, %v5806_v3 }
 0x16f   :  { %v294_v16 = vadd.f32 %v293_v9, %v5730_v63  ;;  %v295_v18 = vpop.f32.mrb[11].mxu0 }
 0x170   :  { %v5826_v23 = vadd.f32 %v295_v18, %v5734_v2 }
 0x171   :  { %v5830_v33 = vsel %vm455_vm4, %v276_v15, %v294_v16  ;;  %v5834_v34 = vsel %vm455_vm4, %v294_v16, %v276_v15 }
 0x172   :  { %v299_v37 = vpop.f32.mrb[12].mxu0  ;;  %v471_v40 = vsel %vm5801_vm5, %v5747_v21, %v5826_v23 }
 0x173   :  { %v300_v51 = vadd.f32 %v299_v37, %v5730_v63  ;;  %v301_v60 = vpop.f32.mrb[13].mxu0 }
 0x174   :  { %v5846_v62 = vadd.f32 %v301_v60, %v5734_v2  ;;  %v264_v60 = vadd.f32 %v5721_v57, %v5730_v63 }
 0x175   :  { %v5850_v15 = vsel %vm455_vm4, %v270_v4, %v300_v51  ;;  %v5854_v9 = vsel %vm455_vm4, %v300_v51, %v270_v4  ;;  %v5869_v4 = vadd.f32 %v5725_v59, %v5734_v2 }
 0x176   :  { %v305_v16 = vpop.f32.mrb[14].mxu0  ;;  %v465_v18 = vsel %vm5801_vm5, %v5738_v7, %v5846_v62 }
 0x177   :  { %v306_v50 = vadd.f32 %v305_v16, %v5730_v63  ;;  %v307_v54 = vpop.f32.mrb[15].mxu0 }
 0x178   :  { %v5872_v51 = vadd.f32 %v307_v54, %v5734_v2 }
 0x179   :  { %v458_v31 = vsel %vm455_vm4, %v264_v60, %v306_v50  ;;  %v5878_v44 = vsel %vm455_vm4, %v306_v50, %v264_v60 }
 0x17a   :  { %v685_v37 = vadd.f32 %v610_v20, %v458_v31  ;;  %v459_v57 = vsel %vm5801_vm5, %v5869_v4, %v5872_v51  ;;  %v681_v63 = vpop.f32.mrb[16].mxu0  ;;  %v501_v59 = vsel %vm5801_vm5, %v5872_v51, %v5869_v4  ;;  %v5891_v20 = vld [vmem:[%s6426_s4] ss:$0 sm:$0xff] }
 0x17b   :  { %v692_v2 = vadd.f32 %v612_v27, %v459_v57  ;;  %v4264_v54 = vpop.f32.mrb[17].mxu0  ;;  %v699_v12 = vadd.f32 %v5891_v20, %v681_v63 }
 0x17c   :  { %v3991_v16 = vmul.f32 -1.442695, %v685_v37 }
 0x17d   :  { %v3992_v36 = vmul.f32 -1.442695, %v692_v2 }
 0x17e   :  { %5007 = vpow2.f32 %v3991_v16 }
 0x17f   :  { %5009 = vpow2.f32 %v3992_v36 }
 0x188   :  { %v5008_v56 = vpop.eup %5007 }
 0x189   :  { %v689_v50 = vadd.f32 1.0, %v5008_v56  ;;  %v5010_v31 = vpop.eup %5009 }
 0x18a   :  { %v696_v60 = vadd.f32 1.0, %v5010_v31 }
 0x18b   :  { %5011 = vrcp.f32 %v689_v50 }
 0x18c   :  { %5013 = vrcp.f32 %v696_v60 }
 0x195   :  { %v5012_v35 = vpop.eup %5011 }
 0x196   :  { %v700_v27 = vmul.f32 %v5012_v35, %v699_v12  ;;  %v5014_v37 = vpop.eup %5013 }
 0x197   :  { %v703_v2 = vsub.f32 1.0, %v5014_v37  ;;  %v705_v16 = vmul.f32 0.0, %v5014_v37 }
 0x198   :  { %v701_v57 = vadd.f32 %v700_v27, %v460_v48 }
 0x19a   :  { %5015 = vtanh.f32 %v701_v57 }
 0x1a4   :  { %v5016_v36 = vpop.eup %5015 }
 0x1a5   :  { %v704_v54 = vmul.f32 %v5016_v36, %v703_v2 }
 0x1a7   :  { %v706_v56 = vadd.f32 %v705_v16, %v704_v54 }
 0x1a9   :  { %708 = vst.msk [vmem:[#allocation3] sm:$0xff] %vm707_vm7, %v706_v56  ;;  %3993 = vmatmul.mubr.msk.f32.vlgmr.msra.gmra.mrb[10].mxu1 %vm540_vm6, %v706_v56  ;;  %4282 = vmatmul.mubr.msk.f32.vlgmr.msra.gmra.mrb[18].mxu0 %vm540_vm6, %v706_v56 }
 0x1aa   :  { %710 = vst.msk [vmem:[#allocation3 + $0x38] sm:$0xff] %vm709_vm8, %v706_v56  ;;  %4614 = vmatpush1.bf16.msra.mxu1 %v5560_v14  ;;  %4629 = vmatpush3.bf16.msra.mxu0 %v5615_v32 }
 0x1ab   :  { %4616 = vmatprep.subr.bf16.mxu1 %v5572_v19  ;;  %4630 = vmatprep.subr.bf16.mxu0 %v5349_v17 }
 0x1ac   :  { %952 = vmatprep.mubr.f32.mxu1 %v5348_v1  ;;  %4300 = vmatprep.mubr.msk.f32.mxu0 %vm5350_vm2, %v5348_v1 }
 0x1ae   :  { %4618 = vmatpush1.bf16.msra.mxu1 %v5604_v28  ;;  %4632 = vmatpush3.bf16.msra.mxu0 %v5649_v42 }
 0x1af   :  { %4620 = vmatprep.subr.bf16.mxu1 %v5607_v29  ;;  %4633 = vmatprep.subr.bf16.mxu0 %v5349_v17 }
 0x1b2   :  { %4622 = vmatpush1.bf16.msra.mxu1 %v5637_v38  ;;  %4635 = vmatpush3.bf16.msra.mxu0 %v5667_v46 }
 0x1b3   :  { %4624 = vmatprep.subr.bf16.mxu1 %v5641_v39  ;;  %4636 = vmatprep.subr.bf16.mxu0 %v5349_v17 }
 0x1b6   :  { %4626 = vmatpush1.bf16.msra.mxu1 %v5662_v45  ;;  %4638 = vmatpush3.bf16.msra.mxu0 %v5680_v49 }
 0x1b7   :  { %4640 = vmatprep.subr.bf16.mxu1 %v5558_v13  ;;  %4655 = vmatprep.subr.bf16.mxu0 %v5349_v17 }
 0x27c   :  { %v783_v35 = vpop.f32.mrb[10].mxu1  ;;  %v854_v48 = vpop.f32.mrb[18].mxu0 }
 0x27d   :  { %v858_v12 = vadd.f32 %v783_v35, %v5850_v15  ;;  %v785_v63 = vpop.f32.mrb[11].mxu1  ;;  %v4283_v50 = vpop.f32.mrb[19].mxu0  ;;  %v872_v54 = vadd.f32 %v5891_v20, %v854_v48 }
 0x27e   :  { %v865_v31 = vadd.f32 %v785_v63, %v465_v18 }
 0x27f   :  { %v3995_v60 = vmul.f32 -1.442695, %v858_v12 }
 0x280   :  { %v3996_v27 = vmul.f32 -1.442695, %v865_v31 }
 0x281   :  { %5017 = vpow2.f32 %v3995_v60 }
 0x282   :  { %5019 = vpow2.f32 %v3996_v27 }
 0x28b   :  { %v5018_v57 = vpop.eup %5017 }
 0x28c   :  { %v862_v37 = vadd.f32 1.0, %v5018_v57  ;;  %v5020_v2 = vpop.eup %5019 }
 0x28d   :  { %v869_v36 = vadd.f32 1.0, %v5020_v2 }
 0x28e   :  { %5021 = vrcp.f32 %v862_v37 }
 0x28f   :  { %5023 = vrcp.f32 %v869_v36 }
 0x298   :  { %v5022_v15 = vpop.eup %5021 }
 0x299   :  { %v873_v16 = vmul.f32 %v5022_v15, %v872_v54  ;;  %v5024_v35 = vpop.eup %5023 }
 0x29a   :  { %v876_v12 = vsub.f32 1.0, %v5024_v35  ;;  %v878_v31 = vmul.f32 %v5024_v35, %v706_v56 }
 0x29b   :  { %v874_v18 = vadd.f32 %v873_v16, %v466_v53 }
 0x29d   :  { %5025 = vtanh.f32 %v874_v18 }
 0x2a7   :  { %v5026_v63 = vpop.eup %5025 }
 0x2a8   :  { %v877_v50 = vmul.f32 %v5026_v63, %v876_v12 }
 0x2aa   :  { %v879_v60 = vadd.f32 %v878_v31, %v877_v50 }
 0x2ac   :  { %880 = vst.msk [vmem:[#allocation3 + $0x8] sm:$0xff] %vm707_vm7, %v879_v60  ;;  %3997 = vmatmul.mubr.msk.f32.vlgmr.msra.gmra.mrb[12].mxu1 %vm540_vm6, %v879_v60  ;;  %4301 = vmatmul.mubr.msk.f32.vlgmr.msra.gmra.mrb[20].mxu0 %vm540_vm6, %v879_v60 }
 0x2ad   :  { %881 = vst.msk [vmem:[#allocation3 + $0x30] sm:$0xff] %vm709_vm8, %v879_v60  ;;  %4642 = vmatpush1.bf16.msra.mxu1 %v5560_v14  ;;  %4657 = vmatpush3.bf16.msra.mxu0 %v5615_v32 }
 0x2ae   :  { %4644 = vmatprep.subr.bf16.mxu1 %v5572_v19  ;;  %4658 = vmatprep.subr.bf16.mxu0 %v5349_v17 }
 0x2af   :  { %1123 = vmatprep.mubr.f32.mxu1 %v5348_v1  ;;  %4319 = vmatprep.mubr.msk.f32.mxu0 %vm5350_vm2, %v5348_v1 }
 0x2b1   :  { %4646 = vmatpush1.bf16.msra.mxu1 %v5604_v28  ;;  %4660 = vmatpush3.bf16.msra.mxu0 %v5649_v42 }
 0x2b2   :  { %4648 = vmatprep.subr.bf16.mxu1 %v5607_v29  ;;  %4661 = vmatprep.subr.bf16.mxu0 %v5349_v17 }
 0x2b5   :  { %4650 = vmatpush1.bf16.msra.mxu1 %v5637_v38  ;;  %4663 = vmatpush3.bf16.msra.mxu0 %v5667_v46 }
 0x2b6   :  { %4652 = vmatprep.subr.bf16.mxu1 %v5641_v39  ;;  %4664 = vmatprep.subr.bf16.mxu0 %v5349_v17 }
 0x2b9   :  { %4654 = vmatpush1.bf16.msra.mxu1 %v5662_v45  ;;  %4666 = vmatpush3.bf16.msra.mxu0 %v5680_v49 }
 0x2ba   :  { %4668 = vmatprep.subr.bf16.mxu1 %v5558_v13  ;;  %4683 = vmatprep.subr.bf16.mxu0 %v5349_v17 }
 0x37f   :  { %v954_v53 = vpop.f32.mrb[12].mxu1  ;;  %v1025_v56 = vpop.f32.mrb[20].mxu0 }
 0x380   :  { %v1029_v48 = vadd.f32 %v954_v53, %v5830_v33  ;;  %v956_v27 = vpop.f32.mrb[13].mxu1  ;;  %v4302_v57 = vpop.f32.mrb[21].mxu0  ;;  %v1043_v35 = vadd.f32 %v5891_v20, %v1025_v56 }
 0x381   :  { %v1036_v37 = vadd.f32 %v956_v27, %v471_v40 }
 0x382   :  { %v3999_v2 = vmul.f32 -1.442695, %v1029_v48 }
 0x383   :  { %v4000_v36 = vmul.f32 -1.442695, %v1036_v37 }
 0x384   :  { %5027 = vpow2.f32 %v3999_v2 }
 0x385   :  { %5029 = vpow2.f32 %v4000_v36 }
 0x38e   :  { %v5028_v54 = vpop.eup %5027 }
 0x38f   :  { %v1033_v15 = vadd.f32 1.0, %v5028_v54  ;;  %v5030_v16 = vpop.eup %5029 }
 0x390   :  { %v1040_v18 = vadd.f32 1.0, %v5030_v16 }
 0x391   :  { %5031 = vrcp.f32 %v1033_v15 }
 0x392   :  { %5033 = vrcp.f32 %v1040_v18 }
 0x39b   :  { %v5032_v33 = vpop.eup %5031 }
 0x39c   :  { %v1044_v12 = vmul.f32 %v5032_v33, %v1043_v35  ;;  %v5034_v63 = vpop.eup %5033 }
 0x39d   :  { %v1047_v50 = vsub.f32 1.0, %v5034_v63  ;;  %v1049_v48 = vmul.f32 %v5034_v63, %v879_v60 }
 0x39e   :  { %v1045_v40 = vadd.f32 %v1044_v12, %v472_v30 }
 0x3a0   :  { %5035 = vtanh.f32 %v1045_v40  ;;  %v6441_v40 = vsel %vm5751_vm3, %v5740_v8, %v5755_v25 }
 0x3aa   :  { %v5036_v31 = vpop.eup %5035 }
 0x3ab   :  { %v1048_v53 = vmul.f32 %v5036_v31, %v1047_v50 }
 0x3ad   :  { %v1050_v27 = vadd.f32 %v1049_v48, %v1048_v53 }
 0x3af   :  { %1051 = vst.msk [vmem:[#allocation3 + $0x10] sm:$0xff] %vm707_vm7, %v1050_v27  ;;  %4001 = vmatmul.mubr.msk.f32.vlgmr.msra.gmra.mrb[14].mxu1 %vm540_vm6, %v1050_v27  ;;  %4320 = vmatmul.mubr.msk.f32.vlgmr.msra.gmra.mrb[22].mxu0 %vm540_vm6, %v1050_v27 }
 0x3b0   :  { %1052 = vst.msk [vmem:[#allocation3 + $0x28] sm:$0xff] %vm709_vm8, %v1050_v27  ;;  %4670 = vmatpush1.bf16.msra.mxu1 %v5560_v14  ;;  %4685 = vmatpush3.bf16.msra.mxu0 %v5615_v32 }
 0x3b1   :  { %4672 = vmatprep.subr.bf16.mxu1 %v5572_v19  ;;  %4686 = vmatprep.subr.bf16.mxu0 %v5349_v17 }
 0x3b2   :  { %1294 = vmatprep.mubr.f32.mxu1 %v5348_v1  ;;  %4338 = vmatprep.mubr.msk.f32.mxu0 %vm5350_vm2, %v5348_v1 }
 0x3b4   :  { %4674 = vmatpush1.bf16.msra.mxu1 %v5604_v28  ;;  %4688 = vmatpush3.bf16.msra.mxu0 %v5649_v42 }
 0x3b5   :  { %4676 = vmatprep.subr.bf16.mxu1 %v5607_v29  ;;  %4689 = vmatprep.subr.bf16.mxu0 %v5349_v17 }
 0x3b8   :  { %4678 = vmatpush1.bf16.msra.mxu1 %v5637_v38  ;;  %4691 = vmatpush3.bf16.msra.mxu0 %v5667_v46 }
 0x3b9   :  { %4680 = vmatprep.subr.bf16.mxu1 %v5641_v39  ;;  %4692 = vmatprep.subr.bf16.mxu0 %v5349_v17 }
 0x3bc   :  { %4682 = vmatpush1.bf16.msra.mxu1 %v5662_v45  ;;  %4694 = vmatpush3.bf16.msra.mxu0 %v5680_v49 }
 0x3bd   :  { %4696 = vmatprep.subr.bf16.mxu1 %v5558_v13  ;;  %4711 = vmatprep.subr.bf16.mxu0 %v5349_v17 }
 0x482   :  { %v1125_v30 = vpop.f32.mrb[14].mxu1  ;;  %v1196_v60 = vpop.f32.mrb[22].mxu0 }
 0x483   :  { %v1200_v56 = vadd.f32 %v1125_v30, %v5810_v5  ;;  %v1127_v57 = vpop.f32.mrb[15].mxu1  ;;  %v4321_v37 = vpop.f32.mrb[23].mxu0  ;;  %v1214_v33 = vadd.f32 %v5891_v20, %v1196_v60 }
 0x484   :  { %v1207_v2 = vadd.f32 %v1127_v57, %v477_v11 }
 0x485   :  { %v4003_v36 = vmul.f32 -1.442695, %v1200_v56 }
 0x486   :  { %v4004_v54 = vmul.f32 -1.442695, %v1207_v2  ;;  %v6442_v2 = vsel %vm5801_vm5, %v5806_v3, %v5777_v41  ;;  %v6443_v41 = vsel %vm5751_vm3, %v5755_v25, %v5740_v8 }
 0x487   :  { %5037 = vpow2.f32 %v4003_v36 }
 0x488   :  { %5039 = vpow2.f32 %v4004_v54 }
 0x491   :  { %v5038_v15 = vpop.eup %5037 }
 0x492   :  { %v1204_v16 = vadd.f32 1.0, %v5038_v15  ;;  %v5040_v18 = vpop.eup %5039 }
 0x493   :  { %v1211_v35 = vadd.f32 1.0, %v5040_v18 }
 0x494   :  { %5041 = vrcp.f32 %v1204_v16 }
 0x495   :  { %5043 = vrcp.f32 %v1211_v35 }
 0x49e   :  { %v5042_v5 = vpop.eup %5041 }
 0x49f   :  { %v1215_v12 = vmul.f32 %v5042_v5, %v1214_v33  ;;  %v5044_v63 = vpop.eup %5043 }
 0x4a0   :  { %v1218_v50 = vsub.f32 1.0, %v5044_v63  ;;  %v1220_v48 = vmul.f32 %v5044_v63, %v1050_v27 }
 0x4a1   :  { %v1216_v11 = vadd.f32 %v1215_v12, %v6441_v40 }
 0x4a3   :  { %5045 = vtanh.f32 %v1216_v11 }
 0x4ad   :  { %v5046_v31 = vpop.eup %5045 }
 0x4ae   :  { %v1219_v53 = vmul.f32 %v5046_v31, %v1218_v50 }
 0x4b0   :  { %v1221_v30 = vadd.f32 %v1220_v48, %v1219_v53 }
 0x4b2   :  { %1222 = vst.msk [vmem:[#allocation3 + $0x18] sm:$0xff] %vm707_vm7, %v1221_v30  ;;  %4005 = vmatmul.mubr.msk.f32.vlgmr.msra.gmra.mrb[16].mxu1 %vm540_vm6, %v1221_v30  ;;  %4339 = vmatmul.mubr.msk.f32.vlgmr.msra.gmra.mrb[24].mxu0 %vm540_vm6, %v1221_v30 }
 0x4b3   :  { %1223 = vst.msk [vmem:[#allocation3 + $0x20] sm:$0xff] %vm709_vm8, %v1221_v30  ;;  %4698 = vmatpush1.bf16.msra.mxu1 %v5560_v14  ;;  %4713 = vmatpush3.bf16.msra.mxu0 %v5615_v32 }
 0x4b4   :  { %4700 = vmatprep.subr.bf16.mxu1 %v5572_v19  ;;  %4714 = vmatprep.subr.bf16.mxu0 %v5349_v17 }
 0x4b5   :  { %1465 = vmatprep.mubr.f32.mxu1 %v5348_v1  ;;  %4357 = vmatprep.mubr.msk.f32.mxu0 %vm5350_vm2, %v5348_v1 }
 0x4b7   :  { %4702 = vmatpush1.bf16.msra.mxu1 %v5604_v28  ;;  %4716 = vmatpush3.bf16.msra.mxu0 %v5649_v42 }
 0x4b8   :  { %4704 = vmatprep.subr.bf16.mxu1 %v5607_v29  ;;  %4717 = vmatprep.subr.bf16.mxu0 %v5349_v17 }
 0x4bb   :  { %4706 = vmatpush1.bf16.msra.mxu1 %v5637_v38  ;;  %4719 = vmatpush3.bf16.msra.mxu0 %v5667_v46 }
 0x4bc   :  { %4708 = vmatprep.subr.bf16.mxu1 %v5641_v39  ;;  %4720 = vmatprep.subr.bf16.mxu0 %v5349_v17 }
 0x4bf   :  { %4710 = vmatpush1.bf16.msra.mxu1 %v5662_v45  ;;  %4722 = vmatpush3.bf16.msra.mxu0 %v5680_v49 }
 0x4c0   :  { %4724 = vmatprep.subr.bf16.mxu1 %v5558_v13  ;;  %4739 = vmatprep.subr.bf16.mxu0 %v5349_v17 }
 0x585   :  { %v1296_v27 = vpop.f32.mrb[16].mxu1  ;;  %v1367_v60 = vpop.f32.mrb[24].mxu0 }
 0x586   :  { %v1371_v56 = vadd.f32 %v1296_v27, %v5814_v6  ;;  %v1298_v57 = vpop.f32.mrb[17].mxu1  ;;  %v4340_v37 = vpop.f32.mrb[25].mxu0  ;;  %v1385_v5 = vadd.f32 %v5891_v20, %v1367_v60  ;;  %v6444_v60 = vsel %vm5801_vm5, %v5826_v23, %v5747_v21  ;;  %v6445_v21 = vsel %vm5751_vm3, %v5749_v22, %v5742_v10 }
 0x587   :  { %v1378_v36 = vadd.f32 %v1298_v57, %v6442_v2 }
 0x588   :  { %v4007_v54 = vmul.f32 -1.442695, %v1371_v56 }
 0x589   :  { %v4008_v15 = vmul.f32 -1.442695, %v1378_v36 }
 0x58a   :  { %5047 = vpow2.f32 %v4007_v54 }
 0x58b   :  { %5049 = vpow2.f32 %v4008_v15 }
 0x594   :  { %v5048_v16 = vpop.eup %5047 }
 0x595   :  { %v1375_v18 = vadd.f32 1.0, %v5048_v16  ;;  %v5050_v35 = vpop.eup %5049 }
 0x596   :  { %v1382_v33 = vadd.f32 1.0, %v5050_v35 }
 0x597   :  { %5051 = vrcp.f32 %v1375_v18 }
 0x598   :  { %5053 = vrcp.f32 %v1382_v33 }
 0x5a1   :  { %v5052_v6 = vpop.eup %5051 }
 0x5a2   :  { %v1386_v12 = vmul.f32 %v5052_v6, %v1385_v5  ;;  %v5054_v40 = vpop.eup %5053 }
 0x5a3   :  { %v1389_v11 = vsub.f32 1.0, %v5054_v40  ;;  %v1391_v31 = vmul.f32 %v5054_v40, %v1221_v30 }
 0x5a4   :  { %v1387_v3 = vadd.f32 %v1386_v12, %v6443_v41 }
 0x5a6   :  { %5055 = vtanh.f32 %v1387_v3 }
 0x5b0   :  { %v5056_v63 = vpop.eup %5055 }
 0x5b1   :  { %v1390_v50 = vmul.f32 %v5056_v63, %v1389_v11 }
 0x5b3   :  { %v1392_v53 = vadd.f32 %v1391_v31, %v1390_v50 }
 0x5b5   :  { %1393 = vst.msk [vmem:[#allocation3 + $0x20] sm:$0xff] %vm707_vm7, %v1392_v53  ;;  %4009 = vmatmul.mubr.msk.f32.vlgmr.msra.gmra.mrb[18].mxu1 %vm540_vm6, %v1392_v53  ;;  %4358 = vmatmul.mubr.msk.f32.vlgmr.msra.gmra.mrb[26].mxu0 %vm540_vm6, %v1392_v53 }
 0x5b6   :  { %1394 = vst.msk [vmem:[#allocation3 + $0x18] sm:$0xff] %vm709_vm8, %v1392_v53  ;;  %4726 = vmatpush1.bf16.msra.mxu1 %v5560_v14  ;;  %4741 = vmatpush3.bf16.msra.mxu0 %v5615_v32 }
 0x5b7   :  { %4728 = vmatprep.subr.bf16.mxu1 %v5572_v19  ;;  %4742 = vmatprep.subr.bf16.mxu0 %v5349_v17 }
 0x5b8   :  { %1636 = vmatprep.mubr.f32.mxu1 %v5348_v1  ;;  %4376 = vmatprep.mubr.msk.f32.mxu0 %vm5350_vm2, %v5348_v1 }
 0x5ba   :  { %4730 = vmatpush1.bf16.msra.mxu1 %v5604_v28  ;;  %4744 = vmatpush3.bf16.msra.mxu0 %v5649_v42 }
 0x5bb   :  { %4732 = vmatprep.subr.bf16.mxu1 %v5607_v29  ;;  %4745 = vmatprep.subr.bf16.mxu0 %v5349_v17 }
 0x5be   :  { %4734 = vmatpush1.bf16.msra.mxu1 %v5637_v38  ;;  %4747 = vmatpush3.bf16.msra.mxu0 %v5667_v46 }
 0x5bf   :  { %4736 = vmatprep.subr.bf16.mxu1 %v5641_v39  ;;  %4748 = vmatprep.subr.bf16.mxu0 %v5349_v17 }
 0x5c2   :  { %4738 = vmatpush1.bf16.msra.mxu1 %v5662_v45  ;;  %4750 = vmatpush3.bf16.msra.mxu0 %v5680_v49 }
 0x5c3   :  { %4752 = vmatprep.subr.bf16.mxu1 %v5558_v13  ;;  %4767 = vmatprep.subr.bf16.mxu0 %v5349_v17 }
 0x688   :  { %v1467_v8 = vpop.f32.mrb[18].mxu1  ;;  %v1538_v25 = vpop.f32.mrb[26].mxu0 }
 0x689   :  { %v1542_v48 = vadd.f32 %v1467_v8, %v5834_v34  ;;  %v1469_v30 = vpop.f32.mrb[19].mxu1  ;;  %v4359_v27 = vpop.f32.mrb[27].mxu0  ;;  %v1556_v15 = vadd.f32 %v5891_v20, %v1538_v25  ;;  %v1916_v25 = vld [vmem:[#allocation7] sm:$0xff] }
 0x68a   :  { %v1549_v56 = vadd.f32 %v1469_v30, %v6444_v60  ;;  %v1918_v30 = vld [vmem:[#allocation7 + $0x10] sm:$0xff]  ;;  %v1921_v60 = vld [vmem:[#allocation7 + $0x28] sm:$0xff] }
 0x68b   :  { %v4011_v57 = vmul.f32 -1.442695, %v1542_v48  ;;  %v1919_v48 = vld [vmem:[#allocation7 + $0x18] sm:$0xff] }
 0x68c   :  { %v4012_v37 = vmul.f32 -1.442695, %v1549_v56  ;;  %v4781_v27 = vpack.c.bf16 %v1919_v48, %v1916_v25  ;;  %v4795_v56 = vpack.c.bf16 %v1921_v60, %v1918_v30 }
 0x68d   :  { %5057 = vpow2.f32 %v4011_v57  ;;  %v1923_v57 = vld [vmem:[#allocation7 + $0x38] sm:$0xff] }
 0x68e   :  { %5059 = vpow2.f32 %v4012_v37  ;;  %v1926_v37 = vld [vmem:[#allocation7 + $0x50] sm:$0xff] }
 0x697   :  { %v5058_v2 = vpop.eup %5057 }
 0x698   :  { %v1546_v13 = vadd.f32 1.0, %v5058_v2  ;;  %v5060_v36 = vpop.eup %5059  ;;  %v4783_v2 = vpack.c.bf16 %v1926_v37, %v1923_v57  ;;  %v2223_v57 = vld [vmem:[#allocation12] sm:$0xff]  ;;  %v2230_v37 = vld [vmem:[#allocation12 + $0x38] sm:$0xff] }
 0x699   :  { %v1553_v54 = vadd.f32 1.0, %v5060_v36  ;;  %v1925_v36 = vld [vmem:[#allocation7 + $0x48] sm:$0xff] }
 0x69a   :  { %5061 = vrcp.f32 %v1546_v13  ;;  %v1922_v13 = vld [vmem:[#allocation7 + $0x30] sm:$0xff] }
 0x69b   :  { %5063 = vrcp.f32 %v1553_v54  ;;  %v1924_v54 = vld [vmem:[#allocation7 + $0x40] sm:$0xff] }
 0x6a4   :  { %v5062_v34 = vpop.eup %5061 }
 0x6a5   :  { %v1557_v16 = vmul.f32 %v5062_v34, %v1556_v15  ;;  %v5064_v18 = vpop.eup %5063  ;;  %v4785_v15 = vpack.c.bf16 %v1925_v36, %v1922_v13  ;;  %v1927_v34 = vld [vmem:[#allocation7 + $0x58] sm:$0xff]  ;;  %v4813_v13 = vpack.c.bf16 %v2226_v24, %v2223_v57 }
 0x6a6   :  { %v1560_v35 = vsub.f32 1.0, %v5064_v18  ;;  %v1562_v6 = vmul.f32 %v5064_v18, %v1392_v53  ;;  %v2229_v36 = vld [vmem:[#allocation12 + $0x30] sm:$0xff] }
 0x6a7   :  { %v1558_v23 = vadd.f32 %v1557_v16, %v6445_v21  ;;  %v4799_v16 = vpack.c.bf16 %v1927_v34, %v1924_v54  ;;  %v1929_v21 = vld [vmem:[#allocation7 + $0x68] sm:$0xff] }
 0x6a8   :  { %v2232_v34 = vld [vmem:[#allocation12 + $0x48] sm:$0xff] }
 0x6a9   :  { %5065 = vtanh.f32 %v1558_v23  ;;  %v1932_v23 = vld [vmem:[#allocation7 + $0x80] sm:$0xff] }
 0x6aa   :  { %v4787_v18 = vpack.c.bf16 %v1932_v23, %v1929_v21  ;;  %v2234_v21 = vld [vmem:[#allocation12 + $0x58] sm:$0xff]  ;;  %v2239_v23 = vld [vmem:[#allocation12 + $0x80] sm:$0xff] }
 0x6b3   :  { %v5066_v33 = vpop.eup %5065 }
 0x6b4   :  { %v1561_v5 = vmul.f32 %v5066_v33, %v1560_v35  ;;  %v1928_v35 = vld [vmem:[#allocation7 + $0x60] sm:$0xff]  ;;  %v1931_v33 = vld [vmem:[#allocation7 + $0x78] sm:$0xff] }
 0x6b6   :  { %v1563_v12 = vadd.f32 %v1562_v6, %v1561_v5  ;;  %v1930_v5 = vld [vmem:[#allocation7 + $0x70] sm:$0xff]  ;;  %v4789_v6 = vpack.c.bf16 %v1931_v33, %v1928_v35  ;;  %v4817_v33 = vpack.c.bf16 %v2232_v34, %v2229_v36 }
 0x6b7   :  { %v1911_v35 = vld [vmem:[#allocation3 + $0x18] sm:$0xff] }
 0x6b8   :  { %1564 = vst.msk [vmem:[#allocation3 + $0x28] sm:$0xff] %vm707_vm7, %v1563_v12  ;;  %4013 = vmatmul.mubr.msk.f32.vlgmr.msra.gmra.mrb[20].mxu1 %vm540_vm6, %v1563_v12  ;;  %4377 = vmatmul.mubr.msk.f32.vlgmr.msra.gmra.mrb[28].mxu0 %vm540_vm6, %v1563_v12 }
 0x6b9   :  { %1565 = vst.msk [vmem:[#allocation3 + $0x10] sm:$0xff] %vm709_vm8, %v1563_v12  ;;  %4754 = vmatpush1.bf16.msra.mxu1 %v5560_v14  ;;  %4769 = vmatpush3.bf16.msra.mxu0 %v5615_v32 }
 0x6ba   :  { %4756 = vmatprep.subr.bf16.mxu1 %v5572_v19  ;;  %4770 = vmatprep.subr.bf16.mxu0 %v5349_v17 }
 0x6bb   :  { %1807 = vmatprep.mubr.f32.mxu1 %v5348_v1  ;;  %4395 = vmatprep.mubr.msk.f32.mxu0 %vm5350_vm2, %v5348_v1 }
 0x6bd   :  { %4758 = vmatpush1.bf16.msra.mxu1 %v5604_v28  ;;  %4772 = vmatpush3.bf16.msra.mxu0 %v5649_v42 }
 0x6be   :  { %4760 = vmatprep.subr.bf16.mxu1 %v5607_v29  ;;  %4773 = vmatprep.subr.bf16.mxu0 %v5349_v17 }
 0x6c1   :  { %4762 = vmatpush1.bf16.msra.mxu1 %v5637_v38  ;;  %4775 = vmatpush3.bf16.msra.mxu0 %v5667_v46  ;;  %v6446_v38 = vsel %vm5801_vm5, %v5846_v62, %v5738_v7  ;;  %v6447_v7 = vsel %vm5751_vm3, %v5781_v47, %v5727_v61  ;;  %v1917_v61 = vld [vmem:[#allocation7 + $0x8] sm:$0xff]  ;;  %v1920_v47 = vld [vmem:[#allocation7 + $0x20] sm:$0xff] }
 0x6c2   :  { %4764 = vmatprep.subr.bf16.mxu1 %v5641_v39  ;;  %4776 = vmatprep.subr.bf16.mxu0 %v5349_v17  ;;  %v4779_v8 = vpack.c.bf16 %v1920_v47, %v1917_v61 }
 0x6c5   :  { %4766 = vmatpush1.bf16.msra.mxu1 %v5662_v45  ;;  %4778 = vmatpush3.bf16.msra.mxu0 %v5680_v49 }
 0x6c6   :  { %4780 = vmatprep.subr.bf16.mxu1 %v4779_v8  ;;  %4796 = vmatprep.subr.bf16.mxu0 %v4795_v56 }
 0x78b   :  { %v1638_v14 = vpop.f32.mrb[20].mxu1  ;;  %v1709_v19 = vpop.f32.mrb[28].mxu0 }
 0x78c   :  { %v1713_v28 = vadd.f32 %v1638_v14, %v5854_v9  ;;  %v1640_v32 = vpop.f32.mrb[21].mxu1  ;;  %v4378_v29 = vpop.f32.mrb[29].mxu0  ;;  %v1727_v41 = vadd.f32 %v5891_v20, %v1709_v19  ;;  %v1935_v19 = vld [vmem:[#allocation7 + $0x98] sm:$0xff] }
 0x78d   :  { %v1720_v42 = vadd.f32 %v1640_v32, %v6446_v38  ;;  %v1934_v32 = vld [vmem:[#allocation7 + $0x90] sm:$0xff]  ;;  %v1937_v38 = vld [vmem:[#allocation7 + $0xa8] sm:$0xff] }
 0x78e   :  { %v4015_v46 = vmul.f32 -1.442695, %v1713_v28  ;;  %v1938_v28 = vld [vmem:[#allocation7 + $0xb0] sm:$0xff] }
 0x78f   :  { %v4016_v39 = vmul.f32 -1.442695, %v1720_v42  ;;  %v4791_v29 = vpack.c.bf16 %v1938_v28, %v1935_v19  ;;  %v1936_v42 = vld [vmem:[#allocation7 + $0xa0] sm:$0xff]  ;;  %v2245_v28 = vld [vmem:[#allocation12 + $0xb0] sm:$0xff] }
 0x790   :  { %5067 = vpow2.f32 %v4015_v46  ;;  %v1939_v46 = vld [vmem:[#allocation7 + $0xb8] sm:$0xff] }
 0x791   :  { %5069 = vpow2.f32 %v4016_v39  ;;  %v4793_v39 = vpack.c.bf16 %v1937_v38, %v1934_v32  ;;  %v2242_v19 = vld [vmem:[#allocation12 + $0x98] sm:$0xff]  ;;  %v2237_v32 = vld [vmem:[#allocation12 + $0x70] sm:$0xff] }
 0x792   :  { %v1912_v38 = vld [vmem:[#allocation3 + $0x20] sm:$0xff] }
 0x79a   :  { %v5068_v10 = vpop.eup %5067 }
 0x79b   :  { %v1717_v45 = vadd.f32 1.0, %v5068_v10  ;;  %v5070_v49 = vpop.eup %5069  ;;  %v4807_v10 = vpack.c.bf16 %v1939_v46, %v1936_v42  ;;  %v4823_v46 = vpack.c.bf16 %v2245_v28, %v2242_v19 }
 0x79c   :  { %v1724_v22 = vadd.f32 1.0, %v5070_v49  ;;  %v2227_v49 = vld [vmem:[#allocation12 + $0x20] sm:$0xff] }
 0x79d   :  { %5071 = vrcp.f32 %v1717_v45  ;;  %v2224_v45 = vld [vmem:[#allocation12 + $0x8] sm:$0xff] }
 0x79e   :  { %5073 = vrcp.f32 %v1724_v22  ;;  %v4811_v22 = vpack.c.bf16 %v2227_v49, %v2224_v45  ;;  %v1913_v49 = vld [vmem:[#allocation3 + $0x28] sm:$0xff] }
 0x7a7   :  { %v5072_v9 = vpop.eup %5071 }
 0x7a8   :  { %v1728_v3 = vmul.f32 %v5072_v9, %v1727_v41  ;;  %v5074_v40 = vpop.eup %5073 }
 0x7a9   :  { %v1731_v11 = vsub.f32 1.0, %v5074_v40  ;;  %v1733_v31 = vmul.f32 %v5074_v40, %v1563_v12  ;;  %v1933_v12 = vld [vmem:[#allocation7 + $0x88] sm:$0xff] }
 0x7aa   :  { %v1729_v62 = vadd.f32 %v1728_v3, %v6447_v7  ;;  %v4803_v14 = vpack.c.bf16 %v1933_v12, %v1930_v5  ;;  %v2235_v12 = vld [vmem:[#allocation12 + $0x60] sm:$0xff] }
 0x7ac   :  { %5075 = vtanh.f32 %v1729_v62 }
 0x7b6   :  { %v5076_v63 = vpop.eup %5075 }
 0x7b7   :  { %v1732_v50 = vmul.f32 %v5076_v63, %v1731_v11 }
 0x7b9   :  { %v6102_v53 = vadd.f32 %v1733_v31, %v1732_v50 }
 0x7bb   :  { %1735 = vst.msk [vmem:[#allocation3 + $0x30] sm:$0xff] %vm707_vm7, %v6102_v53  ;;  %4017 = vmatmul.mubr.msk.f32.vlgmr.msra.gmra.mrb[22].mxu1 %vm540_vm6, %v6102_v53  ;;  %4396 = vmatmul.mubr.msk.f32.vlgmr.msra.gmra.mrb[30].mxu0 %vm540_vm6, %v6102_v53 }
 0x7bc   :  { %1736 = vst.msk [vmem:[#allocation3 + $0x8] sm:$0xff] %vm709_vm8, %v6102_v53  ;;  %2045 = vmatprep.mubr.f32.mxu1 %v5348_v1  ;;  %4782 = vmatpush1.bf16.msra.mxu1 %v4781_v27 }
 0x7bd   :  { %4798 = vmatpush3.bf16.msra.mxu0 %v4795_v56  ;;  %4784 = vmatprep.subr.bf16.mxu1 %v4783_v2  ;;  %v2228_v56 = vld [vmem:[#allocation12 + $0x28] sm:$0xff]  ;;  %v2233_v2 = vld [vmem:[#allocation12 + $0x50] sm:$0xff] }
 0x7be   :  { %4800 = vmatprep.subr.bf16.mxu0 %v4799_v16 }
 0x7c0   :  { %4786 = vmatpush1.bf16.msra.mxu1 %v4785_v15  ;;  %v4815_v15 = vpack.c.bf16 %v2233_v2, %v2230_v37 }
 0x7c1   :  { %4802 = vmatpush3.bf16.msra.mxu0 %v4799_v16  ;;  %4788 = vmatprep.subr.bf16.mxu1 %v4787_v18  ;;  %v2236_v16 = vld [vmem:[#allocation12 + $0x68] sm:$0xff] }
 0x7c2   :  { %4804 = vmatprep.subr.bf16.mxu0 %v4803_v14  ;;  %v1910_v18 = vld [vmem:[#allocation3 + $0x10] sm:$0xff] }
 0x7c3   :  { %v1909_v43 = vld [vmem:[#allocation3 + $0x8] sm:$0xff] }
 0x7c4   :  { %4790 = vmatpush1.bf16.msra.mxu1 %v4789_v6  ;;  %v4819_v6 = vpack.c.bf16 %v2239_v23, %v2236_v16  ;;  %v2247_v16 = vld [vmem:[#allocation13] sm:$0x7] }
 0x7c5   :  { %4806 = vmatpush3.bf16.msra.mxu0 %v4803_v14  ;;  %4792 = vmatprep.subr.bf16.mxu1 %v4791_v29  ;;  %v2238_v14 = vld [vmem:[#allocation12 + $0x78] sm:$0xff]  ;;  %v2240_v29 = vld [vmem:[#allocation12 + $0x88] sm:$0xff] }
 0x7c6   :  { %4808 = vmatprep.subr.bf16.mxu0 %v4807_v10  ;;  %v4821_v42 = vpack.c.bf16 %v2238_v14, %v2235_v12  ;;  %v4834_v45 = vpack.c.bf16 %v2240_v29, %v2237_v32 }
 0x7c8   :  { %4794 = vmatpush1.bf16.msra.mxu1 %v4793_v39  ;;  %v2241_v39 = vld [vmem:[#allocation12 + $0x90] sm:$0xff] }
 0x7c9   :  { %4827 = vmatprep.subr.bf16.mxu1 %v5349_v17  ;;  %4810 = vmatpush3.bf16.msra.mxu0 %v4807_v10  ;;  %v2244_v10 = vld [vmem:[#allocation12 + $0xa8] sm:$0xff] }
 0x7ca   :  { %4812 = vmatprep.subr.bf16.mxu0 %v4811_v22  ;;  %v2243_v22 = vld [vmem:[#allocation12 + $0xa0] sm:$0xff] }
 0x88e   :  { %v1809_v41 = vpop.f32.mrb[22].mxu1  ;;  %v1880_v9 = vpop.f32.mrb[30].mxu0 }
 0x88f   :  { %v1884_v3 = vadd.f32 %v1809_v41, %v5878_v44  ;;  %v1811_v7 = vpop.f32.mrb[23].mxu1  ;;  %v4397_v62 = vpop.f32.mrb[31].mxu0  ;;  %v1898_v8 = vadd.f32 %v5891_v20, %v1880_v9  ;;  %v2225_v20 = vld [vmem:[#allocation12 + $0x10] sm:$0xff]  ;;  %v2246_v41 = vld [vmem:[#allocation12 + $0xb8] sm:$0xff]  ;;  %v1914_v9 = vld [vmem:[#allocation3 + $0x30] sm:$0xff] }
 0x890   :  { %v1891_v40 = vadd.f32 %v1811_v7, %v501_v59  ;;  %v4828_v26 = vpack.c.bf16 %v2228_v56, %v2225_v20  ;;  %v2433_v7 = vld [vmem:[%s6429_s7 + $0x20] sm:$0xff]  ;;  %v4825_v62 = vpack.c.bf16 %v2244_v10, %v2241_v39 }
 0x891   :  { %v4019_v11 = vmul.f32 -1.442695, %v1884_v3  ;;  %v2430_v3 = vld [vmem:[%s6429_s7 + $0x8] sm:$0xff]  ;;  %v1940_v20 = vld [vmem:[#allocation9] sm:$0x7] }
 0x892   :  { %v4020_v63 = vmul.f32 -1.442695, %v1891_v40  ;;  %v4837_v40 = vpack.c.bf16 %v2246_v41, %v2243_v22  ;;  %v6235_v56 = vrot.slane %v1940_v20, %v5714_v52  ;;  %v6263_v10 = vrot.slane %v1940_v20, %v5717_v55 }
 0x893   :  { %5077 = vpow2.f32 %v4019_v11  ;;  %v2431_v11 = vld [vmem:[%s6429_s7 + $0x10] sm:$0xff]  ;;  %v6266_v22 = vrot.slane %v1940_v20, %v5723_v58 }
 0x894   :  { %5079 = vpow2.f32 %v4020_v63  ;;  %v2434_v63 = vld [vmem:[%s6429_s7 + $0x28] sm:$0xff] }
 0x89d   :  { %v5078_v50 = vpop.eup %5077 }
 0x89e   :  { %v1888_v31 = vadd.f32 1.0, %v5078_v50  ;;  %v5080_v61 = vpop.eup %5079 }
 0x89f   :  { %v1895_v47 = vadd.f32 1.0, %v5080_v61  ;;  %v6163_v61 = vpack.c.bf16 %v2434_v63, %v2431_v11 }
 0x8a0   :  { %5081 = vrcp.f32 %v1888_v31  ;;  %v6158_v31 = vpack.c.bf16 %v2433_v7, %v2430_v3  ;;  %v2260_v7 = vrot.slane %v2247_v16, %v5714_v52 }
 0x8a1   :  { %5083 = vrcp.f32 %v1895_v47  ;;  %v2437_v47 = vld [vmem:[%s6429_s7 + $0x40] sm:$0xff] }
 0x8aa   :  { %v5082_v44 = vpop.eup %5081 }
 0x8ab   :  { %v1899_v25 = vmul.f32 %v5082_v44, %v1898_v8  ;;  %v5084_v51 = vpop.eup %5083  ;;  %v2440_v8 = vld [vmem:[%s6429_s7 + $0x58] sm:$0xff] }
 0x8ac   :  { %v1902_v59 = vsub.f32 1.0, %v5084_v51  ;;  %v1904_v27 = vmul.f32 %v5084_v51, %v6102_v53  ;;  %v2231_v53 = vld [vmem:[#allocation12 + $0x40] sm:$0xff]  ;;  %v6177_v44 = vpack.c.bf16 %v2440_v8, %v2437_v47 }
 0x8ad   :  { %v1900_v4 = vadd.f32 %v1899_v25, %v6448_v0  ;;  %v4831_v5 = vpack.c.bf16 %v2234_v21, %v2231_v53  ;;  %v2429_v25 = vld [vmem:[%s6429_s7] sm:$0xff]  ;;  %v2432_v0 = vld [vmem:[%s6429_s7 + $0x18] sm:$0xff]  ;;  %v2439_v51 = vld [vmem:[%s6429_s7 + $0x50] sm:$0xff] }
 0x8af   :  { %5085 = vtanh.f32 %v1900_v4  ;;  %v2436_v4 = vld [vmem:[%s6429_s7 + $0x38] sm:$0xff] }
 0x8b9   :  { %v5086_v48 = vpop.eup %5085 }
 0x8ba   :  { %v1903_v30 = vmul.f32 %v5086_v48, %v1902_v59  ;;  %v6208_v59 = vpack.c.bf16 %v2432_v0, %v2429_v25  ;;  %v6210_v48 = vpack.c.bf16 %v2439_v51, %v2436_v4 }
 0x8bc   :  { %v1905_v60 = vadd.f32 %v1904_v27, %v1903_v30  ;;  %v2435_v30 = vld [vmem:[%s6429_s7 + $0x30] sm:$0xff]  ;;  %v2438_v27 = vld [vmem:[%s6429_s7 + $0x48] sm:$0xff] }
 0x8be   :  { %1906 = vst.msk [vmem:[#allocation3 + $0x38] sm:$0xff] %vm707_vm7, %v1905_v60 }
 0x8bf   :  { %1907 = vst.msk [vmem:[#allocation3] sm:$0xff] %vm709_vm8, %v1905_v60  ;;  %v6222_v60 = vpack.c.bf16 %v2438_v27, %v2435_v30  ;;  %v6273_v27 = vld [vmem:[#allocation10] ss:$0 sm:$0xff] }
 0x8c5   :  { %v1915_v50 = vld [vmem:[#allocation3 + $0x38] sm:$0xff] }
 0x8c6   :  { %v1908_v54 = vld [vmem:[#allocation3] sm:$0xff] }
 0x8c7   :  { %4021 = vmatmul.mubr.msk.f32.vlgmr.msra.gmra.mrb[24].mxu1 %vm540_vm6, %v1908_v54  ;;  %4414 = vmatprep.mubr.msk.f32.mxu0 %vm540_vm6, %v1908_v54 }
 0x8c8   :  { %4829 = vmatpush3.bf16.msra.mxu1 %v4828_v26  ;;  %4415 = vmatmul.mubr.msk.f32.vlgmr.msra.gmra.mrb[32].mxu0 %vm540_vm6, %v1909_v43 }
 0x8c9   :  { %4417 = vmatprep.mubr.msk.f32.mxu0 %vm540_vm6, %v1910_v18  ;;  %4814 = vmatpush1.bf16.msra.mxu0 %v4813_v13 }
 0x8ca   :  { %2051 = vmatprep.mubr.f32.mxu1 %v5348_v1  ;;  %4816 = vmatprep.subr.bf16.mxu0 %v4815_v15 }
 0x8cb   :  { %4022 = vmatmul.mubr.msk.f32.gmra.mrb[26].mxu1 %vm540_vm6, %v1909_v43  ;;  %4830 = vmatprep.subr.bf16.mxu1 %v5349_v17 }
 0x8cc   :  { %4418 = vmatmul.mubr.msk.f32.gmra.mrb[34].mxu0 %vm540_vm6, %v1911_v35  ;;  %2057 = vmatprep.mubr.f32.mxu1 %v5348_v1 }
 0x8cd   :  { %4420 = vmatprep.mubr.msk.f32.mxu0 %vm540_vm6, %v1912_v38  ;;  %4818 = vmatpush1.bf16.msra.mxu0 %v4817_v33 }
 0x8ce   :  { %4832 = vmatpush3.bf16.msra.mxu1 %v4831_v5  ;;  %4820 = vmatprep.subr.bf16.mxu0 %v4819_v6  ;;  %v2256_v5 = vrot.slane %v2247_v16, %v5723_v58 }
 0x8cf   :  { %4023 = vmatmul.mubr.msk.f32.gmra.mrb[28].mxu1 %vm540_vm6, %v1910_v18  ;;  %4833 = vmatprep.subr.bf16.mxu1 %v5349_v17  ;;  %v2252_v18 = vrot.slane %v2247_v16, %v5717_v55 }
 0x8d0   :  { %4421 = vmatmul.mubr.msk.f32.gmra.mrb[36].mxu0 %vm540_vm6, %v1913_v49  ;;  %2063 = vmatprep.mubr.f32.mxu1 %v5348_v1 }
 0x8d1   :  { %4423 = vmatprep.mubr.msk.f32.mxu0 %vm540_vm6, %v1914_v9  ;;  %4822 = vmatpush1.bf16.msra.mxu0 %v4821_v42 }
 0x8d2   :  { %4824 = vmatprep.subr.bf16.mxu0 %v4823_v46  ;;  %4835 = vmatpush3.bf16.msra.mxu1 %v4834_v45 }
 0x8d3   :  { %4024 = vmatmul.mubr.msk.f32.gmra.mrb[30].mxu1 %vm540_vm6, %v1911_v35  ;;  %4836 = vmatprep.subr.bf16.mxu1 %v5349_v17 }
 0x8d4   :  { %4424 = vmatmul.mubr.msk.f32.gmra.mrb[38].mxu0 %vm540_vm6, %v1915_v50  ;;  %2069 = vmatprep.mubr.f32.mxu1 %v5348_v1 }
 0x8d5   :  { %4826 = vmatpush1.bf16.msra.mxu0 %v4825_v62  ;;  %2328 = vmatprep.mubr.f32.mxu0 %v5348_v1  ;;  %v4041_v62 = vld [vmem:[#allocation15] ss:$0 sm:$0xff] }
 0x8d6   :  { %4838 = vmatpush3.bf16.msra.mxu1 %v4837_v40  ;;  %4847 = vmatprep.subr.bf16.mxu0 %v5349_v17 }
 0x8d7   :  { %4025 = vmatmul.mubr.msk.f32.gmra.mrb[32].mxu1 %vm540_vm6, %v1912_v38  ;;  %4840 = vmatprep.subr.bf16.mxu1 %v6158_v31 }
 0x8d8   :  { %4037 = vmatmul.mubr.msk.f32.vlgmr.msra.gmra.mrb[40].mxu0 %vm540_vm6, %v1915_v50  ;;  %2075 = vmatprep.mubr.f32.mxu1 %v5348_v1 }
 0x8d9   :  { %4849 = vmatpush3.bf16.msra.mxu0 %v6163_v61  ;;  %4453 = vmatprep.mubr.msk.f32.mxu0 %vm5350_vm2, %v5348_v1 }
 0x8da   :  { %4850 = vmatprep.subr.bf16.mxu0 %v5349_v17 }
 0x8db   :  { %4026 = vmatmul.mubr.msk.f32.gmra.mrb[34].mxu1 %vm540_vm6, %v1913_v49 }
 0x8dc   :  { %2081 = vmatprep.mubr.f32.mxu1 %v5348_v1 }
 0x8dd   :  { %4852 = vmatpush3.bf16.msra.mxu0 %v6177_v44 }
 0x8de   :  { %4861 = vmatprep.subr.bf16.mxu0 %v5349_v17 }
 0x8df   :  { %4027 = vmatmul.mubr.msk.f32.gmra.mrb[36].mxu1 %vm540_vm6, %v1914_v9 }
 0x8e0   :  { %2087 = vmatprep.mubr.f32.mxu1 %v5348_v1  ;;  %4454 = vmatmul.mubr.f32.vlgmr.msra.gmra.mrb[42].mxu0 %v5348_v1 }
 0x8e1   :  { %4863 = vmatpush3.bf16.msra.mxu0 %v6163_v61  ;;  %4464 = vmatprep.mubr.msk.f32.mxu0 %vm5350_vm2, %v5348_v1 }
 0x8e2   :  { %4864 = vmatprep.subr.bf16.mxu0 %v5349_v17 }
 0x8e3   :  { %4028 = vmatmul.mubr.msk.f32.gmra.mrb[38].mxu1 %vm540_vm6, %v1915_v50 }
 0x8e4   :  { %4442 = vmatprep.mubr.msk.f32.mxu1 %vm5350_vm2, %v5348_v1 }
 0x8e5   :  { %4866 = vmatpush3.bf16.msra.mxu0 %v6177_v44 }
 0x8e6   :  { %4875 = vmatprep.subr.bf16.mxu0 %v5349_v17 }
 0x8e7   :  { %4443 = vmatmul.mubr.msk.f32.vlgmr.msra.gmra.mrb[40].mxu1 %vm540_vm6, %v1915_v50 }
 0x8e8   :  { %4842 = vmatpush1.bf16.msra.mxu1 %v6208_v59  ;;  %2517 = vmatprep.mubr.f32.mxu1 %v5348_v1 }
 0x8e9   :  { %4844 = vmatprep.subr.bf16.mxu1 %v6210_v48 }
 0x8ec   :  { %4846 = vmatpush1.bf16.msra.mxu1 %v6222_v60 }
 0x8ed   :  { %4854 = vmatprep.subr.bf16.mxu1 %v6158_v31 }
 0x8ef   :  { %2518 = vmatmul.mubr.f32.vlgmr.msra.gmra.mrb[24].mxu1 %v5348_v1 }
 0x8f0   :  { %4856 = vmatpush1.bf16.msra.mxu1 %v6208_v59  ;;  %2686 = vmatprep.mubr.f32.mxu1 %v5348_v1 }
 0x8f1   :  { %4858 = vmatprep.subr.bf16.mxu1 %v6210_v48 }
 0x8f4   :  { %4860 = vmatpush1.bf16.msra.mxu1 %v6222_v60 }
 0x8f5   :  { %4868 = vmatprep.subr.bf16.mxu1 %v6158_v31 }
 0x99b   :  { %v4416_v57 = vpop.f32.mrb[32].mxu0 }
 0x99c   :  { %v6238_v24 = vadd.f32 %v4416_v57, %v6235_v56  ;;  %v6240_v37 = vpop.f32.mrb[33].mxu0 }
 0x99f   :  { %v4419_v2 = vpop.f32.mrb[34].mxu0 }
 0x9a0   :  { %v6243_v26 = vadd.f32 %v4419_v2, %v6235_v56  ;;  %v2170_v43 = vpop.f32.mrb[35].mxu0 }
 0x9a1   :  { %v6246_v13 = vadd.f32 %v2170_v43, %v6235_v56  ;;  %v2161_v43 = vadd.f32 %v6240_v37, %v6235_v56 }
 0x9a3   :  { %v4422_v36 = vpop.f32.mrb[36].mxu0 }
 0x9a4   :  { %v6249_v54 = vadd.f32 %v4422_v36, %v6235_v56  ;;  %v2180_v15 = vpop.f32.mrb[37].mxu0 }
 0x9a5   :  { %v6252_v34 = vadd.f32 %v2180_v15, %v6235_v56 }
 0x9a7   :  { %v4425_v53 = vpop.f32.mrb[38].mxu0 }
 0x9a8   :  { %v6255_v21 = vadd.f32 %v4425_v53, %v6235_v56  ;;  %v2190_v23 = vpop.f32.mrb[39].mxu0 }
 0x9a9   :  { %v6259_v35 = vadd.f32 %v2190_v23, %v6235_v56 }
 0x9ab   :  { %v2330_v33 = vpop.f32.mrb[40].mxu0 }
 0x9ac   :  { %v2331_v6 = vadd.f32 %v2330_v33, %v2252_v18  ;;  %v2332_v12 = vpop.f32.mrb[41].mxu0 }
 0x9ad   :  { %v2333_v19 = vadd.f32 %v2332_v12, %v2256_v5 }
 0x9ae   :  { %v4039_v14 = vmul.f32 -1.442695, %v2331_v6 }
 0x9af   :  { %v4040_v28 = vmul.f32 -1.442695, %v2333_v19 }
 0x9b0   :  { %5087 = vpow2.f32 %v4039_v14 }
 0x9b1   :  { %5089 = vpow2.f32 %v4040_v28 }
 0x9b3   :  { %v2590_v32 = vpop.f32.mrb[42].mxu0 }
 0x9b4   :  { %v4455_v29 = vpop.f32.mrb[43].mxu0  ;;  %v2608_v57 = vadd.f32 %v6273_v27, %v2590_v32 }
 0x9ba   :  { %v5088_v38 = vpop.eup %5087  ;;  %v2401_v42 = vpop.f32.mrb[40].mxu1 }
 0x9bb   :  { %v2408_v46 = vadd.f32 1.0, %v5088_v38  ;;  %v4444_v39 = vpop.f32.mrb[41].mxu1  ;;  %v5090_v45 = vpop.eup %5089  ;;  %v2402_v55 = vadd.f32 %v2401_v42, %v2260_v7 }
 0x9bc   :  { %v2414_v3 = vadd.f32 1.0, %v5090_v45 }
 0x9bd   :  { %5091 = vrcp.f32 %v2408_v46 }
 0x9c2   :  { %v2519_v49 = vpop.f32.mrb[24].mxu1 }
 0x9c3   :  { %v4963_v41 = vadd.f32 %v2519_v49, %v6263_v10  ;;  %v2521_v9 = vpop.f32.mrb[25].mxu1 }
 0x9c4   :  { %v4964_v11 = vadd.f32 %v2521_v9, %v6266_v22 }
 0x9c5   :  { %v4043_v40 = vmul.f32 -1.442695, %v4963_v41 }
 0x9c6   :  { %v4044_v8 = vmul.f32 -1.442695, %v4964_v11 }
 0x9c7   :  { %v5092_v63 = vpop.eup %5091  ;;  %5093 = vpow2.f32 %v4043_v40 }
 0x9c8   :  { %5095 = vrcp.f32 %v2414_v3  ;;  %v2424_v50 = vmul.f32 %v5092_v63, %v4041_v62 }
 0x9ca   :  { %v2425_v47 = vadd.f32 %v2424_v50, %v2402_v55 }
 0x9cc   :  { %5097 = vtanh.f32 %v2425_v47 }
 0x9cd   :  { %5099 = vpow2.f32 %v4044_v8 }
 0x9d1   :  { %v5094_v58 = vpop.eup %5093 }
 0x9d2   :  { %v5096_v25 = vpop.eup %5095  ;;  %v2598_v0 = vadd.f32 1.0, %v5094_v58 }
 0x9d3   :  { %v2427_v4 = vsub.f32 1.0, %v5096_v25 }
 0x9d4   :  { %5101 = vrcp.f32 %v2598_v0 }
 0x9d6   :  { %v5098_v51 = vpop.eup %5097 }
 0x9d7   :  { %v6271_v52 = vmul.f32 %v5098_v51, %v2427_v4  ;;  %v5100_v30 = vpop.eup %5099 }
 0x9d8   :  { %v2605_v20 = vadd.f32 1.0, %v5100_v30 }
 0x9da   :  { %5103 = vrcp.f32 %v2605_v20 }
 0x9de   :  { %v5102_v2 = vpop.eup %5101 }
 0x9df   :  { %v2609_v36 = vmul.f32 %v5102_v2, %v2608_v57 }
 0x9e1   :  { %v2610_v15 = vadd.f32 %v2609_v36, %v2161_v43 }
 0x9e3   :  { %5105 = vtanh.f32 %v2610_v15 }
 0x9e4   :  { %v5104_v16 = vpop.eup %5103 }
 0x9e5   :  { %v2612_v53 = vsub.f32 1.0, %v5104_v16  ;;  %v2614_v33 = vmul.f32 0.0, %v5104_v16 }
 0x9ed   :  { %v5106_v23 = vpop.eup %5105 }
 0x9ee   :  { %v2613_v18 = vmul.f32 %v5106_v23, %v2612_v53 }
 0x9f0   :  { %v2615_v5 = vadd.f32 %v2614_v33, %v2613_v18 }
 0x9f2   :  { %4045 = vmatmul.mubr.msk.f32.vlgmr.msra.gmra.mrb[26].mxu1 %vm707_vm7, %v2615_v5  ;;  %4465 = vmatmul.mubr.msk.f32.vlgmr.msra.gmra.mrb[44].mxu0 %vm707_vm7, %v2615_v5 }
 0x9f3   :  { %4870 = vmatpush1.bf16.msra.mxu1 %v6208_v59  ;;  %4877 = vmatpush3.bf16.msra.mxu0 %v6163_v61 }
 0x9f4   :  { %4872 = vmatprep.subr.bf16.mxu1 %v6210_v48  ;;  %4878 = vmatprep.subr.bf16.mxu0 %v5349_v17 }
 0x9f5   :  { %2855 = vmatprep.mubr.f32.mxu1 %v5348_v1  ;;  %4475 = vmatprep.mubr.msk.f32.mxu0 %vm5350_vm2, %v5348_v1 }
 0x9f7   :  { %4874 = vmatpush1.bf16.msra.mxu1 %v6222_v60  ;;  %4880 = vmatpush3.bf16.msra.mxu0 %v6177_v44 }
 0x9f8   :  { %4882 = vmatprep.subr.bf16.mxu1 %v6158_v31  ;;  %4889 = vmatprep.subr.bf16.mxu0 %v5349_v17 }
 0xac5   :  { %v2688_v56 = vpop.f32.mrb[26].mxu1  ;;  %v2759_v37 = vpop.f32.mrb[44].mxu0 }
 0xac6   :  { %v4965_v6 = vadd.f32 %v2688_v56, %v6263_v10  ;;  %v2690_v12 = vpop.f32.mrb[27].mxu1  ;;  %v4466_v14 = vpop.f32.mrb[45].mxu0  ;;  %v2777_v39 = vadd.f32 %v6273_v27, %v2759_v37 }
 0xac7   :  { %v4966_v28 = vadd.f32 %v2690_v12, %v6266_v22 }
 0xac8   :  { %v4047_v19 = vmul.f32 -1.442695, %v4965_v6 }
 0xac9   :  { %v4048_v32 = vmul.f32 -1.442695, %v4966_v28 }
 0xaca   :  { %5107 = vpow2.f32 %v4047_v19 }
 0xacb   :  { %5109 = vpow2.f32 %v4048_v32 }
 0xad4   :  { %v5108_v29 = vpop.eup %5107 }
 0xad5   :  { %v2767_v38 = vadd.f32 1.0, %v5108_v29  ;;  %v5110_v42 = vpop.eup %5109 }
 0xad6   :  { %v2774_v46 = vadd.f32 1.0, %v5110_v42 }
 0xad7   :  { %5111 = vrcp.f32 %v2767_v38 }
 0xad8   :  { %5113 = vrcp.f32 %v2774_v46 }
 0xae1   :  { %v5112_v45 = vpop.eup %5111 }
 0xae2   :  { %v2778_v49 = vmul.f32 %v5112_v45, %v2777_v39  ;;  %v5114_v9 = vpop.eup %5113 }
 0xae3   :  { %v2781_v3 = vsub.f32 1.0, %v5114_v9  ;;  %v2783_v40 = vmul.f32 %v5114_v9, %v2615_v5 }
 0xae4   :  { %v2779_v41 = vadd.f32 %v2778_v49, %v6238_v24 }
 0xae6   :  { %5115 = vtanh.f32 %v2779_v41 }
 0xaf0   :  { %v5116_v7 = vpop.eup %5115 }
 0xaf1   :  { %v2782_v62 = vmul.f32 %v5116_v7, %v2781_v3 }
 0xaf3   :  { %v2784_v11 = vadd.f32 %v2783_v40, %v2782_v62 }
 0xaf5   :  { %4049 = vmatmul.mubr.msk.f32.vlgmr.msra.gmra.mrb[28].mxu1 %vm707_vm7, %v2784_v11  ;;  %4476 = vmatmul.mubr.msk.f32.vlgmr.msra.gmra.mrb[46].mxu0 %vm707_vm7, %v2784_v11 }
 0xaf6   :  { %4884 = vmatpush1.bf16.msra.mxu1 %v6208_v59  ;;  %4891 = vmatpush3.bf16.msra.mxu0 %v6163_v61 }
 0xaf7   :  { %4886 = vmatprep.subr.bf16.mxu1 %v6210_v48  ;;  %4892 = vmatprep.subr.bf16.mxu0 %v5349_v17 }
 0xaf8   :  { %3024 = vmatprep.mubr.f32.mxu1 %v5348_v1  ;;  %4486 = vmatprep.mubr.msk.f32.mxu0 %vm5350_vm2, %v5348_v1 }
 0xafa   :  { %4888 = vmatpush1.bf16.msra.mxu1 %v6222_v60  ;;  %4894 = vmatpush3.bf16.msra.mxu0 %v6177_v44 }
 0xafb   :  { %4896 = vmatprep.subr.bf16.mxu1 %v6158_v31  ;;  %4903 = vmatprep.subr.bf16.mxu0 %v5349_v17 }
 0xbc8   :  { %v2857_v24 = vpop.f32.mrb[28].mxu1  ;;  %v2928_v63 = vpop.f32.mrb[46].mxu0 }
 0xbc9   :  { %v4967_v55 = vadd.f32 %v2857_v24, %v6263_v10  ;;  %v2859_v50 = vpop.f32.mrb[29].mxu1  ;;  %v4477_v47 = vpop.f32.mrb[47].mxu0  ;;  %v2946_v20 = vadd.f32 %v6273_v27, %v2928_v63 }
 0xbca   :  { %v4968_v58 = vadd.f32 %v2859_v50, %v6266_v22 }
 0xbcb   :  { %v4051_v8 = vmul.f32 -1.442695, %v4967_v55 }
 0xbcc   :  { %v4052_v25 = vmul.f32 -1.442695, %v4968_v58 }
 0xbcd   :  { %5117 = vpow2.f32 %v4051_v8 }
 0xbce   :  { %5119 = vpow2.f32 %v4052_v25 }
 0xbd7   :  { %v5118_v0 = vpop.eup %5117 }
 0xbd8   :  { %v2936_v4 = vadd.f32 1.0, %v5118_v0  ;;  %v5120_v51 = vpop.eup %5119 }
 0xbd9   :  { %v2943_v30 = vadd.f32 1.0, %v5120_v51 }
 0xbda   :  { %5121 = vrcp.f32 %v2936_v4 }
 0xbdb   :  { %5123 = vrcp.f32 %v2943_v30 }
 0xbe4   :  { %v5122_v57 = vpop.eup %5121 }
 0xbe5   :  { %v2947_v2 = vmul.f32 %v5122_v57, %v2946_v20  ;;  %v5124_v36 = vpop.eup %5123 }
 0xbe6   :  { %v2950_v15 = vsub.f32 1.0, %v5124_v36  ;;  %v2952_v23 = vmul.f32 %v5124_v36, %v2784_v11 }
 0xbe7   :  { %v2948_v43 = vadd.f32 %v2947_v2, %v6246_v13 }
 0xbe9   :  { %5125 = vtanh.f32 %v2948_v43 }
 0xbf3   :  { %v5126_v16 = vpop.eup %5125 }
 0xbf4   :  { %v2951_v53 = vmul.f32 %v5126_v16, %v2950_v15 }
 0xbf6   :  { %v2953_v18 = vadd.f32 %v2952_v23, %v2951_v53 }
 0xbf8   :  { %4053 = vmatmul.mubr.msk.f32.vlgmr.msra.gmra.mrb[30].mxu1 %vm707_vm7, %v2953_v18  ;;  %4487 = vmatmul.mubr.msk.f32.vlgmr.msra.gmra.mrb[48].mxu0 %vm707_vm7, %v2953_v18 }
 0xbf9   :  { %4898 = vmatpush1.bf16.msra.mxu1 %v6208_v59  ;;  %4905 = vmatpush3.bf16.msra.mxu0 %v6163_v61 }
 0xbfa   :  { %4900 = vmatprep.subr.bf16.mxu1 %v6210_v48  ;;  %4906 = vmatprep.subr.bf16.mxu0 %v5349_v17 }
 0xbfb   :  { %3193 = vmatprep.mubr.f32.mxu1 %v5348_v1  ;;  %4497 = vmatprep.mubr.msk.f32.mxu0 %vm5350_vm2, %v5348_v1 }
 0xbfd   :  { %4902 = vmatpush1.bf16.msra.mxu1 %v6222_v60  ;;  %4908 = vmatpush3.bf16.msra.mxu0 %v6177_v44 }
 0xbfe   :  { %4910 = vmatprep.subr.bf16.mxu1 %v6158_v31  ;;  %4917 = vmatprep.subr.bf16.mxu0 %v5349_v17 }
 0xccb   :  { %v3026_v13 = vpop.f32.mrb[30].mxu1  ;;  %v3097_v33 = vpop.f32.mrb[48].mxu0 }
 0xccc   :  { %v4969_v5 = vadd.f32 %v3026_v13, %v6263_v10  ;;  %v3028_v56 = vpop.f32.mrb[31].mxu1  ;;  %v4488_v37 = vpop.f32.mrb[49].mxu0  ;;  %v3115_v38 = vadd.f32 %v6273_v27, %v3097_v33 }
 0xccd   :  { %v4970_v12 = vadd.f32 %v3028_v56, %v6266_v22 }
 0xcce   :  { %v4055_v6 = vmul.f32 -1.442695, %v4969_v5 }
 0xccf   :  { %v4056_v14 = vmul.f32 -1.442695, %v4970_v12 }
 0xcd0   :  { %5127 = vpow2.f32 %v4055_v6 }
 0xcd1   :  { %5129 = vpow2.f32 %v4056_v14 }
 0xcda   :  { %v5128_v19 = vpop.eup %5127 }
 0xcdb   :  { %v3105_v28 = vadd.f32 1.0, %v5128_v19  ;;  %v5130_v32 = vpop.eup %5129 }
 0xcdc   :  { %v3112_v29 = vadd.f32 1.0, %v5130_v32 }
 0xcdd   :  { %5131 = vrcp.f32 %v3105_v28 }
 0xcde   :  { %5133 = vrcp.f32 %v3112_v29 }
 0xce7   :  { %v5132_v42 = vpop.eup %5131 }
 0xce8   :  { %v3116_v46 = vmul.f32 %v5132_v42, %v3115_v38  ;;  %v5134_v45 = vpop.eup %5133 }
 0xce9   :  { %v3119_v49 = vsub.f32 1.0, %v5134_v45  ;;  %v3121_v3 = vmul.f32 %v5134_v45, %v2953_v18 }
 0xcea   :  { %v3117_v39 = vadd.f32 %v3116_v46, %v6243_v26 }
 0xcec   :  { %5135 = vtanh.f32 %v3117_v39 }
 0xcf6   :  { %v5136_v41 = vpop.eup %5135 }
 0xcf7   :  { %v3120_v9 = vmul.f32 %v5136_v41, %v3119_v49 }
 0xcf9   :  { %v3122_v7 = vadd.f32 %v3121_v3, %v3120_v9 }
 0xcfb   :  { %4057 = vmatmul.mubr.msk.f32.vlgmr.msra.gmra.mrb[32].mxu1 %vm707_vm7, %v3122_v7  ;;  %4498 = vmatmul.mubr.msk.f32.vlgmr.msra.gmra.mrb[50].mxu0 %vm707_vm7, %v3122_v7 }
 0xcfc   :  { %4912 = vmatpush1.bf16.msra.mxu1 %v6208_v59  ;;  %4919 = vmatpush3.bf16.msra.mxu0 %v6163_v61 }
 0xcfd   :  { %4914 = vmatprep.subr.bf16.mxu1 %v6210_v48  ;;  %4920 = vmatprep.subr.bf16.mxu0 %v5349_v17 }
 0xcfe   :  { %3362 = vmatprep.mubr.f32.mxu1 %v5348_v1  ;;  %4508 = vmatprep.mubr.msk.f32.mxu0 %vm5350_vm2, %v5348_v1 }
 0xd00   :  { %4916 = vmatpush1.bf16.msra.mxu1 %v6222_v60  ;;  %4922 = vmatpush3.bf16.msra.mxu0 %v6177_v44 }
 0xd01   :  { %4924 = vmatprep.subr.bf16.mxu1 %v6158_v31  ;;  %4931 = vmatprep.subr.bf16.mxu0 %v5349_v17 }
 0xdce   :  { %v3195_v26 = vpop.f32.mrb[32].mxu1  ;;  %v3266_v62 = vpop.f32.mrb[50].mxu0 }
 0xdcf   :  { %v4971_v40 = vadd.f32 %v3195_v26, %v6263_v10  ;;  %v3197_v11 = vpop.f32.mrb[33].mxu1  ;;  %v4499_v24 = vpop.f32.mrb[51].mxu0  ;;  %v3284_v0 = vadd.f32 %v6273_v27, %v3266_v62 }
 0xdd0   :  { %v4972_v55 = vadd.f32 %v3197_v11, %v6266_v22 }
 0xdd1   :  { %v4059_v63 = vmul.f32 -1.442695, %v4971_v40 }
 0xdd2   :  { %v4060_v50 = vmul.f32 -1.442695, %v4972_v55  ;;  %v3803_v55 = vld [vmem:[%s6434_s12 + $0x20] sm:$0xff] }
 0xdd3   :  { %5137 = vpow2.f32 %v4059_v63 }
 0xdd4   :  { %5139 = vpow2.f32 %v4060_v50  ;;  %v3804_v50 = vld [vmem:[%s6434_s12 + $0x28] sm:$0xff] }
 0xddd   :  { %v5138_v47 = vpop.eup %5137 }
 0xdde   :  { %v3274_v8 = vadd.f32 1.0, %v5138_v47  ;;  %v5140_v58 = vpop.eup %5139 }
 0xddf   :  { %v3281_v25 = vadd.f32 1.0, %v5140_v58 }
 0xde0   :  { %5141 = vrcp.f32 %v3274_v8 }
 0xde1   :  { %5143 = vrcp.f32 %v3281_v25  ;;  %v4952_v25 = vpack.c.bf16 %v3804_v50, %v3803_v55 }
 0xdea   :  { %v5142_v4 = vpop.eup %5141 }
 0xdeb   :  { %v3285_v51 = vmul.f32 %v5142_v4, %v3284_v0  ;;  %v5144_v20 = vpop.eup %5143  ;;  %v3806_v4 = vld [vmem:[%s6434_s12 + $0x38] sm:$0xff] }
 0xdec   :  { %v3288_v57 = vsub.f32 1.0, %v5144_v20  ;;  %v3290_v36 = vmul.f32 %v5144_v20, %v3122_v7  ;;  %v3800_v20 = vld [vmem:[%s6434_s12 + $0x8] sm:$0xff] }
 0xded   :  { %v3286_v30 = vadd.f32 %v3285_v51, %v6252_v34 }
 0xdef   :  { %5145 = vtanh.f32 %v3286_v30  ;;  %v3799_v30 = vld [vmem:[%s6434_s12] sm:$0xff] }
 0xdf9   :  { %v5146_v2 = vpop.eup %5145 }
 0xdfa   :  { %v3289_v43 = vmul.f32 %v5146_v2, %v3288_v57  ;;  %v3801_v57 = vld [vmem:[%s6434_s12 + $0x10] sm:$0xff]  ;;  %v4958_v2 = vpack.c.bf16 %v3800_v20, %v3799_v30 }
 0xdfc   :  { %v3291_v15 = vadd.f32 %v3290_v36, %v3289_v43 }
 0xdfe   :  { %4061 = vmatmul.mubr.msk.f32.vlgmr.msra.gmra.mrb[34].mxu1 %vm707_vm7, %v3291_v15  ;;  %4509 = vmatmul.mubr.msk.f32.vlgmr.msra.gmra.mrb[52].mxu0 %vm707_vm7, %v3291_v15 }
 0xdff   :  { %4926 = vmatpush1.bf16.msra.mxu1 %v6208_v59  ;;  %4933 = vmatpush3.bf16.msra.mxu0 %v6163_v61 }
 0xe00   :  { %4928 = vmatprep.subr.bf16.mxu1 %v6210_v48  ;;  %4934 = vmatprep.subr.bf16.mxu0 %v5349_v17 }
 0xe01   :  { %3531 = vmatprep.mubr.f32.mxu1 %v5348_v1  ;;  %4519 = vmatprep.mubr.msk.f32.mxu0 %vm5350_vm2, %v5348_v1 }
 0xe03   :  { %4930 = vmatpush1.bf16.msra.mxu1 %v6222_v60  ;;  %4936 = vmatpush3.bf16.msra.mxu0 %v6177_v44 }
 0xe04   :  { %4945 = vmatprep.subr.bf16.mxu0 %v5349_v17  ;;  %4938 = vmatprep.subr.bf16.mxu1 %v6158_v31 }
 0xed1   :  { %v3364_v34 = vpop.f32.mrb[34].mxu1  ;;  %v3435_v16 = vpop.f32.mrb[52].mxu0 }
 0xed2   :  { %v4973_v53 = vadd.f32 %v3364_v34, %v6263_v10  ;;  %v3366_v23 = vpop.f32.mrb[35].mxu1  ;;  %v4510_v18 = vpop.f32.mrb[53].mxu0  ;;  %v3453_v14 = vadd.f32 %v6273_v27, %v3435_v16 }
 0xed3   :  { %v4974_v33 = vadd.f32 %v3366_v23, %v6266_v22 }
 0xed4   :  { %v4063_v13 = vmul.f32 -1.442695, %v4973_v53 }
 0xed5   :  { %v4064_v5 = vmul.f32 -1.442695, %v4974_v33 }
 0xed6   :  { %5147 = vpow2.f32 %v4063_v13 }
 0xed7   :  { %5149 = vpow2.f32 %v4064_v5 }
 0xee0   :  { %v5148_v56 = vpop.eup %5147 }
 0xee1   :  { %v3443_v37 = vadd.f32 1.0, %v5148_v56  ;;  %v5150_v6 = vpop.eup %5149 }
 0xee2   :  { %v3450_v12 = vadd.f32 1.0, %v5150_v6 }
 0xee3   :  { %5151 = vrcp.f32 %v3443_v37 }
 0xee4   :  { %5153 = vrcp.f32 %v3450_v12 }
 0xeed   :  { %v5152_v31 = vpop.eup %5151 }
 0xeee   :  { %v3454_v19 = vmul.f32 %v5152_v31, %v3453_v14  ;;  %v5154_v32 = vpop.eup %5153 }
 0xeef   :  { %v3457_v29 = vsub.f32 1.0, %v5154_v32  ;;  %v3459_v46 = vmul.f32 %v5154_v32, %v3291_v15 }
 0xef0   :  { %v3455_v28 = vadd.f32 %v3454_v19, %v6249_v54 }
 0xef2   :  { %5155 = vtanh.f32 %v3455_v28 }
 0xefc   :  { %v5156_v38 = vpop.eup %5155 }
 0xefd   :  { %v3458_v42 = vmul.f32 %v5156_v38, %v3457_v29 }
 0xeff   :  { %v3460_v39 = vadd.f32 %v3459_v46, %v3458_v42  ;;  %v4075_v42 = vld [vmem:[#allocation4] ss:$0 sm:$0xff] }
 0xf01   :  { %4065 = vmatmul.mubr.msk.f32.vlgmr.msra.gmra.mrb[36].mxu1 %vm707_vm7, %v3460_v39  ;;  %4520 = vmatmul.mubr.msk.f32.vlgmr.msra.gmra.mrb[54].mxu0 %vm707_vm7, %v3460_v39 }
 0xf02   :  { %4947 = vmatpush3.bf16.msra.mxu0 %v6163_v61  ;;  %4940 = vmatpush1.bf16.msra.mxu1 %v6208_v59 }
 0xf03   :  { %4948 = vmatprep.subr.bf16.mxu0 %v5349_v17  ;;  %4942 = vmatprep.subr.bf16.mxu1 %v6210_v48 }
 0xf04   :  { %3700 = vmatprep.mubr.f32.mxu1 %v5348_v1  ;;  %4530 = vmatprep.mubr.msk.f32.mxu0 %vm5350_vm2, %v5348_v1 }
 0xf06   :  { %4950 = vmatpush3.bf16.msra.mxu0 %v6177_v44  ;;  %4944 = vmatpush1.bf16.msra.mxu1 %v6222_v60 }
 0xf07   :  { %4951 = vmatprep.subr.bf16.mxu0 %v5349_v17  ;;  %4957 = vmatprep.subr.bf16.mxu1 %v5349_v17 }
 0xfd4   :  { %v3533_v61 = vpop.f32.mrb[36].mxu1  ;;  %v3604_v54 = vpop.f32.mrb[54].mxu0 }
 0xfd5   :  { %v4975_v59 = vadd.f32 %v3533_v61, %v6263_v10  ;;  %v3535_v45 = vpop.f32.mrb[37].mxu1  ;;  %v4521_v49 = vpop.f32.mrb[55].mxu0  ;;  %v3622_v26 = vadd.f32 %v6273_v27, %v3604_v54 }
 0xfd6   :  { %v4976_v41 = vadd.f32 %v3535_v45, %v6266_v22 }
 0xfd7   :  { %v4067_v48 = vmul.f32 -1.442695, %v4975_v59 }
 0xfd8   :  { %v4068_v9 = vmul.f32 -1.442695, %v4976_v41 }
 0xfd9   :  { %5157 = vpow2.f32 %v4067_v48 }
 0xfda   :  { %5159 = vpow2.f32 %v4068_v9 }
 0xfe3   :  { %v5158_v3 = vpop.eup %5157 }
 0xfe4   :  { %v3612_v44 = vadd.f32 1.0, %v5158_v3  ;;  %v5160_v60 = vpop.eup %5159 }
 0xfe5   :  { %v3619_v7 = vadd.f32 1.0, %v5160_v60 }
 0xfe6   :  { %5161 = vrcp.f32 %v3612_v44 }
 0xfe7   :  { %5163 = vrcp.f32 %v3619_v7 }
 0xff0   :  { %v5162_v62 = vpop.eup %5161 }
 0xff1   :  { %v3623_v40 = vmul.f32 %v5162_v62, %v3622_v26  ;;  %v5164_v24 = vpop.eup %5163 }
 0xff2   :  { %v3626_v63 = vsub.f32 1.0, %v5164_v24  ;;  %v3628_v58 = vmul.f32 %v5164_v24, %v3460_v39 }
 0xff3   :  { %v3624_v11 = vadd.f32 %v3623_v40, %v6259_v35  ;;  %v3805_v35 = vld [vmem:[%s6434_s12 + $0x30] sm:$0xff] }
 0xff4   :  { %v4955_v51 = vpack.c.bf16 %v3806_v4, %v3805_v35 }
 0xff5   :  { %5165 = vtanh.f32 %v3624_v11 }
 0xfff   :  { %v5166_v47 = vpop.eup %5165 }
0x1000   :  { %v3627_v8 = vmul.f32 %v5166_v47, %v3626_v63 }
0x1002   :  { %v3629_v0 = vadd.f32 %v3628_v58, %v3627_v8 }
0x1004   :  { %4069 = vmatmul.mubr.msk.f32.vlgmr.msra.gmra.mrb[38].mxu1 %vm707_vm7, %v3629_v0  ;;  %4531 = vmatmul.mubr.msk.f32.vlgmr.msra.gmra.mrb[56].mxu0 %vm707_vm7, %v3629_v0 }
0x1005   :  { %4953 = vmatpush3.bf16.msra.mxu0 %v4952_v25  ;;  %4541 = vmatprep.mubr.msk.f32.mxu0 %vm5350_vm2, %v5348_v1 }
0x1006   :  { %4954 = vmatprep.subr.bf16.mxu0 %v5349_v17  ;;  %4552 = vmatprep.mubr.msk.f32.mxu1 %vm5350_vm2, %v5348_v1  ;;  %v3802_v1 = vld [vmem:[%s6434_s12 + $0x18] sm:$0xff] }
0x1007   :  { %4959 = vmatpush3.bf16.msra.mxu1 %v4958_v2  ;;  %v4961_v43 = vpack.c.bf16 %v3802_v1, %v3801_v57 }
0x1008   :  { %4960 = vmatprep.subr.bf16.mxu1 %v5349_v17 }
0x1009   :  { %4956 = vmatpush3.bf16.msra.mxu0 %v4955_v51 }
0x100b   :  { %4962 = vmatpush3.bf16.msra.mxu1 %v4961_v43 }
0x100c   :  { %4542 = vmatmul.mubr.msk.f32.vlgmr.msra.gmra.mrb[58].mxu0 %vm707_vm7, %v6271_v52 }
0x10d7   :  { %v3702_v52 = vpop.f32.mrb[38].mxu1  ;;  %v3773_v36 = vpop.f32.mrb[56].mxu0 }
0x10d8   :  { %v4977_v15 = vadd.f32 %v3702_v52, %v6263_v10  ;;  %v3704_v34 = vpop.f32.mrb[39].mxu1  ;;  %v4532_v16 = vpop.f32.mrb[57].mxu0  ;;  %v3791_v6 = vadd.f32 %v6273_v27, %v3773_v36 }
0x10d9   :  { %v4978_v23 = vadd.f32 %v3704_v34, %v6266_v22 }
0x10da   :  { %v4071_v53 = vmul.f32 -1.442695, %v4977_v15 }
0x10db   :  { %v4072_v18 = vmul.f32 -1.442695, %v4978_v23 }
0x10dc   :  { %5167 = vpow2.f32 %v4071_v53 }
0x10dd   :  { %5169 = vpow2.f32 %v4072_v18 }
0x10df   :  { %v3876_v13 = vpop.f32.mrb[58].mxu0 }
0x10e0   :  { %v4543_v33 = vpop.f32.mrb[59].mxu0 }
0x10e6   :  { %v5168_v5 = vpop.eup %5167 }
0x10e7   :  { %v3781_v56 = vadd.f32 1.0, %v5168_v5  ;;  %v5170_v37 = vpop.eup %5169 }
0x10e8   :  { %v3788_v17 = vadd.f32 1.0, %v5170_v37 }
0x10e9   :  { %5171 = vrcp.f32 %v3781_v56 }
0x10ea   :  { %5173 = vrcp.f32 %v3788_v17 }
0x10f3   :  { %v5172_v12 = vpop.eup %5171 }
0x10f4   :  { %v3792_v14 = vmul.f32 %v5172_v12, %v3791_v6  ;;  %v5174_v31 = vpop.eup %5173 }
0x10f5   :  { %v3795_v22 = vsub.f32 1.0, %v5174_v31  ;;  %v3797_v32 = vmul.f32 %v5174_v31, %v3629_v0 }
0x10f6   :  { %v3793_v10 = vadd.f32 %v3792_v14, %v6255_v21 }
0x10f8   :  { %5175 = vtanh.f32 %v3793_v10 }
0x1102   :  { %v5176_v19 = vpop.eup %5175 }
0x1103   :  { %v3796_v28 = vmul.f32 %v5176_v19, %v3795_v22 }
0x1105   :  { %v3798_v29 = vadd.f32 %v3797_v32, %v3796_v28 }
0x1107   :  { %4553 = vmatmul.mubr.msk.f32.vlgmr.msra.gmra.mrb[42].mxu1 %vm707_vm7, %v3798_v29 }
0x11da   :  { %v3949_v38 = vpop.f32.mrb[42].mxu1 }
0x11db   :  { %v3950_v46 = vadd.f32 %v3949_v38, %v3876_v13  ;;  %v4554_v39 = vpop.f32.mrb[43].mxu1 }
0x11dd   :  { %v3960_v27 = vadd.f32 %v4075_v42, %v3950_v46 }
0x11df   :  { %3962 = vst.msk [vmem:[%s6436_s14] sm:$0xff] %vm3961_vm9, %v3960_v27 }
0x11e0   :  { %3967 = vsyncpa [#allocation6], 1 }
0x11e1   :  { %3968 = vsyncpa [#allocation8], 1 }
0x11e2   :  { %3969 = vsyncpa [#allocation11], 1 }
0x11e3   :  { %3970 = vsyncpa [#allocation14], 1 }

</bundles_post_ra>
